<compile_context>
chip_gen: v7x
topology: tpu7x:2x2x1
jax: 0.10.0
libtpu: 0.0.40
codegen_flags: <defaults>
</compile_context>

<pallas_src>
import jax
import jax.numpy as jnp
from jax.experimental import pallas as pl
from jax.experimental.pallas import tpu as pltpu

# ---- small config (scaled-down backbone, EMBED=32 stands in for 1280) ----
B = 2
C_IN = 3
IMG = 16
PATCH = 8
N_PATCH = (IMG // PATCH) ** 2            # 4 patches
SEQ = N_PATCH + 1                        # 5 real tokens (cls + patches)
SEQ_PAD = 8                              # padded to the sublane quantum
EMBED = 32
DEPTH = 2
HEADS = 4
HEAD_DIM = EMBED // HEADS                # 8
MLP_HIDDEN = 4 * EMBED                   # 128
BOTTLENECK = 64                          # stands in for 512
CLASSES = 8
LN_EPS = 1e-6
SCALE = HEAD_DIM ** -0.5
PATCH_DIM = C_IN * PATCH * PATCH         # 192
NEG_INF = -1e30


# ------------------------------ kernel helpers ------------------------------
def _layer_norm(x, g, b):
    mu = jnp.mean(x, axis=-1, keepdims=True)
    var = jnp.mean((x - mu) ** 2, axis=-1, keepdims=True)
    return (x - mu) * jax.lax.rsqrt(var + LN_EPS) * g + b


# ------------------------------ fused kernel ------------------------------
def _fused_forward_kernel(
    patches_ref, pw_ref, base_ref,
    ln1g_ref, ln1b_ref, qkvw_ref, qkvb_ref, projw_ref, projb_ref,
    ln2g_ref, ln2b_ref, fc1w_ref, fc1b_ref, fc2w_ref, fc2b_ref,
    ng_ref, nbeta_ref,
    w1_ref, b1_ref, w2_ref, b2_ref,
    out_ref,
):
    f32 = jnp.float32

    # Patch embedding for the whole batch.  Rows 0 and SEQ..SEQ_PAD-1 of
    # `patches` are zero, so they stay zero through the matmul; `base` already
    # folds cls token + positional embedding + patch-embed bias per row.
    tok = jnp.dot(patches_ref[0], pw_ref[0], preferred_element_type=f32)
    x = tok.reshape(B, SEQ_PAD, EMBED) + base_ref[0][None]     # (B, SEQ_PAD, EMBED)

    # Key mask: padded token positions never receive attention weight.
    kidx = jax.lax.broadcasted_iota(jnp.int32, (1, 1, SEQ_PAD), 2)
    kmask = jnp.where(kidx < SEQ, 0.0, NEG_INF).astype(f32)

    for d in range(DEPTH):
        # ---- attention (pre-LN) ----
        h = _layer_norm(x.reshape(B * SEQ_PAD, EMBED),
                        ln1g_ref[0, d], ln1b_ref[0, d])
        qkv = (jnp.dot(h, qkvw_ref[0, d], preferred_element_type=f32)
               + qkvb_ref[0, d])                               # (B*SEQ_PAD, 3*EMBED)
        projw = projw_ref[0, d]
        attn = jnp.zeros((B * SEQ_PAD, EMBED), f32)
        for hh in range(HEADS):
            lo = hh * HEAD_DIM
            qh = qkv[:, lo:lo + HEAD_DIM].reshape(B, SEQ_PAD, HEAD_DIM)
            kh = qkv[:, EMBED + lo:EMBED + lo + HEAD_DIM].reshape(B, SEQ_PAD, HEAD_DIM)
            vh = qkv[:, 2 * EMBED + lo:2 * EMBED + lo + HEAD_DIM].reshape(B, SEQ_PAD, HEAD_DIM)
            s = (jnp.einsum("bqd,bkd->bqk", qh, kh,
                            preferred_element_type=f32) * SCALE + kmask)
            p = jax.nn.softmax(s, axis=-1)
            ctx = jnp.einsum("bqk,bkd->bqd", p, vh, preferred_element_type=f32)
            # accumulate directly into the output projection: equivalent to
            # concat(heads) @ proj_w, without the lane concatenate.
            attn = attn + jnp.dot(ctx.reshape(B * SEQ_PAD, HEAD_DIM),
                                  projw[lo:lo + HEAD_DIM, :],
                                  preferred_element_type=f32)
        attn = attn + projb_ref[0, d]
        x = x + attn.reshape(B, SEQ_PAD, EMBED)                # residual 1

        # ---- mlp ----
        h2 = _layer_norm(x.reshape(B * SEQ_PAD, EMBED),
                         ln2g_ref[0, d], ln2b_ref[0, d])
        h2 = jnp.dot(h2, fc1w_ref[0, d], preferred_element_type=f32) + fc1b_ref[0, d]
        # TODO(synk): timm ViT uses exact (erf) GELU; tanh approximation used here.
        h2 = jax.nn.gelu(h2, approximate=True)
        h2 = jnp.dot(h2, fc2w_ref[0, d], preferred_element_type=f32) + fc2b_ref[0, d]
        x = x + h2.reshape(B, SEQ_PAD, EMBED)                  # residual 2

    # ---- final LayerNorm on cls token + shared ClassBlock ----
    cls_feat = _layer_norm(x[:, 0, :], ng_ref[0], nbeta_ref[0])          # (B, EMBED)
    hcls = jnp.dot(cls_feat, w1_ref[...], preferred_element_type=f32) + b1_ref[...]
    # TODO(synk): nn.Dropout(p=drop_rate) is identity in eval mode; not applied.
    out_ref[0] = jnp.dot(hcls, w2_ref[...], preferred_element_type=f32) + b2_ref[...]


# ------------------------------ wrappers / glue ------------------------------
_BLK_KEYS = ["ln1_g", "ln1_b", "qkv_w", "qkv_b", "proj_w", "proj_b",
             "ln2_g", "ln2_b", "fc1_w", "fc1_b", "fc2_w", "fc2_b"]
_BRANCH_KEYS = ["patch_w", "row_base"] + _BLK_KEYS + ["norm_g", "norm_b"]


def _patchify_padded(x):
    # x: (B, C, H, W) NCHW -> (B*SEQ_PAD, C*ph*pw) with zero rows at the cls
    # slot (0) and padding slots (SEQ..SEQ_PAD-1).  Same (C, ph, pw) unfold
    # order as Conv2d(kernel=stride=patch).
    b = x.shape[0]
    p = x.reshape(b, C_IN, IMG // PATCH, PATCH, IMG // PATCH, PATCH)
    p = p.transpose(0, 2, 4, 1, 3, 5).reshape(b, N_PATCH, PATCH_DIM)
    pre = jnp.zeros((b, 1, PATCH_DIM), jnp.float32)
    post = jnp.zeros((b, SEQ_PAD - SEQ, PATCH_DIM), jnp.float32)
    return jnp.concatenate([pre, p, post], axis=1).reshape(b * SEQ_PAD, PATCH_DIM)


def _prep_backbone(p):
    # Fold cls token, positional embedding and patch-embed bias into one
    # per-row additive constant; stack per-depth block weights on a leading axis.
    base = jnp.zeros((SEQ_PAD, EMBED), jnp.float32)
    base = base.at[:SEQ].set(p["pos"][0])
    base = base.at[0].add(p["cls"][0, 0])
    base = base.at[1:SEQ].add(p["patch_b"][0])
    out = {"patch_w": p["patch_w"], "row_base": base,
           "norm_g": p["norm_g"], "norm_b": p["norm_b"]}
    for k in _BLK_KEYS:
        out[k] = jnp.stack([blk[k] for blk in p["blocks"]], axis=0)   # (DEPTH, ...)
    return out


def _branch_index_map(nz):
    return lambda br: (br,) + (0,) * nz


def _shared_index_map(nz):
    return lambda br: (0,) * nz


def _run_fused(patches, stacked, cls_params, num_branches):
    branch_arrays = [patches] + [stacked[k] for k in _BRANCH_KEYS]
    shared_arrays = [cls_params["w1"], cls_params["b1"],
                     cls_params["w2"], cls_params["b2"]]
    in_specs = [pl.BlockSpec((1,) + a.shape[1:], _branch_index_map(a.ndim - 1))
                for a in branch_arrays]
    in_specs += [pl.BlockSpec(a.shape, _shared_index_map(a.ndim))
                 for a in shared_arrays]
    return pl.pallas_call(
        _fused_forward_kernel,
        out_shape=jax.ShapeDtypeStruct((num_branches, B, CLASSES), jnp.float32),
        grid=(num_branches,),
        in_specs=in_specs,
        out_specs=pl.BlockSpec((1, B, CLASSES), lambda br: (br, 0, 0)),
        compiler_params=pltpu.CompilerParams(
            dimension_semantics=("parallel",)),   # 2-TC branch sharding on v7x
    )(*branch_arrays, *shared_arrays)


def efficientv2_forward(x1, x2, params):
    inputs, backbones, slots = [], [], []
    if x1 is not None:
        inputs.append(x1); backbones.append(params["model_1"]); slots.append(0)
    if x2 is not None:
        inputs.append(x2); backbones.append(params["model_2"]); slots.append(1)
    if not inputs:
        return None, None
    patches = jnp.stack([_patchify_padded(x) for x in inputs], axis=0)
    preps = [_prep_backbone(bp) for bp in backbones]
    stacked = {k: jnp.stack([pr[k] for pr in preps], axis=0) for k in _BRANCH_KEYS}
    logits = _run_fused(patches, stacked, params["classifier"], len(inputs))
    results = [None, None]
    for i, s in enumerate(slots):
        results[s] = logits[i]
    return results[0], results[1]


# ------------------------------ parameter init ------------------------------
def _normal(key, shape, std):
    return std * jax.random.normal(key, shape, dtype=jnp.float32)


def init_backbone(key):
    # TODO(synk): original loads pretrained timm weights; synthetic init here.
    ks = iter(jax.random.split(key, 3 + 4 * DEPTH))
    p = {
        "patch_w": _normal(next(ks), (PATCH_DIM, EMBED), 0.02),
        "patch_b": jnp.zeros((1, EMBED), jnp.float32),
        "cls": _normal(next(ks), (1, 1, EMBED), 0.02),
        "pos": _normal(next(ks), (1, SEQ, EMBED), 0.02),
        "norm_g": jnp.ones((1, EMBED), jnp.float32),
        "norm_b": jnp.zeros((1, EMBED), jnp.float32),
        "blocks": [],
    }
    for _ in range(DEPTH):
        p["blocks"].append(dict(
            ln1_g=jnp.ones((1, EMBED), jnp.float32),
            ln1_b=jnp.zeros((1, EMBED), jnp.float32),
            qkv_w=_normal(next(ks), (EMBED, 3 * EMBED), 0.02),
            qkv_b=jnp.zeros((1, 3 * EMBED), jnp.float32),
            proj_w=_normal(next(ks), (EMBED, EMBED), 0.02),
            proj_b=jnp.zeros((1, EMBED), jnp.float32),
            ln2_g=jnp.ones((1, EMBED), jnp.float32),
            ln2_b=jnp.zeros((1, EMBED), jnp.float32),
            fc1_w=_normal(next(ks), (EMBED, MLP_HIDDEN), 0.02),
            fc1_b=jnp.zeros((1, MLP_HIDDEN), jnp.float32),
            fc2_w=_normal(next(ks), (MLP_HIDDEN, EMBED), 0.02),
            fc2_b=jnp.zeros((1, EMBED), jnp.float32),
        ))
    return p


def init_classifier(key):
    k1, k2 = jax.random.split(key)
    # add_block Linear: kaiming normal (fan_out), bias 0  (weights_init_kaiming)
    std1 = (2.0 / BOTTLENECK) ** 0.5
    # classifier Linear: std=0.001, bias 0                 (weights_init_classifier)
    return dict(
        w1=_normal(k1, (EMBED, BOTTLENECK), std1),
        b1=jnp.zeros((1, BOTTLENECK), jnp.float32),
        w2=_normal(k2, (BOTTLENECK, CLASSES), 0.001),
        b2=jnp.zeros((1, CLASSES), jnp.float32),
    )


if __name__ == "__main__":
    key = jax.random.PRNGKey(0)
    k_p1, k_p2, k_c, k_x1, k_x2 = jax.random.split(key, 5)
    params = dict(
        model_1=init_backbone(k_p1),
        model_2=init_backbone(k_p2),
        classifier=init_classifier(k_c),
    )
    x1 = jax.random.normal(k_x1, (B, C_IN, IMG, IMG), jnp.float32)
    x2 = jax.random.normal(k_x2, (B, C_IN, IMG, IMG), jnp.float32)

    fwd = jax.jit(efficientv2_forward)
    y1, y2 = fwd(x1, x2, params)
    jax.block_until_ready((y1, y2))
    assert y1.shape == (B, CLASSES) and y2.shape == (B, CLASSES)
    assert jnp.all(jnp.isfinite(y1)) and jnp.all(jnp.isfinite(y2))
    print("KERNEL_OK")
</pallas_src>

<mosaic_0001>
module attributes {stable_mosaic.version = 11 : i64} {
  func.func @_fused_forward_kernel(%arg0: i32, %arg1: memref<1x16x192xf32, #tpu.memory_space<vmem>>, %arg2: memref<1x192x32xf32, #tpu.memory_space<vmem>>, %arg3: memref<1x8x32xf32, #tpu.memory_space<vmem>>, %arg4: memref<1x2x1x32xf32, #tpu.memory_space<vmem>>, %arg5: memref<1x2x1x32xf32, #tpu.memory_space<vmem>>, %arg6: memref<1x2x32x96xf32, #tpu.memory_space<vmem>>, %arg7: memref<1x2x1x96xf32, #tpu.memory_space<vmem>>, %arg8: memref<1x2x32x32xf32, #tpu.memory_space<vmem>>, %arg9: memref<1x2x1x32xf32, #tpu.memory_space<vmem>>, %arg10: memref<1x2x1x32xf32, #tpu.memory_space<vmem>>, %arg11: memref<1x2x1x32xf32, #tpu.memory_space<vmem>>, %arg12: memref<1x2x32x128xf32, #tpu.memory_space<vmem>>, %arg13: memref<1x2x1x128xf32, #tpu.memory_space<vmem>>, %arg14: memref<1x2x128x32xf32, #tpu.memory_space<vmem>>, %arg15: memref<1x2x1x32xf32, #tpu.memory_space<vmem>>, %arg16: memref<1x1x32xf32, #tpu.memory_space<vmem>>, %arg17: memref<1x1x32xf32, #tpu.memory_space<vmem>>, %arg18: memref<32x64xf32, #tpu.memory_space<vmem>>, %arg19: memref<1x64xf32, #tpu.memory_space<vmem>>, %arg20: memref<64x8xf32, #tpu.memory_space<vmem>>, %arg21: memref<1x8xf32, #tpu.memory_space<vmem>>, %arg22: memref<1x2x8xf32, #tpu.memory_space<vmem>>) attributes {dimension_semantics = [#tpu.dimension_semantics<parallel>], iteration_bounds = array<i64: 2>, scalar_prefetch = 0 : i64, scratch_operands = 0 : i64, tpu.core_type = #tpu.core_type<tc>, window_params = [{transform_indices = @transform_0, window_bounds = array<i64: 1, 16, 192>}, {transform_indices = @transform_1, window_bounds = array<i64: 1, 192, 32>}, {transform_indices = @transform_2, window_bounds = array<i64: 1, 8, 32>}, {transform_indices = @transform_3, window_bounds = array<i64: 1, 2, 1, 32>}, {transform_indices = @transform_4, window_bounds = array<i64: 1, 2, 1, 32>}, {transform_indices = @transform_5, window_bounds = array<i64: 1, 2, 32, 96>}, {transform_indices = @transform_6, window_bounds = array<i64: 1, 2, 1, 96>}, {transform_indices = @transform_7, window_bounds = array<i64: 1, 2, 32, 32>}, {transform_indices = @transform_8, window_bounds = array<i64: 1, 2, 1, 32>}, {transform_indices = @transform_9, window_bounds = array<i64: 1, 2, 1, 32>}, {transform_indices = @transform_10, window_bounds = array<i64: 1, 2, 1, 32>}, {transform_indices = @transform_11, window_bounds = array<i64: 1, 2, 32, 128>}, {transform_indices = @transform_12, window_bounds = array<i64: 1, 2, 1, 128>}, {transform_indices = @transform_13, window_bounds = array<i64: 1, 2, 128, 32>}, {transform_indices = @transform_14, window_bounds = array<i64: 1, 2, 1, 32>}, {transform_indices = @transform_15, window_bounds = array<i64: 1, 1, 32>}, {transform_indices = @transform_16, window_bounds = array<i64: 1, 1, 32>}, {pipeline_mode = #tpu.pipeline_mode<synchronous>, transform_indices = @transform_17, window_bounds = array<i64: 32, 64>}, {pipeline_mode = #tpu.pipeline_mode<synchronous>, transform_indices = @transform_18, window_bounds = array<i64: 1, 64>}, {pipeline_mode = #tpu.pipeline_mode<synchronous>, transform_indices = @transform_19, window_bounds = array<i64: 64, 8>}, {pipeline_mode = #tpu.pipeline_mode<synchronous>, transform_indices = @transform_20, window_bounds = array<i64: 1, 8>}, {transform_indices = @transform_21, window_bounds = array<i64: 1, 2, 8>}]} {
    %c0 = arith.constant 0 : index
    %c0_0 = arith.constant 0 : index
    %c0_1 = arith.constant 0 : index
    %0 = vector.load %arg1[%c0, %c0_0, %c0_1] : memref<1x16x192xf32, #tpu.memory_space<vmem>>, vector<1x16x192xf32>
    %1 = vector.shape_cast %0 : vector<1x16x192xf32> to vector<16x192xf32>
    %c0_2 = arith.constant 0 : index
    %c0_3 = arith.constant 0 : index
    %c0_4 = arith.constant 0 : index
    %2 = vector.load %arg2[%c0_2, %c0_3, %c0_4] : memref<1x192x32xf32, #tpu.memory_space<vmem>>, vector<1x192x32xf32>
    %3 = vector.shape_cast %2 : vector<1x192x32xf32> to vector<192x32xf32>
    %cst = arith.constant dense<0.000000e+00> : vector<16x32xf32>
    %4 = tpu.matmul %1, %3, %cst {dimension_numbers = #tpu.dot_dimension_numbers<[1], [0], [0], [1], [0, 0, 1, 1], [], []>} : vector<16x192xf32>, vector<192x32xf32>, vector<16x32xf32> -> vector<16x32xf32>
    %5 = vector.shape_cast %4 : vector<16x32xf32> to vector<2x8x32xf32>
    %c0_5 = arith.constant 0 : index
    %c0_6 = arith.constant 0 : index
    %c0_7 = arith.constant 0 : index
    %6 = vector.load %arg3[%c0_5, %c0_6, %c0_7] : memref<1x8x32xf32, #tpu.memory_space<vmem>>, vector<1x8x32xf32>
    %7 = vector.shape_cast %6 : vector<1x8x32xf32> to vector<8x32xf32>
    %8 = vector.shape_cast %7 : vector<8x32xf32> to vector<1x8x32xf32>
    %9 = vector.broadcast %8 : vector<1x8x32xf32> to vector<2x8x32xf32>
    %10 = arith.addf %5, %9 : vector<2x8x32xf32>
    %11 = tpu.iota {dimensions = array<i32: 2>} : vector<1x1x8xi32>
    %c5_i32 = arith.constant 5 : i32
    %12 = vector.broadcast %c5_i32 : i32 to vector<1x1x8xi32>
    %13 = arith.cmpi slt, %11, %12 : vector<1x1x8xi32>
    %cst_8 = arith.constant 0.000000e+00 : f32
    %cst_9 = arith.constant -1.000000e+30 : f32
    %14 = vector.broadcast %cst_8 : f32 to vector<1x1x8xf32>
    %15 = vector.broadcast %cst_9 : f32 to vector<1x1x8xf32>
    %16 = arith.select %13, %14, %15 : vector<1x1x8xi1>, vector<1x1x8xf32>
    %17 = vector.shape_cast %10 : vector<2x8x32xf32> to vector<16x32xf32>
    %c0_10 = arith.constant 0 : index
    %c0_11 = arith.constant 0 : index
    %c0_12 = arith.constant 0 : index
    %c0_13 = arith.constant 0 : index
    %18 = vector.load %arg4[%c0_10, %c0_11, %c0_12, %c0_13] : memref<1x2x1x32xf32, #tpu.memory_space<vmem>>, vector<1x1x1x32xf32>
    %19 = vector.shape_cast %18 : vector<1x1x1x32xf32> to vector<1x32xf32>
    %c0_14 = arith.constant 0 : index
    %c0_15 = arith.constant 0 : index
    %c0_16 = arith.constant 0 : index
    %c0_17 = arith.constant 0 : index
    %20 = vector.load %arg5[%c0_14, %c0_15, %c0_16, %c0_17] : memref<1x2x1x32xf32, #tpu.memory_space<vmem>>, vector<1x1x1x32xf32>
    %21 = vector.shape_cast %20 : vector<1x1x1x32xf32> to vector<1x32xf32>
    %cst_18 = arith.constant dense<0.000000e+00> : vector<16xf32>
    %22 = vector.multi_reduction <add>, %17, %cst_18 [1] : vector<16x32xf32> to vector<16xf32>
    %23 = vector.shape_cast %22 : vector<16xf32> to vector<16x1xf32>
    %cst_19 = arith.constant 3.200000e+01 : f32
    %24 = vector.broadcast %cst_19 : f32 to vector<16x1xf32>
    %25 = arith.divf %23, %24 : vector<16x1xf32>
    %26 = vector.broadcast %25 : vector<16x1xf32> to vector<16x32xf32>
    %27 = arith.subf %17, %26 : vector<16x32xf32>
    %28 = arith.mulf %27, %27 : vector<16x32xf32>
    %cst_20 = arith.constant dense<0.000000e+00> : vector<16xf32>
    %29 = vector.multi_reduction <add>, %28, %cst_20 [1] : vector<16x32xf32> to vector<16xf32>
    %30 = vector.shape_cast %29 : vector<16xf32> to vector<16x1xf32>
    %cst_21 = arith.constant 3.200000e+01 : f32
    %31 = vector.broadcast %cst_21 : f32 to vector<16x1xf32>
    %32 = arith.divf %30, %31 : vector<16x1xf32>
    %33 = vector.broadcast %25 : vector<16x1xf32> to vector<16x32xf32>
    %34 = arith.subf %17, %33 : vector<16x32xf32>
    %cst_22 = arith.constant 9.99999997E-7 : f32
    %35 = vector.broadcast %cst_22 : f32 to vector<16x1xf32>
    %36 = arith.addf %32, %35 : vector<16x1xf32>
    %37 = math.rsqrt %36 : vector<16x1xf32>
    %38 = vector.broadcast %37 : vector<16x1xf32> to vector<16x32xf32>
    %39 = arith.mulf %34, %38 : vector<16x32xf32>
    %40 = vector.broadcast %19 : vector<1x32xf32> to vector<16x32xf32>
    %41 = arith.mulf %39, %40 : vector<16x32xf32>
    %42 = vector.broadcast %21 : vector<1x32xf32> to vector<16x32xf32>
    %43 = arith.addf %41, %42 : vector<16x32xf32>
    %c0_23 = arith.constant 0 : index
    %c0_24 = arith.constant 0 : index
    %c0_25 = arith.constant 0 : index
    %c0_26 = arith.constant 0 : index
    %44 = vector.load %arg6[%c0_23, %c0_24, %c0_25, %c0_26] : memref<1x2x32x96xf32, #tpu.memory_space<vmem>>, vector<1x1x32x96xf32>
    %45 = vector.shape_cast %44 : vector<1x1x32x96xf32> to vector<32x96xf32>
    %cst_27 = arith.constant dense<0.000000e+00> : vector<16x96xf32>
    %46 = tpu.matmul %43, %45, %cst_27 {dimension_numbers = #tpu.dot_dimension_numbers<[1], [0], [0], [1], [0, 0, 1, 1], [], []>} : vector<16x32xf32>, vector<32x96xf32>, vector<16x96xf32> -> vector<16x96xf32>
    %c0_28 = arith.constant 0 : index
    %c0_29 = arith.constant 0 : index
    %c0_30 = arith.constant 0 : index
    %c0_31 = arith.constant 0 : index
    %47 = vector.load %arg7[%c0_28, %c0_29, %c0_30, %c0_31] : memref<1x2x1x96xf32, #tpu.memory_space<vmem>>, vector<1x1x1x96xf32>
    %48 = vector.shape_cast %47 : vector<1x1x1x96xf32> to vector<1x96xf32>
    %49 = vector.broadcast %48 : vector<1x96xf32> to vector<16x96xf32>
    %50 = arith.addf %46, %49 : vector<16x96xf32>
    %c0_32 = arith.constant 0 : index
    %c0_33 = arith.constant 0 : index
    %c0_34 = arith.constant 0 : index
    %c0_35 = arith.constant 0 : index
    %51 = vector.load %arg8[%c0_32, %c0_33, %c0_34, %c0_35] : memref<1x2x32x32xf32, #tpu.memory_space<vmem>>, vector<1x1x32x32xf32>
    %52 = vector.shape_cast %51 : vector<1x1x32x32xf32> to vector<32x32xf32>
    %cst_36 = arith.constant 0.000000e+00 : f32
    %53 = vector.broadcast %cst_36 : f32 to vector<16x32xf32>
    %54 = vector.extract_strided_slice %50 {offsets = [0, 0], sizes = [16, 8], strides = [1, 1]} : vector<16x96xf32> to vector<16x8xf32>
    %55 = vector.shape_cast %54 : vector<16x8xf32> to vector<2x8x8xf32>
    %56 = vector.extract_strided_slice %50 {offsets = [0, 32], sizes = [16, 8], strides = [1, 1]} : vector<16x96xf32> to vector<16x8xf32>
    %57 = vector.shape_cast %56 : vector<16x8xf32> to vector<2x8x8xf32>
    %58 = vector.extract_strided_slice %50 {offsets = [0, 64], sizes = [16, 8], strides = [1, 1]} : vector<16x96xf32> to vector<16x8xf32>
    %59 = vector.shape_cast %58 : vector<16x8xf32> to vector<2x8x8xf32>
    "tpu.trace_start"() <{level = 10 : i32, message = "bqd,bkd->bqk"}> : () -> ()
    %cst_37 = arith.constant dense<0.000000e+00> : vector<2x8x8xf32>
    %60 = tpu.matmul %55, %57, %cst_37 {dimension_numbers = #tpu.dot_dimension_numbers<[2], [2], [1], [1], [0, 0, 0, 1, 1, 1], [0], [0]>} : vector<2x8x8xf32>, vector<2x8x8xf32>, vector<2x8x8xf32> -> vector<2x8x8xf32>
    "tpu.trace_stop"() : () -> ()
    %cst_38 = arith.constant 0.353553385 : f32
    %61 = vector.broadcast %cst_38 : f32 to vector<2x8x8xf32>
    %62 = arith.mulf %60, %61 : vector<2x8x8xf32>
    %63 = vector.broadcast %16 : vector<1x1x8xf32> to vector<2x8x8xf32>
    %64 = arith.addf %62, %63 : vector<2x8x8xf32>
    %cst_39 = arith.constant dense<0xFF800000> : vector<2x8xf32>
    %65 = vector.multi_reduction <maximumf>, %64, %cst_39 [2] : vector<2x8x8xf32> to vector<2x8xf32>
    %cst_40 = arith.constant 0xFF800000 : f32
    %66 = vector.broadcast %cst_40 : f32 to vector<2x8xf32>
    %67 = arith.maximumf %66, %65 : vector<2x8xf32>
    %68 = vector.shape_cast %67 : vector<2x8xf32> to vector<2x8x1xf32>
    %69 = vector.broadcast %68 : vector<2x8x1xf32> to vector<2x8x8xf32>
    %70 = arith.subf %64, %69 : vector<2x8x8xf32>
    %71 = math.exp %70 : vector<2x8x8xf32>
    %cst_41 = arith.constant dense<0.000000e+00> : vector<2x8xf32>
    %72 = vector.multi_reduction <add>, %71, %cst_41 [2] : vector<2x8x8xf32> to vector<2x8xf32>
    %73 = vector.shape_cast %72 : vector<2x8xf32> to vector<2x8x1xf32>
    %74 = vector.broadcast %73 : vector<2x8x1xf32> to vector<2x8x8xf32>
    %75 = arith.divf %71, %74 : vector<2x8x8xf32>
    "tpu.trace_start"() <{level = 10 : i32, message = "bqk,bkd->bqd"}> : () -> ()
    %cst_42 = arith.constant dense<0.000000e+00> : vector<2x8x8xf32>
    %76 = tpu.matmul %75, %59, %cst_42 {dimension_numbers = #tpu.dot_dimension_numbers<[2], [1], [1], [2], [0, 0, 0, 1, 1, 2], [0], [0]>} : vector<2x8x8xf32>, vector<2x8x8xf32>, vector<2x8x8xf32> -> vector<2x8x8xf32>
    "tpu.trace_stop"() : () -> ()
    %77 = vector.shape_cast %76 : vector<2x8x8xf32> to vector<16x8xf32>
    %78 = vector.extract_strided_slice %52 {offsets = [0, 0], sizes = [8, 32], strides = [1, 1]} : vector<32x32xf32> to vector<8x32xf32>
    %cst_43 = arith.constant dense<0.000000e+00> : vector<16x32xf32>
    %79 = tpu.matmul %77, %78, %cst_43 {dimension_numbers = #tpu.dot_dimension_numbers<[1], [0], [0], [1], [0, 0, 1, 1], [], []>} : vector<16x8xf32>, vector<8x32xf32>, vector<16x32xf32> -> vector<16x32xf32>
    %80 = arith.addf %53, %79 : vector<16x32xf32>
    %81 = vector.extract_strided_slice %50 {offsets = [0, 8], sizes = [16, 8], strides = [1, 1]} : vector<16x96xf32> to vector<16x8xf32>
    %82 = vector.shape_cast %81 : vector<16x8xf32> to vector<2x8x8xf32>
    %83 = vector.extract_strided_slice %50 {offsets = [0, 40], sizes = [16, 8], strides = [1, 1]} : vector<16x96xf32> to vector<16x8xf32>
    %84 = vector.shape_cast %83 : vector<16x8xf32> to vector<2x8x8xf32>
    %85 = vector.extract_strided_slice %50 {offsets = [0, 72], sizes = [16, 8], strides = [1, 1]} : vector<16x96xf32> to vector<16x8xf32>
    %86 = vector.shape_cast %85 : vector<16x8xf32> to vector<2x8x8xf32>
    "tpu.trace_start"() <{level = 10 : i32, message = "bqd,bkd->bqk"}> : () -> ()
    %cst_44 = arith.constant dense<0.000000e+00> : vector<2x8x8xf32>
    %87 = tpu.matmul %82, %84, %cst_44 {dimension_numbers = #tpu.dot_dimension_numbers<[2], [2], [1], [1], [0, 0, 0, 1, 1, 1], [0], [0]>} : vector<2x8x8xf32>, vector<2x8x8xf32>, vector<2x8x8xf32> -> vector<2x8x8xf32>
    "tpu.trace_stop"() : () -> ()
    %cst_45 = arith.constant 0.353553385 : f32
    %88 = vector.broadcast %cst_45 : f32 to vector<2x8x8xf32>
    %89 = arith.mulf %87, %88 : vector<2x8x8xf32>
    %90 = vector.broadcast %16 : vector<1x1x8xf32> to vector<2x8x8xf32>
    %91 = arith.addf %89, %90 : vector<2x8x8xf32>
    %cst_46 = arith.constant dense<0xFF800000> : vector<2x8xf32>
    %92 = vector.multi_reduction <maximumf>, %91, %cst_46 [2] : vector<2x8x8xf32> to vector<2x8xf32>
    %cst_47 = arith.constant 0xFF800000 : f32
    %93 = vector.broadcast %cst_47 : f32 to vector<2x8xf32>
    %94 = arith.maximumf %93, %92 : vector<2x8xf32>
    %95 = vector.shape_cast %94 : vector<2x8xf32> to vector<2x8x1xf32>
    %96 = vector.broadcast %95 : vector<2x8x1xf32> to vector<2x8x8xf32>
    %97 = arith.subf %91, %96 : vector<2x8x8xf32>
    %98 = math.exp %97 : vector<2x8x8xf32>
    %cst_48 = arith.constant dense<0.000000e+00> : vector<2x8xf32>
    %99 = vector.multi_reduction <add>, %98, %cst_48 [2] : vector<2x8x8xf32> to vector<2x8xf32>
    %100 = vector.shape_cast %99 : vector<2x8xf32> to vector<2x8x1xf32>
    %101 = vector.broadcast %100 : vector<2x8x1xf32> to vector<2x8x8xf32>
    %102 = arith.divf %98, %101 : vector<2x8x8xf32>
    "tpu.trace_start"() <{level = 10 : i32, message = "bqk,bkd->bqd"}> : () -> ()
    %cst_49 = arith.constant dense<0.000000e+00> : vector<2x8x8xf32>
    %103 = tpu.matmul %102, %86, %cst_49 {dimension_numbers = #tpu.dot_dimension_numbers<[2], [1], [1], [2], [0, 0, 0, 1, 1, 2], [0], [0]>} : vector<2x8x8xf32>, vector<2x8x8xf32>, vector<2x8x8xf32> -> vector<2x8x8xf32>
    "tpu.trace_stop"() : () -> ()
    %104 = vector.shape_cast %103 : vector<2x8x8xf32> to vector<16x8xf32>
    %105 = vector.extract_strided_slice %52 {offsets = [8, 0], sizes = [8, 32], strides = [1, 1]} : vector<32x32xf32> to vector<8x32xf32>
    %cst_50 = arith.constant dense<0.000000e+00> : vector<16x32xf32>
    %106 = tpu.matmul %104, %105, %cst_50 {dimension_numbers = #tpu.dot_dimension_numbers<[1], [0], [0], [1], [0, 0, 1, 1], [], []>} : vector<16x8xf32>, vector<8x32xf32>, vector<16x32xf32> -> vector<16x32xf32>
    %107 = arith.addf %80, %106 : vector<16x32xf32>
    %108 = vector.extract_strided_slice %50 {offsets = [0, 16], sizes = [16, 8], strides = [1, 1]} : vector<16x96xf32> to vector<16x8xf32>
    %109 = vector.shape_cast %108 : vector<16x8xf32> to vector<2x8x8xf32>
    %110 = vector.extract_strided_slice %50 {offsets = [0, 48], sizes = [16, 8], strides = [1, 1]} : vector<16x96xf32> to vector<16x8xf32>
    %111 = vector.shape_cast %110 : vector<16x8xf32> to vector<2x8x8xf32>
    %112 = vector.extract_strided_slice %50 {offsets = [0, 80], sizes = [16, 8], strides = [1, 1]} : vector<16x96xf32> to vector<16x8xf32>
    %113 = vector.shape_cast %112 : vector<16x8xf32> to vector<2x8x8xf32>
    "tpu.trace_start"() <{level = 10 : i32, message = "bqd,bkd->bqk"}> : () -> ()
    %cst_51 = arith.constant dense<0.000000e+00> : vector<2x8x8xf32>
    %114 = tpu.matmul %109, %111, %cst_51 {dimension_numbers = #tpu.dot_dimension_numbers<[2], [2], [1], [1], [0, 0, 0, 1, 1, 1], [0], [0]>} : vector<2x8x8xf32>, vector<2x8x8xf32>, vector<2x8x8xf32> -> vector<2x8x8xf32>
    "tpu.trace_stop"() : () -> ()
    %cst_52 = arith.constant 0.353553385 : f32
    %115 = vector.broadcast %cst_52 : f32 to vector<2x8x8xf32>
    %116 = arith.mulf %114, %115 : vector<2x8x8xf32>
    %117 = vector.broadcast %16 : vector<1x1x8xf32> to vector<2x8x8xf32>
    %118 = arith.addf %116, %117 : vector<2x8x8xf32>
    %cst_53 = arith.constant dense<0xFF800000> : vector<2x8xf32>
    %119 = vector.multi_reduction <maximumf>, %118, %cst_53 [2] : vector<2x8x8xf32> to vector<2x8xf32>
    %cst_54 = arith.constant 0xFF800000 : f32
    %120 = vector.broadcast %cst_54 : f32 to vector<2x8xf32>
    %121 = arith.maximumf %120, %119 : vector<2x8xf32>
    %122 = vector.shape_cast %121 : vector<2x8xf32> to vector<2x8x1xf32>
    %123 = vector.broadcast %122 : vector<2x8x1xf32> to vector<2x8x8xf32>
    %124 = arith.subf %118, %123 : vector<2x8x8xf32>
    %125 = math.exp %124 : vector<2x8x8xf32>
    %cst_55 = arith.constant dense<0.000000e+00> : vector<2x8xf32>
    %126 = vector.multi_reduction <add>, %125, %cst_55 [2] : vector<2x8x8xf32> to vector<2x8xf32>
    %127 = vector.shape_cast %126 : vector<2x8xf32> to vector<2x8x1xf32>
    %128 = vector.broadcast %127 : vector<2x8x1xf32> to vector<2x8x8xf32>
    %129 = arith.divf %125, %128 : vector<2x8x8xf32>
    "tpu.trace_start"() <{level = 10 : i32, message = "bqk,bkd->bqd"}> : () -> ()
    %cst_56 = arith.constant dense<0.000000e+00> : vector<2x8x8xf32>
    %130 = tpu.matmul %129, %113, %cst_56 {dimension_numbers = #tpu.dot_dimension_numbers<[2], [1], [1], [2], [0, 0, 0, 1, 1, 2], [0], [0]>} : vector<2x8x8xf32>, vector<2x8x8xf32>, vector<2x8x8xf32> -> vector<2x8x8xf32>
    "tpu.trace_stop"() : () -> ()
    %131 = vector.shape_cast %130 : vector<2x8x8xf32> to vector<16x8xf32>
    %132 = vector.extract_strided_slice %52 {offsets = [16, 0], sizes = [8, 32], strides = [1, 1]} : vector<32x32xf32> to vector<8x32xf32>
    %cst_57 = arith.constant dense<0.000000e+00> : vector<16x32xf32>
    %133 = tpu.matmul %131, %132, %cst_57 {dimension_numbers = #tpu.dot_dimension_numbers<[1], [0], [0], [1], [0, 0, 1, 1], [], []>} : vector<16x8xf32>, vector<8x32xf32>, vector<16x32xf32> -> vector<16x32xf32>
    %134 = arith.addf %107, %133 : vector<16x32xf32>
    %135 = vector.extract_strided_slice %50 {offsets = [0, 24], sizes = [16, 8], strides = [1, 1]} : vector<16x96xf32> to vector<16x8xf32>
    %136 = vector.shape_cast %135 : vector<16x8xf32> to vector<2x8x8xf32>
    %137 = vector.extract_strided_slice %50 {offsets = [0, 56], sizes = [16, 8], strides = [1, 1]} : vector<16x96xf32> to vector<16x8xf32>
    %138 = vector.shape_cast %137 : vector<16x8xf32> to vector<2x8x8xf32>
    %139 = vector.extract_strided_slice %50 {offsets = [0, 88], sizes = [16, 8], strides = [1, 1]} : vector<16x96xf32> to vector<16x8xf32>
    %140 = vector.shape_cast %139 : vector<16x8xf32> to vector<2x8x8xf32>
    "tpu.trace_start"() <{level = 10 : i32, message = "bqd,bkd->bqk"}> : () -> ()
    %cst_58 = arith.constant dense<0.000000e+00> : vector<2x8x8xf32>
    %141 = tpu.matmul %136, %138, %cst_58 {dimension_numbers = #tpu.dot_dimension_numbers<[2], [2], [1], [1], [0, 0, 0, 1, 1, 1], [0], [0]>} : vector<2x8x8xf32>, vector<2x8x8xf32>, vector<2x8x8xf32> -> vector<2x8x8xf32>
    "tpu.trace_stop"() : () -> ()
    %cst_59 = arith.constant 0.353553385 : f32
    %142 = vector.broadcast %cst_59 : f32 to vector<2x8x8xf32>
    %143 = arith.mulf %141, %142 : vector<2x8x8xf32>
    %144 = vector.broadcast %16 : vector<1x1x8xf32> to vector<2x8x8xf32>
    %145 = arith.addf %143, %144 : vector<2x8x8xf32>
    %cst_60 = arith.constant dense<0xFF800000> : vector<2x8xf32>
    %146 = vector.multi_reduction <maximumf>, %145, %cst_60 [2] : vector<2x8x8xf32> to vector<2x8xf32>
    %cst_61 = arith.constant 0xFF800000 : f32
    %147 = vector.broadcast %cst_61 : f32 to vector<2x8xf32>
    %148 = arith.maximumf %147, %146 : vector<2x8xf32>
    %149 = vector.shape_cast %148 : vector<2x8xf32> to vector<2x8x1xf32>
    %150 = vector.broadcast %149 : vector<2x8x1xf32> to vector<2x8x8xf32>
    %151 = arith.subf %145, %150 : vector<2x8x8xf32>
    %152 = math.exp %151 : vector<2x8x8xf32>
    %cst_62 = arith.constant dense<0.000000e+00> : vector<2x8xf32>
    %153 = vector.multi_reduction <add>, %152, %cst_62 [2] : vector<2x8x8xf32> to vector<2x8xf32>
    %154 = vector.shape_cast %153 : vector<2x8xf32> to vector<2x8x1xf32>
    %155 = vector.broadcast %154 : vector<2x8x1xf32> to vector<2x8x8xf32>
    %156 = arith.divf %152, %155 : vector<2x8x8xf32>
    "tpu.trace_start"() <{level = 10 : i32, message = "bqk,bkd->bqd"}> : () -> ()
    %cst_63 = arith.constant dense<0.000000e+00> : vector<2x8x8xf32>
    %157 = tpu.matmul %156, %140, %cst_63 {dimension_numbers = #tpu.dot_dimension_numbers<[2], [1], [1], [2], [0, 0, 0, 1, 1, 2], [0], [0]>} : vector<2x8x8xf32>, vector<2x8x8xf32>, vector<2x8x8xf32> -> vector<2x8x8xf32>
    "tpu.trace_stop"() : () -> ()
    %158 = vector.shape_cast %157 : vector<2x8x8xf32> to vector<16x8xf32>
    %159 = vector.extract_strided_slice %52 {offsets = [24, 0], sizes = [8, 32], strides = [1, 1]} : vector<32x32xf32> to vector<8x32xf32>
    %cst_64 = arith.constant dense<0.000000e+00> : vector<16x32xf32>
    %160 = tpu.matmul %158, %159, %cst_64 {dimension_numbers = #tpu.dot_dimension_numbers<[1], [0], [0], [1], [0, 0, 1, 1], [], []>} : vector<16x8xf32>, vector<8x32xf32>, vector<16x32xf32> -> vector<16x32xf32>
    %161 = arith.addf %134, %160 : vector<16x32xf32>
    %c0_65 = arith.constant 0 : index
    %c0_66 = arith.constant 0 : index
    %c0_67 = arith.constant 0 : index
    %c0_68 = arith.constant 0 : index
    %162 = vector.load %arg9[%c0_65, %c0_66, %c0_67, %c0_68] : memref<1x2x1x32xf32, #tpu.memory_space<vmem>>, vector<1x1x1x32xf32>
    %163 = vector.shape_cast %162 : vector<1x1x1x32xf32> to vector<1x32xf32>
    %164 = vector.broadcast %163 : vector<1x32xf32> to vector<16x32xf32>
    %165 = arith.addf %161, %164 : vector<16x32xf32>
    %166 = vector.shape_cast %165 : vector<16x32xf32> to vector<2x8x32xf32>
    %167 = arith.addf %10, %166 : vector<2x8x32xf32>
    %168 = vector.shape_cast %167 : vector<2x8x32xf32> to vector<16x32xf32>
    %c0_69 = arith.constant 0 : index
    %c0_70 = arith.constant 0 : index
    %c0_71 = arith.constant 0 : index
    %c0_72 = arith.constant 0 : index
    %169 = vector.load %arg10[%c0_69, %c0_70, %c0_71, %c0_72] : memref<1x2x1x32xf32, #tpu.memory_space<vmem>>, vector<1x1x1x32xf32>
    %170 = vector.shape_cast %169 : vector<1x1x1x32xf32> to vector<1x32xf32>
    %c0_73 = arith.constant 0 : index
    %c0_74 = arith.constant 0 : index
    %c0_75 = arith.constant 0 : index
    %c0_76 = arith.constant 0 : index
    %171 = vector.load %arg11[%c0_73, %c0_74, %c0_75, %c0_76] : memref<1x2x1x32xf32, #tpu.memory_space<vmem>>, vector<1x1x1x32xf32>
    %172 = vector.shape_cast %171 : vector<1x1x1x32xf32> to vector<1x32xf32>
    %cst_77 = arith.constant dense<0.000000e+00> : vector<16xf32>
    %173 = vector.multi_reduction <add>, %168, %cst_77 [1] : vector<16x32xf32> to vector<16xf32>
    %174 = vector.shape_cast %173 : vector<16xf32> to vector<16x1xf32>
    %cst_78 = arith.constant 3.200000e+01 : f32
    %175 = vector.broadcast %cst_78 : f32 to vector<16x1xf32>
    %176 = arith.divf %174, %175 : vector<16x1xf32>
    %177 = vector.broadcast %176 : vector<16x1xf32> to vector<16x32xf32>
    %178 = arith.subf %168, %177 : vector<16x32xf32>
    %179 = arith.mulf %178, %178 : vector<16x32xf32>
    %cst_79 = arith.constant dense<0.000000e+00> : vector<16xf32>
    %180 = vector.multi_reduction <add>, %179, %cst_79 [1] : vector<16x32xf32> to vector<16xf32>
    %181 = vector.shape_cast %180 : vector<16xf32> to vector<16x1xf32>
    %cst_80 = arith.constant 3.200000e+01 : f32
    %182 = vector.broadcast %cst_80 : f32 to vector<16x1xf32>
    %183 = arith.divf %181, %182 : vector<16x1xf32>
    %184 = vector.broadcast %176 : vector<16x1xf32> to vector<16x32xf32>
    %185 = arith.subf %168, %184 : vector<16x32xf32>
    %cst_81 = arith.constant 9.99999997E-7 : f32
    %186 = vector.broadcast %cst_81 : f32 to vector<16x1xf32>
    %187 = arith.addf %183, %186 : vector<16x1xf32>
    %188 = math.rsqrt %187 : vector<16x1xf32>
    %189 = vector.broadcast %188 : vector<16x1xf32> to vector<16x32xf32>
    %190 = arith.mulf %185, %189 : vector<16x32xf32>
    %191 = vector.broadcast %170 : vector<1x32xf32> to vector<16x32xf32>
    %192 = arith.mulf %190, %191 : vector<16x32xf32>
    %193 = vector.broadcast %172 : vector<1x32xf32> to vector<16x32xf32>
    %194 = arith.addf %192, %193 : vector<16x32xf32>
    %c0_82 = arith.constant 0 : index
    %c0_83 = arith.constant 0 : index
    %c0_84 = arith.constant 0 : index
    %c0_85 = arith.constant 0 : index
    %195 = vector.load %arg12[%c0_82, %c0_83, %c0_84, %c0_85] : memref<1x2x32x128xf32, #tpu.memory_space<vmem>>, vector<1x1x32x128xf32>
    %196 = vector.shape_cast %195 : vector<1x1x32x128xf32> to vector<32x128xf32>
    %cst_86 = arith.constant dense<0.000000e+00> : vector<16x128xf32>
    %197 = tpu.matmul %194, %196, %cst_86 {dimension_numbers = #tpu.dot_dimension_numbers<[1], [0], [0], [1], [0, 0, 1, 1], [], []>} : vector<16x32xf32>, vector<32x128xf32>, vector<16x128xf32> -> vector<16x128xf32>
    %c0_87 = arith.constant 0 : index
    %c0_88 = arith.constant 0 : index
    %c0_89 = arith.constant 0 : index
    %c0_90 = arith.constant 0 : index
    %198 = vector.load %arg13[%c0_87, %c0_88, %c0_89, %c0_90] : memref<1x2x1x128xf32, #tpu.memory_space<vmem>>, vector<1x1x1x128xf32>
    %199 = vector.shape_cast %198 : vector<1x1x1x128xf32> to vector<1x128xf32>
    %200 = vector.broadcast %199 : vector<1x128xf32> to vector<16x128xf32>
    %201 = arith.addf %197, %200 : vector<16x128xf32>
    %202 = arith.mulf %201, %201 : vector<16x128xf32>
    %203 = arith.mulf %201, %202 : vector<16x128xf32>
    %cst_91 = arith.constant 4.471500e-02 : f32
    %204 = vector.broadcast %cst_91 : f32 to vector<16x128xf32>
    %205 = arith.mulf %204, %203 : vector<16x128xf32>
    %206 = arith.addf %201, %205 : vector<16x128xf32>
    %cst_92 = arith.constant 0.797884583 : f32
    %207 = vector.broadcast %cst_92 : f32 to vector<16x128xf32>
    %208 = arith.mulf %207, %206 : vector<16x128xf32>
    %209 = math.tanh %208 : vector<16x128xf32>
    %cst_93 = arith.constant 1.000000e+00 : f32
    %210 = vector.broadcast %cst_93 : f32 to vector<16x128xf32>
    %211 = arith.addf %210, %209 : vector<16x128xf32>
    %cst_94 = arith.constant 5.000000e-01 : f32
    %212 = vector.broadcast %cst_94 : f32 to vector<16x128xf32>
    %213 = arith.mulf %212, %211 : vector<16x128xf32>
    %214 = arith.mulf %201, %213 : vector<16x128xf32>
    %c0_95 = arith.constant 0 : index
    %c0_96 = arith.constant 0 : index
    %c0_97 = arith.constant 0 : index
    %c0_98 = arith.constant 0 : index
    %215 = vector.load %arg14[%c0_95, %c0_96, %c0_97, %c0_98] : memref<1x2x128x32xf32, #tpu.memory_space<vmem>>, vector<1x1x128x32xf32>
    %216 = vector.shape_cast %215 : vector<1x1x128x32xf32> to vector<128x32xf32>
    %cst_99 = arith.constant dense<0.000000e+00> : vector<16x32xf32>
    %217 = tpu.matmul %214, %216, %cst_99 {dimension_numbers = #tpu.dot_dimension_numbers<[1], [0], [0], [1], [0, 0, 1, 1], [], []>} : vector<16x128xf32>, vector<128x32xf32>, vector<16x32xf32> -> vector<16x32xf32>
    %c0_100 = arith.constant 0 : index
    %c0_101 = arith.constant 0 : index
    %c0_102 = arith.constant 0 : index
    %c0_103 = arith.constant 0 : index
    %218 = vector.load %arg15[%c0_100, %c0_101, %c0_102, %c0_103] : memref<1x2x1x32xf32, #tpu.memory_space<vmem>>, vector<1x1x1x32xf32>
    %219 = vector.shape_cast %218 : vector<1x1x1x32xf32> to vector<1x32xf32>
    %220 = vector.broadcast %219 : vector<1x32xf32> to vector<16x32xf32>
    %221 = arith.addf %217, %220 : vector<16x32xf32>
    %222 = vector.shape_cast %221 : vector<16x32xf32> to vector<2x8x32xf32>
    %223 = arith.addf %167, %222 : vector<2x8x32xf32>
    %224 = vector.shape_cast %223 : vector<2x8x32xf32> to vector<16x32xf32>
    %c0_104 = arith.constant 0 : index
    %c1 = arith.constant 1 : index
    %c0_105 = arith.constant 0 : index
    %c0_106 = arith.constant 0 : index
    %225 = vector.load %arg4[%c0_104, %c1, %c0_105, %c0_106] : memref<1x2x1x32xf32, #tpu.memory_space<vmem>>, vector<1x1x1x32xf32>
    %226 = vector.shape_cast %225 : vector<1x1x1x32xf32> to vector<1x32xf32>
    %c0_107 = arith.constant 0 : index
    %c1_108 = arith.constant 1 : index
    %c0_109 = arith.constant 0 : index
    %c0_110 = arith.constant 0 : index
    %227 = vector.load %arg5[%c0_107, %c1_108, %c0_109, %c0_110] : memref<1x2x1x32xf32, #tpu.memory_space<vmem>>, vector<1x1x1x32xf32>
    %228 = vector.shape_cast %227 : vector<1x1x1x32xf32> to vector<1x32xf32>
    %cst_111 = arith.constant dense<0.000000e+00> : vector<16xf32>
    %229 = vector.multi_reduction <add>, %224, %cst_111 [1] : vector<16x32xf32> to vector<16xf32>
    %230 = vector.shape_cast %229 : vector<16xf32> to vector<16x1xf32>
    %cst_112 = arith.constant 3.200000e+01 : f32
    %231 = vector.broadcast %cst_112 : f32 to vector<16x1xf32>
    %232 = arith.divf %230, %231 : vector<16x1xf32>
    %233 = vector.broadcast %232 : vector<16x1xf32> to vector<16x32xf32>
    %234 = arith.subf %224, %233 : vector<16x32xf32>
    %235 = arith.mulf %234, %234 : vector<16x32xf32>
    %cst_113 = arith.constant dense<0.000000e+00> : vector<16xf32>
    %236 = vector.multi_reduction <add>, %235, %cst_113 [1] : vector<16x32xf32> to vector<16xf32>
    %237 = vector.shape_cast %236 : vector<16xf32> to vector<16x1xf32>
    %cst_114 = arith.constant 3.200000e+01 : f32
    %238 = vector.broadcast %cst_114 : f32 to vector<16x1xf32>
    %239 = arith.divf %237, %238 : vector<16x1xf32>
    %240 = vector.broadcast %232 : vector<16x1xf32> to vector<16x32xf32>
    %241 = arith.subf %224, %240 : vector<16x32xf32>
    %cst_115 = arith.constant 9.99999997E-7 : f32
    %242 = vector.broadcast %cst_115 : f32 to vector<16x1xf32>
    %243 = arith.addf %239, %242 : vector<16x1xf32>
    %244 = math.rsqrt %243 : vector<16x1xf32>
    %245 = vector.broadcast %244 : vector<16x1xf32> to vector<16x32xf32>
    %246 = arith.mulf %241, %245 : vector<16x32xf32>
    %247 = vector.broadcast %226 : vector<1x32xf32> to vector<16x32xf32>
    %248 = arith.mulf %246, %247 : vector<16x32xf32>
    %249 = vector.broadcast %228 : vector<1x32xf32> to vector<16x32xf32>
    %250 = arith.addf %248, %249 : vector<16x32xf32>
    %c0_116 = arith.constant 0 : index
    %c1_117 = arith.constant 1 : index
    %c0_118 = arith.constant 0 : index
    %c0_119 = arith.constant 0 : index
    %251 = vector.load %arg6[%c0_116, %c1_117, %c0_118, %c0_119] : memref<1x2x32x96xf32, #tpu.memory_space<vmem>>, vector<1x1x32x96xf32>
    %252 = vector.shape_cast %251 : vector<1x1x32x96xf32> to vector<32x96xf32>
    %cst_120 = arith.constant dense<0.000000e+00> : vector<16x96xf32>
    %253 = tpu.matmul %250, %252, %cst_120 {dimension_numbers = #tpu.dot_dimension_numbers<[1], [0], [0], [1], [0, 0, 1, 1], [], []>} : vector<16x32xf32>, vector<32x96xf32>, vector<16x96xf32> -> vector<16x96xf32>
    %c0_121 = arith.constant 0 : index
    %c1_122 = arith.constant 1 : index
    %c0_123 = arith.constant 0 : index
    %c0_124 = arith.constant 0 : index
    %254 = vector.load %arg7[%c0_121, %c1_122, %c0_123, %c0_124] : memref<1x2x1x96xf32, #tpu.memory_space<vmem>>, vector<1x1x1x96xf32>
    %255 = vector.shape_cast %254 : vector<1x1x1x96xf32> to vector<1x96xf32>
    %256 = vector.broadcast %255 : vector<1x96xf32> to vector<16x96xf32>
    %257 = arith.addf %253, %256 : vector<16x96xf32>
    %c0_125 = arith.constant 0 : index
    %c1_126 = arith.constant 1 : index
    %c0_127 = arith.constant 0 : index
    %c0_128 = arith.constant 0 : index
    %258 = vector.load %arg8[%c0_125, %c1_126, %c0_127, %c0_128] : memref<1x2x32x32xf32, #tpu.memory_space<vmem>>, vector<1x1x32x32xf32>
    %259 = vector.shape_cast %258 : vector<1x1x32x32xf32> to vector<32x32xf32>
    %cst_129 = arith.constant 0.000000e+00 : f32
    %260 = vector.broadcast %cst_129 : f32 to vector<16x32xf32>
    %261 = vector.extract_strided_slice %257 {offsets = [0, 0], sizes = [16, 8], strides = [1, 1]} : vector<16x96xf32> to vector<16x8xf32>
    %262 = vector.shape_cast %261 : vector<16x8xf32> to vector<2x8x8xf32>
    %263 = vector.extract_strided_slice %257 {offsets = [0, 32], sizes = [16, 8], strides = [1, 1]} : vector<16x96xf32> to vector<16x8xf32>
    %264 = vector.shape_cast %263 : vector<16x8xf32> to vector<2x8x8xf32>
    %265 = vector.extract_strided_slice %257 {offsets = [0, 64], sizes = [16, 8], strides = [1, 1]} : vector<16x96xf32> to vector<16x8xf32>
    %266 = vector.shape_cast %265 : vector<16x8xf32> to vector<2x8x8xf32>
    "tpu.trace_start"() <{level = 10 : i32, message = "bqd,bkd->bqk"}> : () -> ()
    %cst_130 = arith.constant dense<0.000000e+00> : vector<2x8x8xf32>
    %267 = tpu.matmul %262, %264, %cst_130 {dimension_numbers = #tpu.dot_dimension_numbers<[2], [2], [1], [1], [0, 0, 0, 1, 1, 1], [0], [0]>} : vector<2x8x8xf32>, vector<2x8x8xf32>, vector<2x8x8xf32> -> vector<2x8x8xf32>
    "tpu.trace_stop"() : () -> ()
    %cst_131 = arith.constant 0.353553385 : f32
    %268 = vector.broadcast %cst_131 : f32 to vector<2x8x8xf32>
    %269 = arith.mulf %267, %268 : vector<2x8x8xf32>
    %270 = vector.broadcast %16 : vector<1x1x8xf32> to vector<2x8x8xf32>
    %271 = arith.addf %269, %270 : vector<2x8x8xf32>
    %cst_132 = arith.constant dense<0xFF800000> : vector<2x8xf32>
    %272 = vector.multi_reduction <maximumf>, %271, %cst_132 [2] : vector<2x8x8xf32> to vector<2x8xf32>
    %cst_133 = arith.constant 0xFF800000 : f32
    %273 = vector.broadcast %cst_133 : f32 to vector<2x8xf32>
    %274 = arith.maximumf %273, %272 : vector<2x8xf32>
    %275 = vector.shape_cast %274 : vector<2x8xf32> to vector<2x8x1xf32>
    %276 = vector.broadcast %275 : vector<2x8x1xf32> to vector<2x8x8xf32>
    %277 = arith.subf %271, %276 : vector<2x8x8xf32>
    %278 = math.exp %277 : vector<2x8x8xf32>
    %cst_134 = arith.constant dense<0.000000e+00> : vector<2x8xf32>
    %279 = vector.multi_reduction <add>, %278, %cst_134 [2] : vector<2x8x8xf32> to vector<2x8xf32>
    %280 = vector.shape_cast %279 : vector<2x8xf32> to vector<2x8x1xf32>
    %281 = vector.broadcast %280 : vector<2x8x1xf32> to vector<2x8x8xf32>
    %282 = arith.divf %278, %281 : vector<2x8x8xf32>
    "tpu.trace_start"() <{level = 10 : i32, message = "bqk,bkd->bqd"}> : () -> ()
    %cst_135 = arith.constant dense<0.000000e+00> : vector<2x8x8xf32>
    %283 = tpu.matmul %282, %266, %cst_135 {dimension_numbers = #tpu.dot_dimension_numbers<[2], [1], [1], [2], [0, 0, 0, 1, 1, 2], [0], [0]>} : vector<2x8x8xf32>, vector<2x8x8xf32>, vector<2x8x8xf32> -> vector<2x8x8xf32>
    "tpu.trace_stop"() : () -> ()
    %284 = vector.shape_cast %283 : vector<2x8x8xf32> to vector<16x8xf32>
    %285 = vector.extract_strided_slice %259 {offsets = [0, 0], sizes = [8, 32], strides = [1, 1]} : vector<32x32xf32> to vector<8x32xf32>
    %cst_136 = arith.constant dense<0.000000e+00> : vector<16x32xf32>
    %286 = tpu.matmul %284, %285, %cst_136 {dimension_numbers = #tpu.dot_dimension_numbers<[1], [0], [0], [1], [0, 0, 1, 1], [], []>} : vector<16x8xf32>, vector<8x32xf32>, vector<16x32xf32> -> vector<16x32xf32>
    %287 = arith.addf %260, %286 : vector<16x32xf32>
    %288 = vector.extract_strided_slice %257 {offsets = [0, 8], sizes = [16, 8], strides = [1, 1]} : vector<16x96xf32> to vector<16x8xf32>
    %289 = vector.shape_cast %288 : vector<16x8xf32> to vector<2x8x8xf32>
    %290 = vector.extract_strided_slice %257 {offsets = [0, 40], sizes = [16, 8], strides = [1, 1]} : vector<16x96xf32> to vector<16x8xf32>
    %291 = vector.shape_cast %290 : vector<16x8xf32> to vector<2x8x8xf32>
    %292 = vector.extract_strided_slice %257 {offsets = [0, 72], sizes = [16, 8], strides = [1, 1]} : vector<16x96xf32> to vector<16x8xf32>
    %293 = vector.shape_cast %292 : vector<16x8xf32> to vector<2x8x8xf32>
    "tpu.trace_start"() <{level = 10 : i32, message = "bqd,bkd->bqk"}> : () -> ()
    %cst_137 = arith.constant dense<0.000000e+00> : vector<2x8x8xf32>
    %294 = tpu.matmul %289, %291, %cst_137 {dimension_numbers = #tpu.dot_dimension_numbers<[2], [2], [1], [1], [0, 0, 0, 1, 1, 1], [0], [0]>} : vector<2x8x8xf32>, vector<2x8x8xf32>, vector<2x8x8xf32> -> vector<2x8x8xf32>
    "tpu.trace_stop"() : () -> ()
    %cst_138 = arith.constant 0.353553385 : f32
    %295 = vector.broadcast %cst_138 : f32 to vector<2x8x8xf32>
    %296 = arith.mulf %294, %295 : vector<2x8x8xf32>
    %297 = vector.broadcast %16 : vector<1x1x8xf32> to vector<2x8x8xf32>
    %298 = arith.addf %296, %297 : vector<2x8x8xf32>
    %cst_139 = arith.constant dense<0xFF800000> : vector<2x8xf32>
    %299 = vector.multi_reduction <maximumf>, %298, %cst_139 [2] : vector<2x8x8xf32> to vector<2x8xf32>
    %cst_140 = arith.constant 0xFF800000 : f32
    %300 = vector.broadcast %cst_140 : f32 to vector<2x8xf32>
    %301 = arith.maximumf %300, %299 : vector<2x8xf32>
    %302 = vector.shape_cast %301 : vector<2x8xf32> to vector<2x8x1xf32>
    %303 = vector.broadcast %302 : vector<2x8x1xf32> to vector<2x8x8xf32>
    %304 = arith.subf %298, %303 : vector<2x8x8xf32>
    %305 = math.exp %304 : vector<2x8x8xf32>
    %cst_141 = arith.constant dense<0.000000e+00> : vector<2x8xf32>
    %306 = vector.multi_reduction <add>, %305, %cst_141 [2] : vector<2x8x8xf32> to vector<2x8xf32>
    %307 = vector.shape_cast %306 : vector<2x8xf32> to vector<2x8x1xf32>
    %308 = vector.broadcast %307 : vector<2x8x1xf32> to vector<2x8x8xf32>
    %309 = arith.divf %305, %308 : vector<2x8x8xf32>
    "tpu.trace_start"() <{level = 10 : i32, message = "bqk,bkd->bqd"}> : () -> ()
    %cst_142 = arith.constant dense<0.000000e+00> : vector<2x8x8xf32>
    %310 = tpu.matmul %309, %293, %cst_142 {dimension_numbers = #tpu.dot_dimension_numbers<[2], [1], [1], [2], [0, 0, 0, 1, 1, 2], [0], [0]>} : vector<2x8x8xf32>, vector<2x8x8xf32>, vector<2x8x8xf32> -> vector<2x8x8xf32>
    "tpu.trace_stop"() : () -> ()
    %311 = vector.shape_cast %310 : vector<2x8x8xf32> to vector<16x8xf32>
    %312 = vector.extract_strided_slice %259 {offsets = [8, 0], sizes = [8, 32], strides = [1, 1]} : vector<32x32xf32> to vector<8x32xf32>
    %cst_143 = arith.constant dense<0.000000e+00> : vector<16x32xf32>
    %313 = tpu.matmul %311, %312, %cst_143 {dimension_numbers = #tpu.dot_dimension_numbers<[1], [0], [0], [1], [0, 0, 1, 1], [], []>} : vector<16x8xf32>, vector<8x32xf32>, vector<16x32xf32> -> vector<16x32xf32>
    %314 = arith.addf %287, %313 : vector<16x32xf32>
    %315 = vector.extract_strided_slice %257 {offsets = [0, 16], sizes = [16, 8], strides = [1, 1]} : vector<16x96xf32> to vector<16x8xf32>
    %316 = vector.shape_cast %315 : vector<16x8xf32> to vector<2x8x8xf32>
    %317 = vector.extract_strided_slice %257 {offsets = [0, 48], sizes = [16, 8], strides = [1, 1]} : vector<16x96xf32> to vector<16x8xf32>
    %318 = vector.shape_cast %317 : vector<16x8xf32> to vector<2x8x8xf32>
    %319 = vector.extract_strided_slice %257 {offsets = [0, 80], sizes = [16, 8], strides = [1, 1]} : vector<16x96xf32> to vector<16x8xf32>
    %320 = vector.shape_cast %319 : vector<16x8xf32> to vector<2x8x8xf32>
    "tpu.trace_start"() <{level = 10 : i32, message = "bqd,bkd->bqk"}> : () -> ()
    %cst_144 = arith.constant dense<0.000000e+00> : vector<2x8x8xf32>
    %321 = tpu.matmul %316, %318, %cst_144 {dimension_numbers = #tpu.dot_dimension_numbers<[2], [2], [1], [1], [0, 0, 0, 1, 1, 1], [0], [0]>} : vector<2x8x8xf32>, vector<2x8x8xf32>, vector<2x8x8xf32> -> vector<2x8x8xf32>
    "tpu.trace_stop"() : () -> ()
    %cst_145 = arith.constant 0.353553385 : f32
    %322 = vector.broadcast %cst_145 : f32 to vector<2x8x8xf32>
    %323 = arith.mulf %321, %322 : vector<2x8x8xf32>
    %324 = vector.broadcast %16 : vector<1x1x8xf32> to vector<2x8x8xf32>
    %325 = arith.addf %323, %324 : vector<2x8x8xf32>
    %cst_146 = arith.constant dense<0xFF800000> : vector<2x8xf32>
    %326 = vector.multi_reduction <maximumf>, %325, %cst_146 [2] : vector<2x8x8xf32> to vector<2x8xf32>
    %cst_147 = arith.constant 0xFF800000 : f32
    %327 = vector.broadcast %cst_147 : f32 to vector<2x8xf32>
    %328 = arith.maximumf %327, %326 : vector<2x8xf32>
    %329 = vector.shape_cast %328 : vector<2x8xf32> to vector<2x8x1xf32>
    %330 = vector.broadcast %329 : vector<2x8x1xf32> to vector<2x8x8xf32>
    %331 = arith.subf %325, %330 : vector<2x8x8xf32>
    %332 = math.exp %331 : vector<2x8x8xf32>
    %cst_148 = arith.constant dense<0.000000e+00> : vector<2x8xf32>
    %333 = vector.multi_reduction <add>, %332, %cst_148 [2] : vector<2x8x8xf32> to vector<2x8xf32>
    %334 = vector.shape_cast %333 : vector<2x8xf32> to vector<2x8x1xf32>
    %335 = vector.broadcast %334 : vector<2x8x1xf32> to vector<2x8x8xf32>
    %336 = arith.divf %332, %335 : vector<2x8x8xf32>
    "tpu.trace_start"() <{level = 10 : i32, message = "bqk,bkd->bqd"}> : () -> ()
    %cst_149 = arith.constant dense<0.000000e+00> : vector<2x8x8xf32>
    %337 = tpu.matmul %336, %320, %cst_149 {dimension_numbers = #tpu.dot_dimension_numbers<[2], [1], [1], [2], [0, 0, 0, 1, 1, 2], [0], [0]>} : vector<2x8x8xf32>, vector<2x8x8xf32>, vector<2x8x8xf32> -> vector<2x8x8xf32>
    "tpu.trace_stop"() : () -> ()
    %338 = vector.shape_cast %337 : vector<2x8x8xf32> to vector<16x8xf32>
    %339 = vector.extract_strided_slice %259 {offsets = [16, 0], sizes = [8, 32], strides = [1, 1]} : vector<32x32xf32> to vector<8x32xf32>
    %cst_150 = arith.constant dense<0.000000e+00> : vector<16x32xf32>
    %340 = tpu.matmul %338, %339, %cst_150 {dimension_numbers = #tpu.dot_dimension_numbers<[1], [0], [0], [1], [0, 0, 1, 1], [], []>} : vector<16x8xf32>, vector<8x32xf32>, vector<16x32xf32> -> vector<16x32xf32>
    %341 = arith.addf %314, %340 : vector<16x32xf32>
    %342 = vector.extract_strided_slice %257 {offsets = [0, 24], sizes = [16, 8], strides = [1, 1]} : vector<16x96xf32> to vector<16x8xf32>
    %343 = vector.shape_cast %342 : vector<16x8xf32> to vector<2x8x8xf32>
    %344 = vector.extract_strided_slice %257 {offsets = [0, 56], sizes = [16, 8], strides = [1, 1]} : vector<16x96xf32> to vector<16x8xf32>
    %345 = vector.shape_cast %344 : vector<16x8xf32> to vector<2x8x8xf32>
    %346 = vector.extract_strided_slice %257 {offsets = [0, 88], sizes = [16, 8], strides = [1, 1]} : vector<16x96xf32> to vector<16x8xf32>
    %347 = vector.shape_cast %346 : vector<16x8xf32> to vector<2x8x8xf32>
    "tpu.trace_start"() <{level = 10 : i32, message = "bqd,bkd->bqk"}> : () -> ()
    %cst_151 = arith.constant dense<0.000000e+00> : vector<2x8x8xf32>
    %348 = tpu.matmul %343, %345, %cst_151 {dimension_numbers = #tpu.dot_dimension_numbers<[2], [2], [1], [1], [0, 0, 0, 1, 1, 1], [0], [0]>} : vector<2x8x8xf32>, vector<2x8x8xf32>, vector<2x8x8xf32> -> vector<2x8x8xf32>
    "tpu.trace_stop"() : () -> ()
    %cst_152 = arith.constant 0.353553385 : f32
    %349 = vector.broadcast %cst_152 : f32 to vector<2x8x8xf32>
    %350 = arith.mulf %348, %349 : vector<2x8x8xf32>
    %351 = vector.broadcast %16 : vector<1x1x8xf32> to vector<2x8x8xf32>
    %352 = arith.addf %350, %351 : vector<2x8x8xf32>
    %cst_153 = arith.constant dense<0xFF800000> : vector<2x8xf32>
    %353 = vector.multi_reduction <maximumf>, %352, %cst_153 [2] : vector<2x8x8xf32> to vector<2x8xf32>
    %cst_154 = arith.constant 0xFF800000 : f32
    %354 = vector.broadcast %cst_154 : f32 to vector<2x8xf32>
    %355 = arith.maximumf %354, %353 : vector<2x8xf32>
    %356 = vector.shape_cast %355 : vector<2x8xf32> to vector<2x8x1xf32>
    %357 = vector.broadcast %356 : vector<2x8x1xf32> to vector<2x8x8xf32>
    %358 = arith.subf %352, %357 : vector<2x8x8xf32>
    %359 = math.exp %358 : vector<2x8x8xf32>
    %cst_155 = arith.constant dense<0.000000e+00> : vector<2x8xf32>
    %360 = vector.multi_reduction <add>, %359, %cst_155 [2] : vector<2x8x8xf32> to vector<2x8xf32>
    %361 = vector.shape_cast %360 : vector<2x8xf32> to vector<2x8x1xf32>
    %362 = vector.broadcast %361 : vector<2x8x1xf32> to vector<2x8x8xf32>
    %363 = arith.divf %359, %362 : vector<2x8x8xf32>
    "tpu.trace_start"() <{level = 10 : i32, message = "bqk,bkd->bqd"}> : () -> ()
    %cst_156 = arith.constant dense<0.000000e+00> : vector<2x8x8xf32>
    %364 = tpu.matmul %363, %347, %cst_156 {dimension_numbers = #tpu.dot_dimension_numbers<[2], [1], [1], [2], [0, 0, 0, 1, 1, 2], [0], [0]>} : vector<2x8x8xf32>, vector<2x8x8xf32>, vector<2x8x8xf32> -> vector<2x8x8xf32>
    "tpu.trace_stop"() : () -> ()
    %365 = vector.shape_cast %364 : vector<2x8x8xf32> to vector<16x8xf32>
    %366 = vector.extract_strided_slice %259 {offsets = [24, 0], sizes = [8, 32], strides = [1, 1]} : vector<32x32xf32> to vector<8x32xf32>
    %cst_157 = arith.constant dense<0.000000e+00> : vector<16x32xf32>
    %367 = tpu.matmul %365, %366, %cst_157 {dimension_numbers = #tpu.dot_dimension_numbers<[1], [0], [0], [1], [0, 0, 1, 1], [], []>} : vector<16x8xf32>, vector<8x32xf32>, vector<16x32xf32> -> vector<16x32xf32>
    %368 = arith.addf %341, %367 : vector<16x32xf32>
    %c0_158 = arith.constant 0 : index
    %c1_159 = arith.constant 1 : index
    %c0_160 = arith.constant 0 : index
    %c0_161 = arith.constant 0 : index
    %369 = vector.load %arg9[%c0_158, %c1_159, %c0_160, %c0_161] : memref<1x2x1x32xf32, #tpu.memory_space<vmem>>, vector<1x1x1x32xf32>
    %370 = vector.shape_cast %369 : vector<1x1x1x32xf32> to vector<1x32xf32>
    %371 = vector.broadcast %370 : vector<1x32xf32> to vector<16x32xf32>
    %372 = arith.addf %368, %371 : vector<16x32xf32>
    %373 = vector.shape_cast %372 : vector<16x32xf32> to vector<2x8x32xf32>
    %374 = arith.addf %223, %373 : vector<2x8x32xf32>
    %375 = vector.shape_cast %374 : vector<2x8x32xf32> to vector<16x32xf32>
    %c0_162 = arith.constant 0 : index
    %c1_163 = arith.constant 1 : index
    %c0_164 = arith.constant 0 : index
    %c0_165 = arith.constant 0 : index
    %376 = vector.load %arg10[%c0_162, %c1_163, %c0_164, %c0_165] : memref<1x2x1x32xf32, #tpu.memory_space<vmem>>, vector<1x1x1x32xf32>
    %377 = vector.shape_cast %376 : vector<1x1x1x32xf32> to vector<1x32xf32>
    %c0_166 = arith.constant 0 : index
    %c1_167 = arith.constant 1 : index
    %c0_168 = arith.constant 0 : index
    %c0_169 = arith.constant 0 : index
    %378 = vector.load %arg11[%c0_166, %c1_167, %c0_168, %c0_169] : memref<1x2x1x32xf32, #tpu.memory_space<vmem>>, vector<1x1x1x32xf32>
    %379 = vector.shape_cast %378 : vector<1x1x1x32xf32> to vector<1x32xf32>
    %cst_170 = arith.constant dense<0.000000e+00> : vector<16xf32>
    %380 = vector.multi_reduction <add>, %375, %cst_170 [1] : vector<16x32xf32> to vector<16xf32>
    %381 = vector.shape_cast %380 : vector<16xf32> to vector<16x1xf32>
    %cst_171 = arith.constant 3.200000e+01 : f32
    %382 = vector.broadcast %cst_171 : f32 to vector<16x1xf32>
    %383 = arith.divf %381, %382 : vector<16x1xf32>
    %384 = vector.broadcast %383 : vector<16x1xf32> to vector<16x32xf32>
    %385 = arith.subf %375, %384 : vector<16x32xf32>
    %386 = arith.mulf %385, %385 : vector<16x32xf32>
    %cst_172 = arith.constant dense<0.000000e+00> : vector<16xf32>
    %387 = vector.multi_reduction <add>, %386, %cst_172 [1] : vector<16x32xf32> to vector<16xf32>
    %388 = vector.shape_cast %387 : vector<16xf32> to vector<16x1xf32>
    %cst_173 = arith.constant 3.200000e+01 : f32
    %389 = vector.broadcast %cst_173 : f32 to vector<16x1xf32>
    %390 = arith.divf %388, %389 : vector<16x1xf32>
    %391 = vector.broadcast %383 : vector<16x1xf32> to vector<16x32xf32>
    %392 = arith.subf %375, %391 : vector<16x32xf32>
    %cst_174 = arith.constant 9.99999997E-7 : f32
    %393 = vector.broadcast %cst_174 : f32 to vector<16x1xf32>
    %394 = arith.addf %390, %393 : vector<16x1xf32>
    %395 = math.rsqrt %394 : vector<16x1xf32>
    %396 = vector.broadcast %395 : vector<16x1xf32> to vector<16x32xf32>
    %397 = arith.mulf %392, %396 : vector<16x32xf32>
    %398 = vector.broadcast %377 : vector<1x32xf32> to vector<16x32xf32>
    %399 = arith.mulf %397, %398 : vector<16x32xf32>
    %400 = vector.broadcast %379 : vector<1x32xf32> to vector<16x32xf32>
    %401 = arith.addf %399, %400 : vector<16x32xf32>
    %c0_175 = arith.constant 0 : index
    %c1_176 = arith.constant 1 : index
    %c0_177 = arith.constant 0 : index
    %c0_178 = arith.constant 0 : index
    %402 = vector.load %arg12[%c0_175, %c1_176, %c0_177, %c0_178] : memref<1x2x32x128xf32, #tpu.memory_space<vmem>>, vector<1x1x32x128xf32>
    %403 = vector.shape_cast %402 : vector<1x1x32x128xf32> to vector<32x128xf32>
    %cst_179 = arith.constant dense<0.000000e+00> : vector<16x128xf32>
    %404 = tpu.matmul %401, %403, %cst_179 {dimension_numbers = #tpu.dot_dimension_numbers<[1], [0], [0], [1], [0, 0, 1, 1], [], []>} : vector<16x32xf32>, vector<32x128xf32>, vector<16x128xf32> -> vector<16x128xf32>
    %c0_180 = arith.constant 0 : index
    %c1_181 = arith.constant 1 : index
    %c0_182 = arith.constant 0 : index
    %c0_183 = arith.constant 0 : index
    %405 = vector.load %arg13[%c0_180, %c1_181, %c0_182, %c0_183] : memref<1x2x1x128xf32, #tpu.memory_space<vmem>>, vector<1x1x1x128xf32>
    %406 = vector.shape_cast %405 : vector<1x1x1x128xf32> to vector<1x128xf32>
    %407 = vector.broadcast %406 : vector<1x128xf32> to vector<16x128xf32>
    %408 = arith.addf %404, %407 : vector<16x128xf32>
    %409 = arith.mulf %408, %408 : vector<16x128xf32>
    %410 = arith.mulf %408, %409 : vector<16x128xf32>
    %cst_184 = arith.constant 4.471500e-02 : f32
    %411 = vector.broadcast %cst_184 : f32 to vector<16x128xf32>
    %412 = arith.mulf %411, %410 : vector<16x128xf32>
    %413 = arith.addf %408, %412 : vector<16x128xf32>
    %cst_185 = arith.constant 0.797884583 : f32
    %414 = vector.broadcast %cst_185 : f32 to vector<16x128xf32>
    %415 = arith.mulf %414, %413 : vector<16x128xf32>
    %416 = math.tanh %415 : vector<16x128xf32>
    %cst_186 = arith.constant 1.000000e+00 : f32
    %417 = vector.broadcast %cst_186 : f32 to vector<16x128xf32>
    %418 = arith.addf %417, %416 : vector<16x128xf32>
    %cst_187 = arith.constant 5.000000e-01 : f32
    %419 = vector.broadcast %cst_187 : f32 to vector<16x128xf32>
    %420 = arith.mulf %419, %418 : vector<16x128xf32>
    %421 = arith.mulf %408, %420 : vector<16x128xf32>
    %c0_188 = arith.constant 0 : index
    %c1_189 = arith.constant 1 : index
    %c0_190 = arith.constant 0 : index
    %c0_191 = arith.constant 0 : index
    %422 = vector.load %arg14[%c0_188, %c1_189, %c0_190, %c0_191] : memref<1x2x128x32xf32, #tpu.memory_space<vmem>>, vector<1x1x128x32xf32>
    %423 = vector.shape_cast %422 : vector<1x1x128x32xf32> to vector<128x32xf32>
    %cst_192 = arith.constant dense<0.000000e+00> : vector<16x32xf32>
    %424 = tpu.matmul %421, %423, %cst_192 {dimension_numbers = #tpu.dot_dimension_numbers<[1], [0], [0], [1], [0, 0, 1, 1], [], []>} : vector<16x128xf32>, vector<128x32xf32>, vector<16x32xf32> -> vector<16x32xf32>
    %c0_193 = arith.constant 0 : index
    %c1_194 = arith.constant 1 : index
    %c0_195 = arith.constant 0 : index
    %c0_196 = arith.constant 0 : index
    %425 = vector.load %arg15[%c0_193, %c1_194, %c0_195, %c0_196] : memref<1x2x1x32xf32, #tpu.memory_space<vmem>>, vector<1x1x1x32xf32>
    %426 = vector.shape_cast %425 : vector<1x1x1x32xf32> to vector<1x32xf32>
    %427 = vector.broadcast %426 : vector<1x32xf32> to vector<16x32xf32>
    %428 = arith.addf %424, %427 : vector<16x32xf32>
    %429 = vector.shape_cast %428 : vector<16x32xf32> to vector<2x8x32xf32>
    %430 = arith.addf %374, %429 : vector<2x8x32xf32>
    %431 = vector.extract_strided_slice %430 {offsets = [0, 0, 0], sizes = [2, 1, 32], strides = [1, 1, 1]} : vector<2x8x32xf32> to vector<2x1x32xf32>
    %432 = vector.shape_cast %431 : vector<2x1x32xf32> to vector<2x32xf32>
    %c0_197 = arith.constant 0 : index
    %c0_198 = arith.constant 0 : index
    %c0_199 = arith.constant 0 : index
    %433 = vector.load %arg16[%c0_197, %c0_198, %c0_199] : memref<1x1x32xf32, #tpu.memory_space<vmem>>, vector<1x1x32xf32>
    %434 = vector.shape_cast %433 : vector<1x1x32xf32> to vector<1x32xf32>
    %c0_200 = arith.constant 0 : index
    %c0_201 = arith.constant 0 : index
    %c0_202 = arith.constant 0 : index
    %435 = vector.load %arg17[%c0_200, %c0_201, %c0_202] : memref<1x1x32xf32, #tpu.memory_space<vmem>>, vector<1x1x32xf32>
    %436 = vector.shape_cast %435 : vector<1x1x32xf32> to vector<1x32xf32>
    %cst_203 = arith.constant dense<0.000000e+00> : vector<2xf32>
    %437 = vector.multi_reduction <add>, %432, %cst_203 [1] : vector<2x32xf32> to vector<2xf32>
    %438 = vector.shape_cast %437 : vector<2xf32> to vector<2x1xf32>
    %cst_204 = arith.constant 3.200000e+01 : f32
    %439 = vector.broadcast %cst_204 : f32 to vector<2x1xf32>
    %440 = arith.divf %438, %439 : vector<2x1xf32>
    %441 = vector.broadcast %440 : vector<2x1xf32> to vector<2x32xf32>
    %442 = arith.subf %432, %441 : vector<2x32xf32>
    %443 = arith.mulf %442, %442 : vector<2x32xf32>
    %cst_205 = arith.constant dense<0.000000e+00> : vector<2xf32>
    %444 = vector.multi_reduction <add>, %443, %cst_205 [1] : vector<2x32xf32> to vector<2xf32>
    %445 = vector.shape_cast %444 : vector<2xf32> to vector<2x1xf32>
    %cst_206 = arith.constant 3.200000e+01 : f32
    %446 = vector.broadcast %cst_206 : f32 to vector<2x1xf32>
    %447 = arith.divf %445, %446 : vector<2x1xf32>
    %448 = vector.broadcast %440 : vector<2x1xf32> to vector<2x32xf32>
    %449 = arith.subf %432, %448 : vector<2x32xf32>
    %cst_207 = arith.constant 9.99999997E-7 : f32
    %450 = vector.broadcast %cst_207 : f32 to vector<2x1xf32>
    %451 = arith.addf %447, %450 : vector<2x1xf32>
    %452 = math.rsqrt %451 : vector<2x1xf32>
    %453 = vector.broadcast %452 : vector<2x1xf32> to vector<2x32xf32>
    %454 = arith.mulf %449, %453 : vector<2x32xf32>
    %455 = vector.broadcast %434 : vector<1x32xf32> to vector<2x32xf32>
    %456 = arith.mulf %454, %455 : vector<2x32xf32>
    %457 = vector.broadcast %436 : vector<1x32xf32> to vector<2x32xf32>
    %458 = arith.addf %456, %457 : vector<2x32xf32>
    %c0_208 = arith.constant 0 : index
    %c0_209 = arith.constant 0 : index
    %459 = vector.load %arg18[%c0_208, %c0_209] : memref<32x64xf32, #tpu.memory_space<vmem>>, vector<32x64xf32>
    %cst_210 = arith.constant dense<0.000000e+00> : vector<2x64xf32>
    %460 = tpu.matmul %458, %459, %cst_210 {dimension_numbers = #tpu.dot_dimension_numbers<[1], [0], [0], [1], [0, 0, 1, 1], [], []>} : vector<2x32xf32>, vector<32x64xf32>, vector<2x64xf32> -> vector<2x64xf32>
    %c0_211 = arith.constant 0 : index
    %c0_212 = arith.constant 0 : index
    %461 = vector.load %arg19[%c0_211, %c0_212] : memref<1x64xf32, #tpu.memory_space<vmem>>, vector<1x64xf32>
    %462 = vector.broadcast %461 : vector<1x64xf32> to vector<2x64xf32>
    %463 = arith.addf %460, %462 : vector<2x64xf32>
    %c0_213 = arith.constant 0 : index
    %c0_214 = arith.constant 0 : index
    %464 = vector.load %arg20[%c0_213, %c0_214] : memref<64x8xf32, #tpu.memory_space<vmem>>, vector<64x8xf32>
    %cst_215 = arith.constant dense<0.000000e+00> : vector<2x8xf32>
    %465 = tpu.matmul %463, %464, %cst_215 {dimension_numbers = #tpu.dot_dimension_numbers<[1], [0], [0], [1], [0, 0, 1, 1], [], []>} : vector<2x64xf32>, vector<64x8xf32>, vector<2x8xf32> -> vector<2x8xf32>
    %c0_216 = arith.constant 0 : index
    %c0_217 = arith.constant 0 : index
    %466 = vector.load %arg21[%c0_216, %c0_217] : memref<1x8xf32, #tpu.memory_space<vmem>>, vector<1x8xf32>
    %467 = vector.broadcast %466 : vector<1x8xf32> to vector<2x8xf32>
    %468 = arith.addf %465, %467 : vector<2x8xf32>
    %c0_218 = arith.constant 0 : index
    %c0_219 = arith.constant 0 : index
    %c0_220 = arith.constant 0 : index
    %469 = vector.load %arg22[%c0_218, %c0_219, %c0_220] : memref<1x2x8xf32, #tpu.memory_space<vmem>>, vector<1x2x8xf32>
    %470 = vector.shape_cast %469 : vector<1x2x8xf32> to vector<2x8xf32>
    %471 = vector.shape_cast %468 : vector<2x8xf32> to vector<1x2x8xf32>
    tpu.vector_store %arg22[%c0_218, %c0_219, %c0_220], %471 {strides = array<i32>} : memref<1x2x8xf32, #tpu.memory_space<vmem>>, vector<1x2x8xf32>,
    return
  }
  func.func @transform_0(%arg0: i32) -> (i32, i32, i32) {
    %c0_i32 = arith.constant 0 : i32
    %c0_i32_0 = arith.constant 0 : i32
    %c0_i32_1 = arith.constant 0 : i32
    return %arg0, %c0_i32, %c0_i32_0 : i32, i32, i32
  }
  func.func @transform_1(%arg0: i32) -> (i32, i32, i32) {
    %c0_i32 = arith.constant 0 : i32
    %c0_i32_0 = arith.constant 0 : i32
    %c0_i32_1 = arith.constant 0 : i32
    return %arg0, %c0_i32, %c0_i32_0 : i32, i32, i32
  }
  func.func @transform_2(%arg0: i32) -> (i32, i32, i32) {
    %c0_i32 = arith.constant 0 : i32
    %c0_i32_0 = arith.constant 0 : i32
    %c0_i32_1 = arith.constant 0 : i32
    return %arg0, %c0_i32, %c0_i32_0 : i32, i32, i32
  }
  func.func @transform_3(%arg0: i32) -> (i32, i32, i32, i32) {
    %c0_i32 = arith.constant 0 : i32
    %c0_i32_0 = arith.constant 0 : i32
    %c0_i32_1 = arith.constant 0 : i32
    %c0_i32_2 = arith.constant 0 : i32
    return %arg0, %c0_i32, %c0_i32_0, %c0_i32_1 : i32, i32, i32, i32
  }
  func.func @transform_4(%arg0: i32) -> (i32, i32, i32, i32) {
    %c0_i32 = arith.constant 0 : i32
    %c0_i32_0 = arith.constant 0 : i32
    %c0_i32_1 = arith.constant 0 : i32
    %c0_i32_2 = arith.constant 0 : i32
    return %arg0, %c0_i32, %c0_i32_0, %c0_i32_1 : i32, i32, i32, i32
  }
  func.func @transform_5(%arg0: i32) -> (i32, i32, i32, i32) {
    %c0_i32 = arith.constant 0 : i32
    %c0_i32_0 = arith.constant 0 : i32
    %c0_i32_1 = arith.constant 0 : i32
    %c0_i32_2 = arith.constant 0 : i32
    return %arg0, %c0_i32, %c0_i32_0, %c0_i32_1 : i32, i32, i32, i32
  }
  func.func @transform_6(%arg0: i32) -> (i32, i32, i32, i32) {
    %c0_i32 = arith.constant 0 : i32
    %c0_i32_0 = arith.constant 0 : i32
    %c0_i32_1 = arith.constant 0 : i32
    %c0_i32_2 = arith.constant 0 : i32
    return %arg0, %c0_i32, %c0_i32_0, %c0_i32_1 : i32, i32, i32, i32
  }
  func.func @transform_7(%arg0: i32) -> (i32, i32, i32, i32) {
    %c0_i32 = arith.constant 0 : i32
    %c0_i32_0 = arith.constant 0 : i32
    %c0_i32_1 = arith.constant 0 : i32
    %c0_i32_2 = arith.constant 0 : i32
    return %arg0, %c0_i32, %c0_i32_0, %c0_i32_1 : i32, i32, i32, i32
  }
  func.func @transform_8(%arg0: i32) -> (i32, i32, i32, i32) {
    %c0_i32 = arith.constant 0 : i32
    %c0_i32_0 = arith.constant 0 : i32
    %c0_i32_1 = arith.constant 0 : i32
    %c0_i32_2 = arith.constant 0 : i32
    return %arg0, %c0_i32, %c0_i32_0, %c0_i32_1 : i32, i32, i32, i32
  }
  func.func @transform_9(%arg0: i32) -> (i32, i32, i32, i32) {
    %c0_i32 = arith.constant 0 : i32
    %c0_i32_0 = arith.constant 0 : i32
    %c0_i32_1 = arith.constant 0 : i32
    %c0_i32_2 = arith.constant 0 : i32
    return %arg0, %c0_i32, %c0_i32_0, %c0_i32_1 : i32, i32, i32, i32
  }
  func.func @transform_10(%arg0: i32) -> (i32, i32, i32, i32) {
    %c0_i32 = arith.constant 0 : i32
    %c0_i32_0 = arith.constant 0 : i32
    %c0_i32_1 = arith.constant 0 : i32
    %c0_i32_2 = arith.constant 0 : i32
    return %arg0, %c0_i32, %c0_i32_0, %c0_i32_1 : i32, i32, i32, i32
  }
  func.func @transform_11(%arg0: i32) -> (i32, i32, i32, i32) {
    %c0_i32 = arith.constant 0 : i32
    %c0_i32_0 = arith.constant 0 : i32
    %c0_i32_1 = arith.constant 0 : i32
    %c0_i32_2 = arith.constant 0 : i32
    return %arg0, %c0_i32, %c0_i32_0, %c0_i32_1 : i32, i32, i32, i32
  }
  func.func @transform_12(%arg0: i32) -> (i32, i32, i32, i32) {
    %c0_i32 = arith.constant 0 : i32
    %c0_i32_0 = arith.constant 0 : i32
    %c0_i32_1 = arith.constant 0 : i32
    %c0_i32_2 = arith.constant 0 : i32
    return %arg0, %c0_i32, %c0_i32_0, %c0_i32_1 : i32, i32, i32, i32
  }
  func.func @transform_13(%arg0: i32) -> (i32, i32, i32, i32) {
    %c0_i32 = arith.constant 0 : i32
    %c0_i32_0 = arith.constant 0 : i32
    %c0_i32_1 = arith.constant 0 : i32
    %c0_i32_2 = arith.constant 0 : i32
    return %arg0, %c0_i32, %c0_i32_0, %c0_i32_1 : i32, i32, i32, i32
  }
  func.func @transform_14(%arg0: i32) -> (i32, i32, i32, i32) {
    %c0_i32 = arith.constant 0 : i32
    %c0_i32_0 = arith.constant 0 : i32
    %c0_i32_1 = arith.constant 0 : i32
    %c0_i32_2 = arith.constant 0 : i32
    return %arg0, %c0_i32, %c0_i32_0, %c0_i32_1 : i32, i32, i32, i32
  }
  func.func @transform_15(%arg0: i32) -> (i32, i32, i32) {
    %c0_i32 = arith.constant 0 : i32
    %c0_i32_0 = arith.constant 0 : i32
    %c0_i32_1 = arith.constant 0 : i32
    return %arg0, %c0_i32, %c0_i32_0 : i32, i32, i32
  }
  func.func @transform_16(%arg0: i32) -> (i32, i32, i32) {
    %c0_i32 = arith.constant 0 : i32
    %c0_i32_0 = arith.constant 0 : i32
    %c0_i32_1 = arith.constant 0 : i32
    return %arg0, %c0_i32, %c0_i32_0 : i32, i32, i32
  }
  func.func @transform_17(%arg0: i32) -> (i32, i32) {
    %c0_i32 = arith.constant 0 : i32
    %c0_i32_0 = arith.constant 0 : i32
    %c0_i32_1 = arith.constant 0 : i32
    return %c0_i32, %c0_i32_0 : i32, i32
  }
  func.func @transform_18(%arg0: i32) -> (i32, i32) {
    %c0_i32 = arith.constant 0 : i32
    %c0_i32_0 = arith.constant 0 : i32
    %c0_i32_1 = arith.constant 0 : i32
    return %c0_i32, %c0_i32_0 : i32, i32
  }
  func.func @transform_19(%arg0: i32) -> (i32, i32) {
    %c0_i32 = arith.constant 0 : i32
    %c0_i32_0 = arith.constant 0 : i32
    %c0_i32_1 = arith.constant 0 : i32
    return %c0_i32, %c0_i32_0 : i32, i32
  }
  func.func @transform_20(%arg0: i32) -> (i32, i32) {
    %c0_i32 = arith.constant 0 : i32
    %c0_i32_0 = arith.constant 0 : i32
    %c0_i32_1 = arith.constant 0 : i32
    return %c0_i32, %c0_i32_0 : i32, i32
  }
  func.func @transform_21(%arg0: i32) -> (i32, i32, i32) {
    %c0_i32 = arith.constant 0 : i32
    %c0_i32_0 = arith.constant 0 : i32
    %c0_i32_1 = arith.constant 0 : i32
    return %arg0, %c0_i32, %c0_i32_0 : i32, i32, i32
  }
}

</mosaic_0001>

<bundles_post_ra>
// kernel: efficientv2_forward.1
= control target key start
LH: loop header
LB: loop body
LE: loop exit
PB: predicated region body
PF: predicated region fallthrough
CT: control target
= control target key end

     0   :  { %s7431_s0 = inlined_call_operand.vmem [shape: f32[2,16,192], index: 0, kind: input, shape index: {}]   ;;  %s7432_s1 = inlined_call_operand.vmem [shape: f32[2,192,32], index: 1, kind: input, shape index: {}]   ;;  %s7433_s2 = inlined_call_operand.vmem [shape: f32[2,8,32], index: 2, kind: input, shape index: {}]   ;;  %s7434_s3 = inlined_call_operand.vmem [shape: f32[2,2,1,32], index: 3, kind: input, shape index: {}]   ;;  %s7435_s4 = inlined_call_operand.vmem [shape: f32[2,2,1,32], index: 4, kind: input, shape index: {}]   ;;  %s7436_s5 = inlined_call_operand.vmem [shape: f32[2,2,32,96], index: 5, kind: input, shape index: {}]   ;;  %s7437_s6 = inlined_call_operand.vmem [shape: f32[2,2,1,96], index: 6, kind: input, shape index: {}]   ;;  %s7438_s7 = inlined_call_operand.vmem [shape: f32[2,2,32,32], index: 7, kind: input, shape index: {}]   ;;  %s7439_s8 = inlined_call_operand.vmem [shape: f32[2,2,1,32], index: 8, kind: input, shape index: {}]   ;;  %s7440_s9 = inlined_call_operand.vmem [shape: f32[2,2,1,32], index: 9, kind: input, shape index: {}]   ;;  %s7441_s10 = inlined_call_operand.vmem [shape: f32[2,2,1,32], index: 10, kind: input, shape index: {}]   ;;  %s7442_s11 = inlined_call_operand.vmem [shape: f32[2,2,32,128], index: 11, kind: input, shape index: {}]   ;;  %s7443_s12 = inlined_call_operand.vmem [shape: f32[2,2,1,128], index: 12, kind: input, shape index: {}]   ;;  %s7444_s13 = inlined_call_operand.vmem [shape: f32[2,2,128,32], index: 13, kind: input, shape index: {}]   ;;  %s7445_s14 = inlined_call_operand.vmem [shape: f32[2,2,1,32], index: 14, kind: input, shape index: {}]   ;;  %s7446_s15 = inlined_call_operand.vmem [shape: f32[2,1,32], index: 15, kind: input, shape index: {}]   ;;  %s7447_s16 = inlined_call_operand.vmem [shape: f32[2,1,32], index: 16, kind: input, shape index: {}]   ;;  %s7448_s17 = inlined_call_operand.vmem [shape: f32[32,64], index: 17, kind: input, shape index: {}]   ;;  %s7449_s18 = inlined_call_operand.vmem [shape: f32[1,64], index: 18, kind: input, shape index: {}]   ;;  %s7450_s19 = inlined_call_operand.vmem [shape: f32[64,8], index: 19, kind: input, shape index: {}]   ;;  %s7451_s20 = inlined_call_operand.vmem [shape: f32[1,8], index: 20, kind: input, shape index: {}]   ;;  %s7452_s21 = inlined_call_operand.vmem [shape: f32[2,2,8], index: 21, kind: output, shape index: {}]  }
   0x1   :  { %7475 = sst [smem:[#allocation2_spill]] %s7431_s0 }
   0x2   :  { %7476 = sst [smem:[#allocation3_spill]] %s7432_s1 }
   0x3   :  { %7477 = sst [smem:[#allocation4_spill]] %s7433_s2  ;;  %s6752_s2 = smov 0  }
   0x4   :  { %7478 = sst [smem:[#allocation5_spill]] %s7434_s3 }
   0x5   :  { %7479 = sst [smem:[#allocation6_spill]] %s7435_s4 }
   0x6   :  { %7480 = sst [smem:[#allocation7_spill]] %s7436_s5 }
   0x7   :  { %7481 = sst [smem:[#allocation8_spill]] %s7437_s6 }
   0x8   :  { %7482 = sst [smem:[#allocation9_spill]] %s7438_s7 }
   0x9 LB: > { %s5672_s25 = sadd.s32 4294967295, %s6625_s2   ;;  %p5676_p0 = scmp.ge.s32.totalorder %s6625_s2, 1  ;;  %s6625_s2 = sphi %s6752_s2, %s31_s2  }
   0xa   : > { %p734_p1 = scmp.lt.s32.totalorder %s6625_s2, 3 }
   0xc   : > { %p735_p2 = pnand %p5676_p0, %p734_p1 }
   0xd   : > { %p860_p3 = scmp.lt.s32.totalorder (!%p735_p2), %s5672_s25, 1  ;;  %v6627_v0 = vmov (!%p735_p2), 0.0|0.0   ;;  %s7483_s28 = sld [smem:[#allocation3_spill]] (!%p735_p2)  ;;  %vm964_vm0 = vcmask (!%p735_p2), 523264   ;;  %vm1055_vm1 = vcmask (!%p735_p2), 261120   ;;  %vm6629_vm2 = vmmov (!%p735_p2), 0  }
   0xe   : > { %738 = sbr.rel (%p735_p2) target bundleno = 9681 (0x25d1), region = 104  ;;  %6343 = vmatprep.subr.bf16.mxu0 (!%p735_p2), %v6627_v0  ;;  %s7484_s5 = sld [smem:[#allocation2_spill]] (!%p735_p2)  ;;  %vm1198_vm3 = vcmask (!%p735_p2), 64512   ;;  %vm5207_vm5 = vcmask (!%p735_p2), 1041409   ;;  %vm5210_vm6 = vcmask (!%p735_p2), 254976   ;;  %vm5431_vm7 = vcmask (!%p735_p2), 58368  }
   0xf   : > { %s7489_s6 = sld [smem:[#allocation8_spill]] (!%p735_p2)  ;;  %s7461_s24 = smov (!%p735_p2), 88  }
  0x10   : > { %s7490_s7 = sld [smem:[#allocation9_spill]] (!%p735_p2) }
  0x15   : > { %s7503_s25 = smov (!%p860_p3, %s5672_s25), 1 }
  0x16   : > { %s6505_s26 = smul.u32 192, %s7503_s25  ;;  %s5832_s0 = sshll.u32 %s7503_s25, 5 }
  0x17   : > { %s6780_s22 = scalar_lea.vmem %s7484_s5, %s5832_s0  ;;  %s5680_s23 = sshll.u32 %s7503_s25, 3 }
  0x18   : > { %s6767_s29 = scalar_lea.vmem %s7483_s28, %s6505_s26  ;;  %v937_v12 = vld [vmem:[%s6780_s22 + $0x8] sm:$0xff]  ;;  %v936_v38 = vld [vmem:[%s6780_s22] sm:$0xff]  ;;  %v939_v39 = vld [vmem:[%s6780_s22 + $0x18] sm:$0xff]  ;;  %s7485_s26 = sld [smem:[#allocation4_spill]] }
  0x19   : > { %v940_v1 = vld [vmem:[%s6767_s29] sm:$0xff]  ;;  %v941_v2 = vld [vmem:[%s6767_s29 + $0x8] sm:$0xff]  ;;  %v942_v3 = vld [vmem:[%s6767_s29 + $0x10] sm:$0xff]  ;;  %5698 = vmatprep.mubr.msk.f32.mxu0 %vm964_vm0, %v937_v12  ;;  %s6833_s3 = sshll.u32 %s7503_s25, 6  ;;  %s7486_s0 = sld [smem:[#allocation7_spill]] }
  0x1a   : > { %v6344_v4 = vpack.c.bf16 %v941_v2, %v940_v1  ;;  %v943_v5 = vld [vmem:[%s6767_s29 + $0x18] sm:$0xff]  ;;  %v944_v7 = vld [vmem:[%s6767_s29 + $0x20] sm:$0xff]  ;;  %v945_v8 = vld [vmem:[%s6767_s29 + $0x28] sm:$0xff]  ;;  %s6846_s30 = sshll.u32 %s7503_s25, 1 }
  0x1b   : > { %v6347_v6 = vpack.c.bf16 %v943_v5, %v942_v3  ;;  %v6350_v9 = vpack.c.bf16 %v945_v8, %v944_v7  ;;  %v946_v10 = vld [vmem:[%s6767_s29 + $0x30] sm:$0xff]  ;;  %v947_v11 = vld [vmem:[%s6767_s29 + $0x38] sm:$0xff]  ;;  %v948_v14 = vld [vmem:[%s6767_s29 + $0x40] sm:$0xff]  ;;  %s6874_s5 = scalar_lea.vmem %s7489_s6, %s6846_s30  ;;  %s7087_s6 = scalar_lea.vmem %s7441_s10, %s6846_s30 }
  0x1c   : > { %6345 = vmatpush1.bf16.msra.mxu0 %v6344_v4  ;;  %v6353_v13 = vpack.c.bf16 %v947_v11, %v946_v10  ;;  %v949_v15 = vld [vmem:[%s6767_s29 + $0x48] sm:$0xff]  ;;  %v950_v17 = vld [vmem:[%s6767_s29 + $0x50] sm:$0xff]  ;;  %v951_v18 = vld [vmem:[%s6767_s29 + $0x58] sm:$0xff] }
  0x1d   : > { %6346 = vmatprep.subr.bf16.mxu0 %v6627_v0  ;;  %v6356_v16 = vpack.c.bf16 %v949_v15, %v948_v14  ;;  %v6359_v19 = vpack.c.bf16 %v951_v18, %v950_v17  ;;  %v952_v20 = vld [vmem:[%s6767_s29 + $0x60] sm:$0xff]  ;;  %v953_v21 = vld [vmem:[%s6767_s29 + $0x68] sm:$0xff]  ;;  %v954_v23 = vld [vmem:[%s6767_s29 + $0x70] sm:$0xff] }
  0x1e   : > { %v6362_v22 = vpack.c.bf16 %v953_v21, %v952_v20  ;;  %v955_v24 = vld [vmem:[%s6767_s29 + $0x78] sm:$0xff]  ;;  %v956_v26 = vld [vmem:[%s6767_s29 + $0x80] sm:$0xff]  ;;  %v957_v27 = vld [vmem:[%s6767_s29 + $0x88] sm:$0xff]  ;;  %s873_s27 = scalar_lea.vmem %s7485_s26, %s5680_s23  ;;  %s7487_s23 = sld [smem:[#allocation5_spill]] }
  0x1f   : > { %v6365_v25 = vpack.c.bf16 %v955_v24, %v954_v23  ;;  %v6368_v28 = vpack.c.bf16 %v957_v27, %v956_v26  ;;  %v958_v29 = vld [vmem:[%s6767_s29 + $0x90] sm:$0xff]  ;;  %v959_v30 = vld [vmem:[%s6767_s29 + $0x98] sm:$0xff]  ;;  %v960_v32 = vld [vmem:[%s6767_s29 + $0xa0] sm:$0xff]  ;;  %s6839_s4 = scalar_lea.vmem %s7486_s0, %s6833_s3  ;;  %v1049_v27 = vlaneseq  ;;  %s7459_s26 = smov 120  }
  0x20   : > { %6348 = vmatpush1.bf16.msra.mxu0 %v6347_v6  ;;  %v6371_v31 = vpack.c.bf16 %v959_v30, %v958_v29  ;;  %v961_v33 = vld [vmem:[%s6767_s29 + $0xa8] sm:$0xff]  ;;  %v962_v35 = vld [vmem:[%s6767_s29 + $0xb0] sm:$0xff]  ;;  %v963_v36 = vld [vmem:[%s6767_s29 + $0xb8] sm:$0xff]  ;;  %v6631_v30 = vmov -1e+30   ;;  %s7457_s29 = smov 80  }
  0x21   : > { %6349 = vmatprep.subr.bf16.mxu0 %v6627_v0  ;;  %v6374_v34 = vpack.c.bf16 %v961_v33, %v960_v32  ;;  %v6377_v37 = vpack.c.bf16 %v963_v36, %v962_v35  ;;  %v938_v40 = vld [vmem:[%s6780_s22 + $0x10] sm:$0xff]  ;;  %v1046_v41 = vld [vmem:[%s873_s27] sm:$0xff]  ;;  %v1100_v61 = vld [vmem:[%s6839_s4 + $0x8] sm:$0xff]  ;;  %s7488_s27 = sld [smem:[#allocation6_spill]]  ;;  %s7473_s22 = smov 96  }
  0x22   : > { %v1099_v60 = vld [vmem:[%s6839_s4] sm:$0xff]  ;;  %v1101_v62 = vld [vmem:[%s6839_s4 + $0x10] sm:$0xff]  ;;  %v1102_v1 = vld [vmem:[%s6839_s4 + $0x18] sm:$0xff]  ;;  %s7453_s0 = smov 112  }
  0x23   : > { %v6379_v63 = vpack.c.bf16 %v1100_v61, %v1099_v60  ;;  %v6383_v2 = vpack.c.bf16 %v1102_v1, %v1101_v62  ;;  %v5702_v20 = vld [vmem:[%s6874_s5] ss:$0 sm:$0xff] }
  0x24   : > { %6351 = vmatpush1.bf16.msra.mxu0 %v6350_v9  ;;  %s6852_s1 = scalar_lea.vmem %s7487_s23, %s6846_s30  ;;  %s7463_s23 = smov 64  }
  0x25   : > { %6352 = vmatprep.subr.bf16.mxu0 %v6627_v0  ;;  %6380 = vmatprep.subr.bf16.mxu1 %v6379_v63  ;;  %v5700_v10 = vld [vmem:[%s6852_s1] ss:$0 sm:$0xff] }
  0x26   : > { %6382 = vmatpush3.bf16.msra.mxu1 %v6379_v63 }
  0x27   : > { %6384 = vmatprep.subr.bf16.mxu1 %v6383_v2  ;;  %s6858_s28 = scalar_lea.vmem %s7488_s27, %s6846_s30  ;;  %s7455_s27 = smov 56  }
  0x28   : > { %6354 = vmatpush1.bf16.msra.mxu0 %v6353_v13  ;;  %v5701_v12 = vld [vmem:[%s6858_s28] ss:$0 sm:$0xff] }
  0x29   : > { %6355 = vmatprep.subr.bf16.mxu0 %v6627_v0 }
  0x2a   : > { %6386 = vmatpush3.bf16.msra.mxu1 %v6383_v2 }
  0x2c   : > { %6357 = vmatpush1.bf16.msra.mxu0 %v6356_v16 }
  0x2d   : > { %6358 = vmatprep.subr.bf16.mxu0 %v6627_v0 }
  0x30   : > { %6360 = vmatpush1.bf16.msra.mxu0 %v6359_v19  ;;  %v6628_v19 = vmov 0.0  }
  0x31   : > { %6361 = vmatprep.subr.bf16.mxu0 %v6627_v0  ;;  %6010 = vmatprep.subr.mxu1 %v6628_v19 }
  0x34   : > { %6363 = vmatpush1.bf16.msra.mxu0 %v6362_v22 }
  0x35   : > { %6364 = vmatprep.subr.bf16.mxu0 %v6627_v0 }
  0x38   : > { %6366 = vmatpush1.bf16.msra.mxu0 %v6365_v25 }
  0x39   : > { %6367 = vmatprep.subr.bf16.mxu0 %v6627_v0 }
  0x3c   : > { %6369 = vmatpush1.bf16.msra.mxu0 %v6368_v28  ;;  %v1050_v28 = vand.u32 127, %v1049_v27 }
  0x3d   : > { %6370 = vmatprep.subr.bf16.mxu0 %v6627_v0 }
  0x3e   : > { %vm1051_vm4 = vcmp.lt.s32.totalorder %v1050_v28, 5 }
  0x40   : > { %6372 = vmatpush1.bf16.msra.mxu0 %v6371_v31  ;;  %v6897_v31 = vsel %vm1051_vm4, 0.0, %v6631_v30 }
  0x41   : > { %6373 = vmatprep.subr.bf16.mxu0 %v6627_v0 }
  0x44   : > { %6375 = vmatpush1.bf16.msra.mxu0 %v6374_v34 }
  0x45   : > { %6376 = vmatprep.subr.bf16.mxu0 %v6627_v0 }
  0x48   : > { %6378 = vmatpush1.bf16.msra.mxu0 %v6377_v37 }
  0x49   : > { %6065 = vmatprep.subr.mxu0 %v6628_v19 }
  0x4b   : > { %1036 = vmatmul.mubr.f32.vlgmr.msra.gmra.mrb[0].mxu0 %v936_v38 }
  0x4c   : > { %5699 = vmatprep.mubr.msk.f32.mxu0 %vm964_vm0, %v939_v39 }
  0x4f   : > { %1041 = vmatmul.mubr.f32.gmra.mrb[2].mxu0 %v938_v40 }
  0x50   : > { %6067 = vmatprep.mubr.msk.f32.mxu0 %vm6629_vm2, %v6628_v19 }
 0x11e   : > { %v1037_v42 = vpop.f32.mrb[0].mxu0 }
 0x11f   : > { %v6820_v43 = vadd.f32 %v1046_v41, %v1037_v42  ;;  %v1039_v44 = vpop.f32.mrb[1].mxu0 }
 0x121   : > { %v1056_v45 = vsel %vm1055_vm1, %v6820_v43, 0.0 }
 0x122   : > { %1057 = vadd.xlane.f32.xlu0 %v1056_v45  ;;  %v1042_v46 = vpop.f32.mrb[2].mxu0 }
 0x123   : > { %v6824_v47 = vadd.f32 %v1046_v41, %v1042_v46  ;;  %v1044_v48 = vpop.f32.mrb[3].mxu0 }
 0x125   : > { %v1059_v49 = vsel %vm1055_vm1, %v6824_v47, 0.0 }
 0x126   : > { %1060 = vadd.xlane.f32.xlu0 %v1059_v49 }
 0x1af   : > { %v1058_v50 = vpop.xlane.xlu0 %1057 }
 0x1b0   : > { %v1063_v51 = vmul.f32 0.03125, %v1058_v50 }
 0x1b2   : > { %v1065_v52 = vsub.f32 %v6820_v43, %v1063_v51 }
 0x1b3   : > { %v1061_v53 = vpop.xlane.xlu0 %1060 }
 0x1b4   : > { %v1064_v54 = vmul.f32 0.03125, %v1061_v53  ;;  %v1067_v55 = vmul.f32 %v1065_v52, %v1065_v52 }
 0x1b6   : > { %v1066_v56 = vsub.f32 %v6824_v47, %v1064_v54  ;;  %v1069_v57 = vsel %vm1055_vm1, %v1067_v55, 0.0 }
 0x1b7   : > { %1070 = vadd.xlane.f32.xlu1 %v1069_v57 }
 0x1b8   : > { %v1068_v58 = vmul.f32 %v1066_v56, %v1066_v56 }
 0x1ba   : > { %v1072_v59 = vsel %vm1055_vm1, %v1068_v58, 0.0 }
 0x1bb   : > { %1073 = vadd.xlane.f32.xlu1 %v1072_v59 }
 0x244   : > { %v1071_v3 = vpop.xlane.xlu1 %1070 }
 0x245   : > { %v1075_v4 = vmul.f32 0.03125, %v1071_v3 }
 0x247   : > { %v1077_v5 = vadd.f32 1e-06, %v1075_v4 }
 0x248   : > { %v1074_v6 = vpop.xlane.xlu1 %1073 }
 0x249   : > { %6529 = vrsqrt.f32 %v1077_v5  ;;  %v1076_v7 = vmul.f32 0.03125, %v1074_v6 }
 0x24b   : > { %v1078_v8 = vadd.f32 1e-06, %v1076_v7 }
 0x24d   : > { %6531 = vrsqrt.f32 %v1078_v8 }
 0x253   : > { %v6530_v9 = vpop.eup %6529 }
 0x254   : > { %v1081_v11 = vmul.f32 %v6530_v9, %v1065_v52 }
 0x256   : > { %v1089_v13 = vmul.f32 %v5700_v10, %v1081_v11 }
 0x257   : > { %v6532_v14 = vpop.eup %6531 }
 0x258   : > { %v1082_v15 = vmul.f32 %v6532_v14, %v1066_v56  ;;  %v1097_v16 = vadd.f32 %v5701_v12, %v1089_v13 }
 0x25a   : > { %v1090_v17 = vmul.f32 %v5700_v10, %v1082_v15  ;;  %6007 = vmatprep.mubr.msk.f32.mxu1 %vm1055_vm1, %v1097_v16 }
 0x25c   : > { %v1098_v18 = vadd.f32 %v5701_v12, %v1090_v17 }
 0x25e   : > { %6008 = vmatmul.mubr.msk.f32.vlgmr.msra.gmra.mrb[0].mxu1 %vm1055_vm1, %v1098_v18 }
 0x25f   : > { %6012 = vmatprep.mubr.msk.f32.mxu1 %vm6629_vm2, %v6628_v19 }
 0x331   : > { %v6009_v21 = vpop.f32.mrb[0].mxu1 }
 0x332   : > { %v6877_v22 = vadd.f32 %v6009_v21, %v5702_v20  ;;  %v1182_v23 = vpop.f32.mrb[1].mxu1 }
 0x333   : > { %v6879_v24 = vadd.f32 %v5702_v20, %v1182_v23 }
 0x334   : > { %1274 = vrot.lane.b32.xlu1 %v6877_v22, %s7473_s22 }
 0x335   : > { %1196 = vrot.lane.b32.xlu0 %v6879_v24, %s7473_s22 }
 0x3a6   : > { %v1275_v26 = vpop.permute.xlu1 %1274 }
 0x3a7   : > { %v1197_v25 = vpop.permute.xlu0 %1196 }
 0x3a8   : > { %6011 = vmatpush3.xpose.msk.msra.mxu1 %vm1198_vm3, %v1197_v25 }
 0x3a9   : > { %6015 = vmatprep.subr.mxu1 %v6628_v19 }
 0x3ab   : > { %6013 = vmatmul.mubr.msk.f32.vlgmr.msra.gmra.mrb[2].mxu1 %vm1198_vm3, %v6879_v24 }
 0x3ac   : > { %6016 = vmatpush3.xpose.msk.msra.mxu1 %vm1198_vm3, %v1275_v26  ;;  %6017 = vmatprep.mubr.msk.f32.mxu1 %vm6629_vm2, %v6628_v19 }
 0x3ad   : > { %6020 = vmatprep.subr.mxu1 %v6628_v19 }
 0x3af   : > { %6018 = vmatmul.mubr.msk.f32.vlgmr.msra.gmra.mrb[4].mxu1 %vm1198_vm3, %v6877_v22 }
 0x3b0   : > { %6022 = vmatprep.mubr.msk.f32.mxu1 %vm6629_vm2, %v6628_v19 }
 0x47e   : > { %v1269_v29 = vpop.f32.mrb[2].mxu1 }
 0x47f   : > { %v1350_v32 = vmul.f32 0.35355338, %v1269_v29  ;;  %v6014_v33 = vpop.f32.mrb[3].mxu1 }
 0x481   : > { %v1352_v34 = vadd.f32 %v1350_v32, %v6897_v31 }
 0x482   : > { %v1346_v35 = vpop.f32.mrb[4].mxu1 }
 0x483   : > { %v1351_v36 = vmul.f32 0.35355338, %v1346_v35  ;;  %v6019_v37 = vpop.f32.mrb[5].mxu1  ;;  %v1354_v38 = vsel %vm1198_vm3, %v1352_v34, -inf }
 0x484   : > { %1355 = vmax.xlane.f32.xlu1 %v1354_v38 }
 0x485   : > { %v1353_v39 = vadd.f32 %v1351_v36, %v6897_v31 }
 0x487   : > { %v1357_v40 = vsel %vm1198_vm3, %v1353_v39, -inf }
 0x488   : > { %1358 = vmax.xlane.f32.xlu0 %v1357_v40 }
 0x495   : > { %1452 = vrot.lane.b32.xlu1 %v6877_v22, %s7463_s23 }
 0x499   : > { %1530 = vrot.lane.b32.xlu1 %v6879_v24, %s7461_s24 }
 0x49d   : > { %1528 = vrot.lane.b32.xlu1 %v6879_v24, %s7459_s26 }
 0x511   : > { %v1356_v41 = vpop.xlane.xlu1 %1355 }
 0x512   : > { %v1360_v42 = vsub.f32 %v1352_v34, %v1356_v41 }
 0x514   : > { %v1362_v44 = vmul.f32 1.442695, %v1360_v42 }
 0x515   : > { %v1359_v45 = vpop.xlane.xlu0 %1358  ;;  %v1453_v53 = vpop.permute.xlu1 %1452 }
 0x516   : > { %6533 = vpow2.f32 %v1362_v44  ;;  %v1361_v46 = vsub.f32 %v1353_v39, %v1359_v45 }
 0x518   : > { %v1364_v48 = vmul.f32 1.442695, %v1361_v46 }
 0x519   : > { %v1531_v54 = vpop.permute.xlu1 %1530 }
 0x51a   : > { %6535 = vpow2.f32 %v1364_v48 }
 0x51d   : > { %v1529_v55 = vpop.permute.xlu1 %1528 }
 0x520   : > { %v6534_v49 = vpop.eup %6533 }
 0x521   : > { %v1366_v50 = vsel %vm1198_vm3, %v6534_v49, 0.0 }
 0x522   : > { %1367 = vadd.xlane.f32.xlu0 %v1366_v50 }
 0x524   : > { %v6536_v51 = vpop.eup %6535 }
 0x525   : > { %v1369_v52 = vsel %vm1198_vm3, %v6536_v51, 0.0 }
 0x526   : > { %1370 = vadd.xlane.f32.xlu1 %v1369_v52 }
 0x537   : > { %1606 = vrot.lane.b32.xlu1 %v6877_v22, %s7459_s26  ;;  %s6977_s26 = scalar_lea.vmem %s7490_s7, %s6833_s3  ;;  %s7496_s7 = smov 56  }
 0x538   : > { %1376 = vrot.lane.b32.xlu0 %v6879_v24, %s7463_s23  ;;  %v1192_v48 = vld [vmem:[%s6977_s26 + $0x8] sm:$0xff]  ;;  %s7467_s23 = smov 104  }
 0x53c   : > { %1608 = vrot.lane.b32.xlu0 %v6877_v22, %s7461_s24  ;;  %s7469_s24 = smov 72  }
 0x5af   : > { %v1368_v56 = vpop.xlane.xlu0 %1367 }
 0x5b0   : > { %6537 = vrcp.f32 %v1368_v56 }
 0x5b3   : > { %v1371_v57 = vpop.xlane.xlu1 %1370  ;;  %v1377_v58 = vpop.permute.xlu0 %1376 }
 0x5b4   : > { %6539 = vrcp.f32 %v1371_v57  ;;  %6021 = vmatpush3.msra.mxu1 %v1377_v58 }
 0x5b5   : > { %6025 = vmatprep.subr.mxu1 %v6628_v19 }
 0x5b7   : > { %v1609_v63 = vpop.permute.xlu0 %1608  ;;  %v1607_v1 = vpop.permute.xlu1 %1606 }
 0x5ba   : > { %v6538_v59 = vpop.eup %6537 }
 0x5bb   : > { %v1373_v60 = vmul.f32 %v6538_v59, %v6534_v49  ;;  %v1191_v49 = vld [vmem:[%s6977_s26] sm:$0xff] }
 0x5bd   : > { %6023 = vmatmul.mubr.msk.f32.vlgmr.msra.gmra.mrb[6].mxu1 %vm1198_vm3, %v1373_v60 }
 0x5be   : > { %v6540_v61 = vpop.eup %6539  ;;  %6026 = vmatpush3.msra.mxu1 %v1453_v53  ;;  %6027 = vmatprep.mubr.msk.f32.mxu1 %vm6629_vm2, %v6628_v19 }
 0x5bf   : > { %v1375_v62 = vmul.f32 %v6540_v61, %v6536_v51  ;;  %6030 = vmatprep.subr.mxu1 %v6628_v19 }
 0x5c1   : > { %6028 = vmatmul.mubr.msk.f32.vlgmr.msra.gmra.mrb[8].mxu1 %vm1198_vm3, %v1375_v62 }
 0x5c2   : > { %6032 = vmatprep.mubr.msk.f32.mxu1 %vm6629_vm2, %v6628_v19 }
 0x5c5   : > { %6031 = vmatpush3.xpose.msk.msra.mxu1 %vm1198_vm3, %v1531_v54 }
 0x5c6   : > { %6035 = vmatprep.subr.mxu1 %v6628_v19 }
 0x5c8   : > { %6033 = vmatmul.mubr.msk.f32.vlgmr.msra.gmra.mrb[10].mxu1 %vm1198_vm3, %v1529_v55 }
 0x5c9   : > { %6036 = vmatpush3.xpose.msk.msra.mxu1 %vm1198_vm3, %v1609_v63  ;;  %6037 = vmatprep.mubr.msk.f32.mxu1 %vm6629_vm2, %v6628_v19 }
 0x5ca   : > { %6040 = vmatprep.subr.mxu1 %v6628_v19 }
 0x5cc   : > { %6038 = vmatmul.mubr.msk.f32.vlgmr.msra.gmra.mrb[12].mxu1 %vm1198_vm3, %v1607_v1 }
 0x5cd   : > { %6042 = vmatprep.mubr.msk.f32.mxu1 %vm6629_vm2, %v6628_v19 }
 0x690   : > { %v6935_v2 = vpop.f32.mrb[6].mxu1 }
 0x691   : > { %v6024_v3 = vpop.f32.mrb[7].mxu1 }
 0x694   : > { %v6937_v4 = vpop.f32.mrb[8].mxu1 }
 0x695   : > { %v6029_v5 = vpop.f32.mrb[9].mxu1 }
 0x69b   : > { %v1602_v6 = vpop.f32.mrb[10].mxu1 }
 0x69c   : > { %v1684_v7 = vmul.f32 0.35355338, %v1602_v6  ;;  %v6034_v8 = vpop.f32.mrb[11].mxu1 }
 0x69e   : > { %v1686_v9 = vadd.f32 %v1684_v7, %v6897_v31 }
 0x69f   : > { %v1680_v10 = vpop.f32.mrb[12].mxu1 }
 0x6a0   : > { %v1685_v11 = vmul.f32 0.35355338, %v1680_v10  ;;  %v6039_v12 = vpop.f32.mrb[13].mxu1  ;;  %v1688_v13 = vsel %vm1198_vm3, %v1686_v9, -inf }
 0x6a1   : > { %1689 = vmax.xlane.f32.xlu0 %v1688_v13  ;;  %v1193_v13 = vld [vmem:[%s6977_s26 + $0x10] sm:$0xff] }
 0x6a2   : > { %v1687_v14 = vadd.f32 %v1685_v11, %v6897_v31 }
 0x6a4   : > { %v1691_v15 = vsel %vm1198_vm3, %v1687_v14, -inf }
 0x6a5   : > { %1692 = vmax.xlane.f32.xlu1 %v1691_v15 }
 0x6b6   : > { %1786 = vrot.lane.b32.xlu1 %v6877_v22, %s7455_s27 }
 0x6ba   : > { %2026 = vrot.lane.b32.xlu1 %v6879_v24, %s7457_s29 }
 0x6be   : > { %2104 = vrot.lane.b32.xlu1 %v6877_v22, %s7457_s29  ;;  %s7081_s29 = scalar_lea.vmem %s7440_s9, %s6846_s30 }
 0x6c2   : > { %2102 = vrot.lane.b32.xlu1 %v6877_v22, %s7453_s0 }
 0x72e   : > { %v1690_v16 = vpop.xlane.xlu0 %1689 }
 0x72f   : > { %v1694_v17 = vsub.f32 %v1686_v9, %v1690_v16 }
 0x731   : > { %v1696_v18 = vmul.f32 1.442695, %v1694_v17 }
 0x732   : > { %v1693_v20 = vpop.xlane.xlu1 %1692 }
 0x733   : > { %6541 = vpow2.f32 %v1696_v18  ;;  %v1695_v21 = vsub.f32 %v1687_v14, %v1693_v20 }
 0x735   : > { %v1698_v23 = vmul.f32 1.442695, %v1695_v21 }
 0x736   : > { %v1787_v25 = vpop.permute.xlu1 %1786 }
 0x737   : > { %6543 = vpow2.f32 %v1698_v23 }
 0x73a   : > { %v6951_v26 = vpop.permute.xlu1 %2026 }
 0x73d   : > { %v6542_v27 = vpop.eup %6541 }
 0x73e   : > { %v2105_v28 = vpop.permute.xlu1 %2104  ;;  %v1700_v29 = vsel %vm1198_vm3, %v6542_v27, 0.0 }
 0x73f   : > { %1701 = vadd.xlane.f32.xlu0 %v1700_v29  ;;  %6066 = vmatpush3.xpose.msk.msra.mxu0 %vm1198_vm3, %v2105_v28 }
 0x740   : > { %6075 = vmatprep.subr.mxu0 %v6628_v19 }
 0x741   : > { %v6544_v30 = vpop.eup %6543 }
 0x742   : > { %v2103_v32 = vpop.permute.xlu1 %2102  ;;  %v1703_v33 = vsel %vm1198_vm3, %v6544_v30, 0.0 }
 0x743   : > { %1704 = vadd.xlane.f32.xlu0 %v1703_v33  ;;  %6068 = vmatmul.mubr.msk.f32.vlgmr.msra.gmra.mrb[4].mxu0 %vm1198_vm3, %v2103_v32 }
 0x744   : > { %6077 = vmatprep.mubr.msk.f32.mxu0 %vm6629_vm2, %v6628_v19 }
 0x759   : > { %1710 = vrot.lane.b32.xlu0 %v6879_v24, %s7455_s27  ;;  %s7465_s27 = smov 40  }
 0x75d   : > { %2024 = vrot.lane.b32.xlu0 %v6879_v24, %s7453_s0  ;;  %s7471_s0 = smov 48  }
 0x7cc   : > { %v1702_v34 = vpop.xlane.xlu0 %1701 }
 0x7cd   : > { %6545 = vrcp.f32 %v1702_v34 }
 0x7d0   : > { %v1705_v35 = vpop.xlane.xlu0 %1704 }
 0x7d1   : > { %6547 = vrcp.f32 %v1705_v35 }
 0x7d4   : > { %v1711_v36 = vpop.permute.xlu0 %1710 }
 0x7d5   : > { %6041 = vmatpush3.msra.mxu1 %v1711_v36 }
 0x7d6   : > { %6045 = vmatprep.subr.mxu1 %v6628_v19 }
 0x7d7   : > { %v6546_v37 = vpop.eup %6545 }
 0x7d8   : > { %v1707_v38 = vmul.f32 %v6546_v37, %v6542_v27  ;;  %v2025_v56 = vpop.permute.xlu0 %2024 }
 0x7da   : > { %6043 = vmatmul.mubr.msk.f32.vlgmr.msra.gmra.mrb[14].mxu1 %vm1198_vm3, %v1707_v38 }
 0x7db   : > { %v6548_v39 = vpop.eup %6547  ;;  %6046 = vmatpush3.msra.mxu1 %v1787_v25  ;;  %6047 = vmatprep.mubr.msk.f32.mxu1 %vm6629_vm2, %v6628_v19 }
 0x7dc   : > { %v1709_v40 = vmul.f32 %v6548_v39, %v6544_v30  ;;  %6050 = vmatprep.subr.mxu1 %v1192_v48 }
 0x7de   : > { %6048 = vmatmul.mubr.msk.f32.vlgmr.msra.gmra.mrb[16].mxu1 %vm1198_vm3, %v1709_v40 }
 0x7df   : > { %6051 = vmatpush3.msra.mxu1 %v1192_v48 }
 0x7e0   : > { %6055 = vmatprep.subr.mxu1 %v1191_v49 }
 0x816   : > { %v2176_v41 = vpop.f32.mrb[4].mxu0 }
 0x817   : > { %v2181_v42 = vmul.f32 0.35355338, %v2176_v41  ;;  %v6069_v44 = vpop.f32.mrb[5].mxu0 }
 0x819   : > { %v2183_v45 = vadd.f32 %v2181_v42, %v6897_v31 }
 0x81b   : > { %v2187_v46 = vsel %vm1198_vm3, %v2183_v45, -inf }
 0x81c   : > { %2188 = vmax.xlane.f32.xlu1 %v2187_v46 }
 0x82d   : > { %2282 = vrot.lane.b32.xlu1 %v6877_v22, %s7471_s0 }
 0x831   : > { %2443 = vrot.lane.b32.xlu1 %v6879_v24, %s7469_s24 }
 0x835   : > { %2521 = vrot.lane.b32.xlu1 %v6877_v22, %s7469_s24  ;;  %s7071_s24 = scalar_lea.vmem %s7442_s11, %s6833_s3  ;;  %s5836_s3 = sshll.u32 %s7503_s25, 8 }
 0x836   : > { %s7097_s22 = scalar_lea.vmem %s7444_s13, %s5836_s3  ;;  %s7120_s3 = scalar_lea.vmem %s7443_s12, %s6846_s30 }
 0x839   : > { %2519 = vrot.lane.b32.xlu1 %v6877_v22, %s7467_s23 }
 0x8a9   : > { %v2189_v50 = vpop.xlane.xlu1 %2188 }
 0x8aa   : > { %v2191_v57 = vsub.f32 %v2183_v45, %v2189_v50 }
 0x8ac   : > { %v2194_v58 = vmul.f32 1.442695, %v2191_v57  ;;  %v1194_v57 = vld [vmem:[%s6977_s26 + $0x18] sm:$0xff] }
 0x8ad   : > { %v1782_v51 = vpop.f32.mrb[14].mxu1  ;;  %v2283_v52 = vpop.permute.xlu1 %2282 }
 0x8ae   : > { %v6044_v53 = vpop.f32.mrb[15].mxu1  ;;  %6052 = vmatprep.mubr.msk.f32.mxu1 %vm1198_vm3, %v1782_v51  ;;  %6076 = vmatpush3.msra.mxu0 %v2283_v52  ;;  %6549 = vpow2.f32 %v2194_v58 }
 0x8af   : > { %6085 = vmatprep.subr.mxu0 %v6628_v19 }
 0x8b1   : > { %v1858_v54 = vpop.f32.mrb[16].mxu1  ;;  %v2444_v11 = vpop.permute.xlu1 %2443 }
 0x8b2   : > { %v6049_v55 = vpop.f32.mrb[17].mxu1  ;;  %6053 = vmatmul.mubr.msk.f32.vlgmr.msra.gmra.mrb[18].mxu1 %vm1198_vm3, %v1858_v54 }
 0x8b3   : > { %6056 = vmatpush3.msra.mxu1 %v1191_v49  ;;  %6057 = vmatprep.mubr.msk.f32.mxu1 %vm1198_vm3, %v6935_v2 }
 0x8b4   : > { %6060 = vmatprep.subr.mxu1 %v6628_v19 }
 0x8b5   : > { %v2522_v27 = vpop.permute.xlu1 %2521 }
 0x8b8   : > { %v6550_v1 = vpop.eup %6549 }
 0x8b9   : > { %v2199_v2 = vsel %vm1198_vm3, %v6550_v1, 0.0  ;;  %v2520_v32 = vpop.permute.xlu1 %2519 }
 0x8ba   : > { %6058 = vmatmul.mubr.msk.f32.vlgmr.msra.gmra.mrb[18].mxu1 %vm1198_vm3, %v6937_v4 }
 0x8bb   : > { %6061 = vmatpush3.xpose.msk.msra.mxu1 %vm1198_vm3, %v6951_v26  ;;  %6062 = vmatprep.mubr.msk.f32.mxu1 %vm6629_vm2, %v6628_v19 }
 0x8bc   : > { %6070 = vmatprep.subr.mxu1 %v6628_v19 }
 0x8be   : > { %6063 = vmatmul.mubr.msk.f32.vlgmr.msra.gmra.mrb[20].mxu1 %vm1198_vm3, %v2025_v56 }
 0x8bf   : > { %6072 = vmatprep.mubr.msk.f32.mxu1 %vm6629_vm2, %v6628_v19 }
 0x991   : > { %v2098_v59 = vpop.f32.mrb[20].mxu1 }
 0x992   : > { %v2180_v60 = vmul.f32 0.35355338, %v2098_v59  ;;  %v6064_v61 = vpop.f32.mrb[21].mxu1 }
 0x994   : > { %v2182_v62 = vadd.f32 %v2180_v60, %v6897_v31 }
 0x996   : > { %v2184_v63 = vsel %vm1198_vm3, %v2182_v62, -inf }
 0x997   : > { %2185 = vmax.xlane.f32.xlu0 %v2184_v63 }
 0x99b   : > { %2200 = vadd.xlane.f32.xlu0 %v2199_v2 }
 0xa24   : > { %v2186_v3 = vpop.xlane.xlu0 %2185 }
 0xa25   : > { %v2190_v4 = vsub.f32 %v2182_v62, %v2186_v3 }
 0xa27   : > { %v2192_v5 = vmul.f32 1.442695, %v2190_v4 }
 0xa28   : > { %v2201_v6 = vpop.xlane.xlu0 %2200 }
 0xa29   : > { %6551 = vpow2.f32 %v2192_v5 }
 0xa2a   : > { %6553 = vrcp.f32 %v2201_v6 }
 0xa33   : > { %v6552_v7 = vpop.eup %6551 }
 0xa34   : > { %v6554_v8 = vpop.eup %6553  ;;  %v2196_v9 = vsel %vm1198_vm3, %v6552_v7, 0.0 }
 0xa35   : > { %v2205_v10 = vmul.f32 %v6554_v8, %v6550_v1  ;;  %2197 = vadd.xlane.f32.xlu0 %v2196_v9 }
 0xa37   : > { %6078 = vmatmul.mubr.msk.f32.vlgmr.msra.gmra.mrb[6].mxu0 %vm1198_vm3, %v2205_v10 }
 0xa38   : > { %6086 = vmatpush3.xpose.msk.msra.mxu0 %vm1198_vm3, %v2444_v11  ;;  %6087 = vmatprep.mubr.msk.f32.mxu0 %vm6629_vm2, %v6628_v19 }
 0xa39   : > { %6095 = vmatprep.subr.mxu0 %v6628_v19 }
 0xa4b   : > { %2206 = vrot.lane.b32.xlu0 %v6879_v24, %s7471_s0  ;;  %s7129_s0 = scalar_lea.vmem %s7445_s14, %s6846_s30 }
 0xa4f   : > { %2441 = vrot.lane.b32.xlu0 %v6879_v24, %s7467_s23  ;;  %s7050_s23 = scalar_lea.vmem %s7439_s8, %s6846_s30 }
 0xa50   : > { %v5737_v61 = vld [vmem:[%s7050_s23] ss:$0 sm:$0xff] }
 0xac2   : > { %v2198_v12 = vpop.xlane.xlu0 %2197 }
 0xac3   : > { %6555 = vrcp.f32 %v2198_v12 }
 0xac6   : > { %v2207_v14 = vpop.permute.xlu0 %2206 }
 0xac7   : > { %6071 = vmatpush3.msra.mxu1 %v2207_v14 }
 0xac8   : > { %6080 = vmatprep.subr.mxu1 %v1193_v13 }
 0xaca   : > { %v2442_v15 = vpop.permute.xlu0 %2441 }
 0xacb   : > { %6088 = vmatmul.mubr.msk.f32.vlgmr.msra.gmra.mrb[8].mxu0 %vm1198_vm3, %v2442_v15  ;;  %v2913_v15 = vld [vmem:[%s7071_s24] sm:$0xff] }
 0xacc   : > { %6097 = vmatprep.mubr.msk.f32.mxu0 %vm6629_vm2, %v6628_v19 }
 0xacd   : > { %v6556_v16 = vpop.eup %6555 }
 0xace   : > { %v2203_v17 = vmul.f32 %v6556_v16, %v6552_v7  ;;  %v2914_v16 = vld [vmem:[%s7071_s24 + $0x8] sm:$0xff] }
 0xad0   : > { %6073 = vmatmul.mubr.msk.f32.vlgmr.msra.gmra.mrb[22].mxu1 %vm1198_vm3, %v2203_v17  ;;  %v6387_v17 = vpack.c.bf16 %v2914_v16, %v2913_v15 }
 0xad1   : > { %6081 = vmatpush3.msra.mxu1 %v1193_v13 }
 0xad2   : > { %6090 = vmatprep.subr.mxu1 %v6628_v19 }
 0xb0a   : > { %v2354_v18 = vpop.f32.mrb[6].mxu0 }
 0xb0b   : > { %v6079_v20 = vpop.f32.mrb[7].mxu0 }
 0xb0c   : > { %v2916_v20 = vld [vmem:[%s7071_s24 + $0x18] sm:$0xff] }
 0xb9e   : > { %v2515_v21 = vpop.f32.mrb[8].mxu0 }
 0xb9f   : > { %v2597_v23 = vmul.f32 0.35355338, %v2515_v21  ;;  %v6089_v25 = vpop.f32.mrb[9].mxu0 }
 0xba1   : > { %v2599_v26 = vadd.f32 %v2597_v23, %v6897_v31 }
 0xba3   : > { %v2278_v28 = vpop.f32.mrb[22].mxu1  ;;  %v2601_v29 = vsel %vm1198_vm3, %v2599_v26, -inf }
 0xba4   : > { %v6074_v30 = vpop.f32.mrb[23].mxu1  ;;  %6082 = vmatprep.mubr.msk.f32.mxu1 %vm1198_vm3, %v2278_v28  ;;  %2602 = vmax.xlane.f32.xlu0 %v2601_v29 }
 0xba5   : > { %6083 = vmatmul.mubr.msk.f32.vlgmr.msra.gmra.mrb[18].mxu1 %vm1198_vm3, %v2354_v18  ;;  %v2915_v18 = vld [vmem:[%s7071_s24 + $0x10] sm:$0xff] }
 0xba6   : > { %6091 = vmatpush3.xpose.msk.msra.mxu1 %vm1198_vm3, %v2522_v27  ;;  %6092 = vmatprep.mubr.msk.f32.mxu1 %vm6629_vm2, %v6628_v19  ;;  %v6391_v21 = vpack.c.bf16 %v2916_v20, %v2915_v18 }
 0xba7   : > { %6100 = vmatprep.subr.mxu1 %v6628_v19 }
 0xba9   : > { %6093 = vmatmul.mubr.msk.f32.vlgmr.msra.gmra.mrb[24].mxu1 %vm1198_vm3, %v2520_v32  ;;  %v5738_v32 = vld [vmem:[%s7081_s29] ss:$0 sm:$0xff] }
 0xbaa   : > { %6102 = vmatprep.mubr.msk.f32.mxu1 %vm6629_vm2, %v6628_v19 }
 0xc31   : > { %v2603_v33 = vpop.xlane.xlu0 %2602 }
 0xc32   : > { %v2607_v34 = vsub.f32 %v2599_v26, %v2603_v33 }
 0xc34   : > { %v2609_v35 = vmul.f32 1.442695, %v2607_v34 }
 0xc36   : > { %6557 = vpow2.f32 %v2609_v35 }
 0xc40   : > { %v6558_v36 = vpop.eup %6557 }
 0xc41   : > { %v2613_v37 = vsel %vm1198_vm3, %v6558_v36, 0.0 }
 0xc42   : > { %2614 = vadd.xlane.f32.xlu0 %v2613_v37 }
 0xc7c   : > { %v2593_v38 = vpop.f32.mrb[24].mxu1 }
 0xc7d   : > { %v2598_v39 = vmul.f32 0.35355338, %v2593_v38  ;;  %v6094_v40 = vpop.f32.mrb[25].mxu1 }
 0xc7f   : > { %v2600_v41 = vadd.f32 %v2598_v39, %v6897_v31 }
 0xc81   : > { %v2604_v42 = vsel %vm1198_vm3, %v2600_v41, -inf }
 0xc82   : > { %2605 = vmax.xlane.f32.xlu1 %v2604_v42  ;;  %v3024_v42 = vld [vmem:[%s7097_s22 + $0x8] sm:$0xff] }
 0xc93   : > { %2699 = vrot.lane.b32.xlu1 %v6877_v22, %s7465_s27 }
 0xccf   : > { %v2615_v51 = vpop.xlane.xlu0 %2614 }
 0xd0f   : > { %v2606_v44 = vpop.xlane.xlu1 %2605 }
 0xd10   : > { %v2608_v45 = vsub.f32 %v2600_v41, %v2606_v44  ;;  %v3023_v41 = vld [vmem:[%s7097_s22] sm:$0xff] }
 0xd11   : > { %v6395_v44 = vpack.c.bf16 %v3024_v42, %v3023_v41 }
 0xd12   : > { %v2611_v46 = vmul.f32 1.442695, %v2608_v45  ;;  %v3025_v45 = vld [vmem:[%s7097_s22 + $0x10] sm:$0xff] }
 0xd13   : > { %v2700_v48 = vpop.permute.xlu1 %2699 }
 0xd14   : > { %6559 = vpow2.f32 %v2611_v46  ;;  %6101 = vmatpush3.msra.mxu1 %v2700_v48  ;;  %v3026_v46 = vld [vmem:[%s7097_s22 + $0x18] sm:$0xff] }
 0xd15   : > { %6561 = vrcp.f32 %v2615_v51  ;;  %6105 = vmatprep.subr.mxu1 %v1194_v57  ;;  %v6399_v48 = vpack.c.bf16 %v3026_v46, %v3025_v45 }
 0xd1e   : > { %v6560_v49 = vpop.eup %6559 }
 0xd1f   : > { %v2616_v50 = vsel %vm1198_vm3, %v6560_v49, 0.0  ;;  %v6562_v53 = vpop.eup %6561 }
 0xd20   : > { %2617 = vadd.xlane.f32.xlu0 %v2616_v50  ;;  %v2620_v22 = vmul.f32 %v6562_v53, %v6558_v36  ;;  %v5739_v36 = vld [vmem:[%s7087_s6] ss:$0 sm:$0xff]  ;;  %v3028_v50 = vld [vmem:[%s7097_s22 + $0x28] sm:$0xff]  ;;  %v3030_v53 = vld [vmem:[%s7097_s22 + $0x38] sm:$0xff] }
 0xd36   : > { %2623 = vrot.lane.b32.xlu0 %v6879_v24, %s7465_s27  ;;  %s7495_s27 = smov 80  }
 0xdad   : > { %v2618_v52 = vpop.xlane.xlu0 %2617 }
 0xdae   : > { %6563 = vrcp.f32 %v2618_v52  ;;  %v3029_v52 = vld [vmem:[%s7097_s22 + $0x30] sm:$0xff] }
 0xdb1   : > { %v2624_v54 = vpop.permute.xlu0 %2623 }
 0xdb2   : > { %6096 = vmatpush3.msra.mxu0 %v2624_v54  ;;  %v3031_v54 = vld [vmem:[%s7097_s22 + $0x40] sm:$0xff] }
 0xdb3   : > { %6098 = vmatmul.mubr.msk.f32.vlgmr.msra.gmra.mrb[10].mxu0 %vm1198_vm3, %v2620_v22  ;;  %6388 = vmatprep.subr.bf16.mxu0 %v6387_v17  ;;  %v6407_v22 = vpack.c.bf16 %v3030_v53, %v3029_v52  ;;  %v5751_v52 = vld [vmem:[%s6839_s4 + $0x38] sm:$0xff] }
 0xdb4   : > { %6390 = vmatpush3.bf16.msra.mxu0 %v6387_v17 }
 0xdb5   : > { %6392 = vmatprep.subr.bf16.mxu0 %v6391_v21 }
 0xdb8   : > { %v6564_v55 = vpop.eup %6563  ;;  %6394 = vmatpush3.bf16.msra.mxu0 %v6391_v21 }
 0xdb9   : > { %v2622_v56 = vmul.f32 %v6564_v55, %v6560_v49  ;;  %v3027_v49 = vld [vmem:[%s7097_s22 + $0x20] sm:$0xff]  ;;  %v3032_v55 = vld [vmem:[%s7097_s22 + $0x48] sm:$0xff] }
 0xdba   : > { %v6403_v51 = vpack.c.bf16 %v3028_v50, %v3027_v49  ;;  %v5749_v49 = vld [vmem:[%s6839_s4 + $0x28] sm:$0xff] }
 0xdbb   : > { %6103 = vmatmul.mubr.msk.f32.vlgmr.msra.gmra.mrb[26].mxu1 %vm1198_vm3, %v2622_v56  ;;  %v3033_v56 = vld [vmem:[%s7097_s22 + $0x50] sm:$0xff] }
 0xdbc   : > { %6106 = vmatpush3.msra.mxu1 %v1194_v57  ;;  %v6411_v57 = vpack.c.bf16 %v3032_v55, %v3031_v54 }
 0xdbd   : > { %6396 = vmatprep.subr.bf16.mxu1 %v6395_v44 }
 0xe86   : > { %v2695_v58 = vpop.f32.mrb[10].mxu0 }
 0xe87   : > { %v6099_v24 = vpop.f32.mrb[11].mxu0  ;;  %6107 = vmatprep.mubr.msk.f32.mxu1 %vm1198_vm3, %v2695_v58  ;;  %v3034_v58 = vld [vmem:[%s7097_s22 + $0x58] sm:$0xff] }
 0xe88   : > { %v6415_v24 = vpack.c.bf16 %v3034_v58, %v3033_v56 }
 0xe8e   : > { %v2771_v59 = vpop.f32.mrb[26].mxu1 }
 0xe8f   : > { %v6104_v60 = vpop.f32.mrb[27].mxu1  ;;  %6108 = vmatmul.mubr.msk.f32.vlgmr.msra.gmra.mrb[18].mxu1 %vm1198_vm3, %v2771_v59  ;;  %v3035_v59 = vld [vmem:[%s7097_s22 + $0x60] sm:$0xff] }
 0xe90   : > { %6398 = vmatpush3.bf16.msra.mxu1 %v6395_v44  ;;  %v3036_v60 = vld [vmem:[%s7097_s22 + $0x68] sm:$0xff] }
 0xe91   : > { %6400 = vmatprep.subr.bf16.mxu1 %v6399_v48 }
 0xe94   : > { %6402 = vmatpush3.bf16.msra.mxu1 %v6399_v48  ;;  %v5748_v48 = vld [vmem:[%s6839_s4 + $0x20] sm:$0xff] }
 0xe95   : > { %6404 = vmatprep.subr.bf16.mxu1 %v6403_v51  ;;  %v6427_v50 = vpack.c.bf16 %v5749_v49, %v5748_v48 }
 0xe97   : > { %6428 = vmatprep.subr.bf16.mxu0 %v6427_v50 }
 0xe98   : > { %6406 = vmatpush3.bf16.msra.mxu1 %v6403_v51  ;;  %v5750_v51 = vld [vmem:[%s6839_s4 + $0x30] sm:$0xff]  ;;  %s7491_s4 = smov 96  }
 0xe99   : > { %6408 = vmatprep.subr.bf16.mxu1 %v6407_v22  ;;  %v6431_v53 = vpack.c.bf16 %v5751_v52, %v5750_v51 }
 0xe9c   : > { %6410 = vmatpush3.bf16.msra.mxu1 %v6407_v22 }
 0xe9d   : > { %6412 = vmatprep.subr.bf16.mxu1 %v6411_v57 }
 0xea0   : > { %6414 = vmatpush3.bf16.msra.mxu1 %v6411_v57 }
 0xea1   : > { %6416 = vmatprep.subr.bf16.mxu1 %v6415_v24 }
 0xea4   : > { %6418 = vmatpush3.bf16.msra.mxu1 %v6415_v24 }
 0xf62   : > { %v6109_v62 = vpop.f32.mrb[18].mxu1 }
 0xf63   : > { %v2866_v63 = vadd.f32 %v6109_v62, %v5737_v61  ;;  %v2847_v1 = vpop.f32.mrb[19].mxu1  ;;  %v3037_v62 = vld [vmem:[%s7097_s22 + $0x70] sm:$0xff] }
 0xf64   : > { %v2865_v2 = vadd.f32 %v5737_v61, %v2847_v1  ;;  %v6419_v61 = vpack.c.bf16 %v3036_v60, %v3035_v59  ;;  %v5746_v59 = vld [vmem:[%s6852_s1 + $0x1] ss:$0 sm:$0xff]  ;;  %s7492_s1 = smov 64  }
 0xf65   : > { %v7054_v3 = vadd.f32 %v2866_v63, %v6824_v47  ;;  %v3038_v63 = vld [vmem:[%s7097_s22 + $0x78] sm:$0xff] }
 0xf66   : > { %v7057_v4 = vadd.f32 %v2865_v2, %v6820_v43  ;;  %6420 = vmatprep.subr.bf16.mxu1 %v6419_v61  ;;  %v6423_v1 = vpack.c.bf16 %v3038_v63, %v3037_v62  ;;  %v5740_v2 = vld [vmem:[%s7120_s3] ss:$0 sm:$0xff]  ;;  %v5747_v62 = vld [vmem:[%s6858_s28 + $0x1] ss:$0 sm:$0xff]  ;;  %s7493_s28 = smov 88  }
 0xf67   : > { %v2874_v5 = vsel %vm1055_vm1, %v7054_v3, 0.0  ;;  %6422 = vmatpush3.bf16.msra.mxu1 %v6419_v61 }
 0xf68   : > { %2875 = vadd.xlane.f32.xlu0 %v2874_v5  ;;  %v2871_v6 = vsel %vm1055_vm1, %v7057_v4, 0.0  ;;  %6424 = vmatprep.subr.bf16.mxu1 %v6423_v1 }
 0xf69   : > { %2872 = vadd.xlane.f32.xlu1 %v2871_v6 }
 0xf6b   : > { %6426 = vmatpush3.bf16.msra.mxu1 %v6423_v1 }
 0xf6c   : > { %6197 = vmatprep.subr.mxu1 %v6628_v19 }
 0xff5   : > { %v2876_v7 = vpop.xlane.xlu0 %2875 }
 0xff6   : > { %v2878_v8 = vmul.f32 0.03125, %v2876_v7  ;;  %v2873_v9 = vpop.xlane.xlu1 %2872 }
 0xff7   : > { %v2877_v10 = vmul.f32 0.03125, %v2873_v9 }
 0xff8   : > { %v2880_v11 = vsub.f32 %v7054_v3, %v2878_v8 }
 0xff9   : > { %v2879_v47 = vsub.f32 %v7057_v4, %v2877_v10 }
 0xffa   : > { %v2882_v12 = vmul.f32 %v2880_v11, %v2880_v11 }
 0xffb   : > { %v2881_v43 = vmul.f32 %v2879_v47, %v2879_v47 }
 0xffc   : > { %v2886_v13 = vsel %vm1055_vm1, %v2882_v12, 0.0 }
 0xffd   : > { %2887 = vadd.xlane.f32.xlu1 %v2886_v13  ;;  %v2883_v14 = vsel %vm1055_vm1, %v2881_v43, 0.0 }
 0xffe   : > { %2884 = vadd.xlane.f32.xlu0 %v2883_v14 }
0x108a   : > { %v2888_v23 = vpop.xlane.xlu1 %2887 }
0x108b   : > { %v2890_v25 = vmul.f32 0.03125, %v2888_v23  ;;  %v2885_v26 = vpop.xlane.xlu0 %2884 }
0x108c   : > { %v2889_v27 = vmul.f32 0.03125, %v2885_v26 }
0x108d   : > { %v2892_v28 = vadd.f32 1e-06, %v2890_v25 }
0x108e   : > { %v2891_v29 = vadd.f32 1e-06, %v2889_v27 }
0x108f   : > { %6565 = vrsqrt.f32 %v2892_v28  ;;  %v5743_v28 = vld [vmem:[%s7129_s0] ss:$0 sm:$0xff] }
0x1090   : > { %6567 = vrsqrt.f32 %v2891_v29 }
0x1099   : > { %v6566_v30 = vpop.eup %6565 }
0x109a   : > { %v6568_v33 = vpop.eup %6567  ;;  %v2896_v34 = vmul.f32 %v6566_v30, %v2880_v11 }
0x109b   : > { %v2895_v35 = vmul.f32 %v6568_v33, %v2879_v47 }
0x109c   : > { %v2904_v37 = vmul.f32 %v5738_v32, %v2896_v34 }
0x109d   : > { %v2903_v38 = vmul.f32 %v5738_v32, %v2895_v35 }
0x109e   : > { %v2912_v40 = vadd.f32 %v5739_v36, %v2904_v37 }
0x109f   : > { %v2911_v39 = vadd.f32 %v5739_v36, %v2903_v38 }
0x10a1   : > { %6118 = vmatprep.mubr.msk.f32.mxu0 %vm1055_vm1, %v2911_v39 }
0x10a2   : > { %6119 = vmatmul.mubr.msk.f32.vlgmr.msra.gmra.mrb[12].mxu0 %vm1055_vm1, %v2912_v40 }
0x10a3   : > { %6430 = vmatpush3.bf16.msra.mxu0 %v6427_v50 }
0x10a4   : > { %6432 = vmatprep.subr.bf16.mxu0 %v6431_v53 }
0x10a7   : > { %6434 = vmatpush3.bf16.msra.mxu0 %v6431_v53 }
0x10a8   : > { %6167 = vmatprep.subr.mxu0 %v6628_v19 }
0x1175   : > { %v6120_v5 = vpop.f32.mrb[12].mxu0 }
0x1176   : > { %v3002_v6 = vadd.f32 %v6120_v5, %v5740_v2  ;;  %v2996_v7 = vpop.f32.mrb[13].mxu0 }
0x1177   : > { %v2997_v8 = vadd.f32 %v5740_v2, %v2996_v7  ;;  %v5753_v7 = vld [vmem:[%s6874_s5 + $0x1] ss:$0 sm:$0xff]  ;;  %s7494_s5 = smov 120  }
0x1178   : > { %v3006_v9 = vmul.f32 %v3002_v6, %v3002_v6 }
0x1179   : > { %v3005_v10 = vmul.f32 %v2997_v8, %v2997_v8 }
0x117a   : > { %v3008_v11 = vmul.f32 %v3006_v9, %v3002_v6 }
0x117b   : > { %v3007_v47 = vmul.f32 %v3005_v10, %v2997_v8 }
0x117c   : > { %v3010_v12 = vmul.f32 0.044715, %v3008_v11 }
0x117d   : > { %v3009_v43 = vmul.f32 0.044715, %v3007_v47 }
0x117e   : > { %v3012_v13 = vadd.f32 %v3010_v12, %v3002_v6 }
0x117f   : > { %v3011_v14 = vadd.f32 %v3009_v43, %v2997_v8 }
0x1180   : > { %v3014_v15 = vmul.f32 0.7978846, %v3012_v13 }
0x1181   : > { %v3013_v16 = vmul.f32 0.7978846, %v3011_v14 }
0x1182   : > { %6569 = vtanh.f32 %v3014_v15 }
0x1183   : > { %6571 = vtanh.f32 %v3013_v16 }
0x118c   : > { %v6570_v17 = vpop.eup %6569 }
0x118d   : > { %v6572_v18 = vpop.eup %6571  ;;  %v3018_v20 = vadd.f32 1.0, %v6570_v17 }
0x118e   : > { %v3017_v21 = vadd.f32 1.0, %v6572_v18 }
0x118f   : > { %v3020_v23 = vmul.f32 0.5, %v3018_v20 }
0x1190   : > { %v3019_v25 = vmul.f32 0.5, %v3017_v21 }
0x1191   : > { %v3022_v27 = vmul.f32 %v3020_v23, %v3002_v6 }
0x1192   : > { %v3021_v26 = vmul.f32 %v3019_v25, %v2997_v8 }
0x1194   : > { %6153 = vmatprep.mubr.f32.mxu1 %v3021_v26 }
0x1195   : > { %6154 = vmatmul.mubr.f32.vlgmr.msra.gmra.mrb[28].mxu1 %v3022_v27 }
0x1196   : > { %6199 = vmatprep.mubr.msk.f32.mxu1 %vm6629_vm2, %v6628_v19 }
0x1268   : > { %v6155_v29 = vpop.f32.mrb[28].mxu1 }
0x1269   : > { %v3118_v30 = vadd.f32 %v6155_v29, %v5743_v28  ;;  %v3112_v32 = vpop.f32.mrb[29].mxu1 }
0x126a   : > { %v3113_v33 = vadd.f32 %v5743_v28, %v3112_v32 }
0x126b   : > { %v7133_v34 = vadd.f32 %v3118_v30, %v7054_v3 }
0x126c   : > { %v7136_v35 = vadd.f32 %v3113_v33, %v7057_v4 }
0x126d   : > { %v3130_v36 = vsel %vm1055_vm1, %v7133_v34, 0.0 }
0x126e   : > { %3131 = vadd.xlane.f32.xlu1 %v3130_v36  ;;  %v3127_v37 = vsel %vm1055_vm1, %v7136_v35, 0.0 }
0x126f   : > { %3128 = vadd.xlane.f32.xlu0 %v3127_v37 }
0x12fb   : > { %v3132_v38 = vpop.xlane.xlu1 %3131 }
0x12fc   : > { %v3134_v39 = vmul.f32 0.03125, %v3132_v38  ;;  %v3129_v40 = vpop.xlane.xlu0 %3128 }
0x12fd   : > { %v3133_v3 = vmul.f32 0.03125, %v3129_v40 }
0x12fe   : > { %v3136_v41 = vsub.f32 %v7133_v34, %v3134_v39 }
0x12ff   : > { %v3135_v4 = vsub.f32 %v7136_v35, %v3133_v3 }
0x1300   : > { %v3138_v42 = vmul.f32 %v3136_v41, %v3136_v41 }
0x1301   : > { %v3137_v44 = vmul.f32 %v3135_v4, %v3135_v4 }
0x1302   : > { %v3142_v45 = vsel %vm1055_vm1, %v3138_v42, 0.0 }
0x1303   : > { %3143 = vadd.xlane.f32.xlu1 %v3142_v45  ;;  %v3139_v46 = vsel %vm1055_vm1, %v3137_v44, 0.0 }
0x1304   : > { %3140 = vadd.xlane.f32.xlu0 %v3139_v46 }
0x1390   : > { %v3144_v22 = vpop.xlane.xlu1 %3143 }
0x1391   : > { %v3146_v54 = vmul.f32 0.03125, %v3144_v22  ;;  %v3141_v55 = vpop.xlane.xlu0 %3140 }
0x1392   : > { %v3145_v56 = vmul.f32 0.03125, %v3141_v55 }
0x1393   : > { %v3148_v57 = vadd.f32 1e-06, %v3146_v54 }
0x1394   : > { %v3147_v58 = vadd.f32 1e-06, %v3145_v56 }
0x1395   : > { %6573 = vrsqrt.f32 %v3148_v57 }
0x1396   : > { %6575 = vrsqrt.f32 %v3147_v58 }
0x139f   : > { %v6574_v24 = vpop.eup %6573 }
0x13a0   : > { %v6576_v60 = vpop.eup %6575  ;;  %v3152_v61 = vmul.f32 %v6574_v24, %v3136_v41 }
0x13a1   : > { %v3151_v63 = vmul.f32 %v6576_v60, %v3135_v4 }
0x13a2   : > { %v3160_v1 = vmul.f32 %v5746_v59, %v3152_v61 }
0x13a3   : > { %v3159_v2 = vmul.f32 %v5746_v59, %v3151_v63 }
0x13a4   : > { %v3168_v5 = vadd.f32 %v5747_v62, %v3160_v1 }
0x13a5   : > { %v3167_v6 = vadd.f32 %v5747_v62, %v3159_v2 }
0x13a7   : > { %6164 = vmatprep.mubr.msk.f32.mxu0 %vm1055_vm1, %v3167_v6 }
0x13a8   : > { %6165 = vmatmul.mubr.msk.f32.vlgmr.msra.gmra.mrb[14].mxu0 %vm1055_vm1, %v3168_v5 }
0x13a9   : > { %6169 = vmatprep.mubr.msk.f32.mxu0 %vm6629_vm2, %v6628_v19 }
0x147b   : > { %v6166_v8 = vpop.f32.mrb[14].mxu0 }
0x147c   : > { %v7158_v9 = vadd.f32 %v6166_v8, %v5753_v7  ;;  %v3254_v10 = vpop.f32.mrb[15].mxu0 }
0x147d   : > { %v7160_v11 = vadd.f32 %v5753_v7, %v3254_v10 }
0x147e   : > { %3346 = vrot.lane.b32.xlu1 %v7158_v9, %s7491_s4 }
0x147f   : > { %3269 = vrot.lane.b32.xlu0 %v7160_v11, %s7491_s4  ;;  %s7497_s4 = smov 112  }
0x14f0   : > { %v3347_v12 = vpop.permute.xlu1 %3346 }
0x14f1   : > { %v3270_v47 = vpop.permute.xlu0 %3269 }
0x14f2   : > { %6168 = vmatpush3.xpose.msk.msra.mxu0 %vm1198_vm3, %v3270_v47 }
0x14f3   : > { %6172 = vmatprep.subr.mxu0 %v6628_v19 }
0x14f5   : > { %6170 = vmatmul.mubr.msk.f32.vlgmr.msra.gmra.mrb[16].mxu0 %vm1198_vm3, %v7160_v11 }
0x14f6   : > { %6173 = vmatpush3.xpose.msk.msra.mxu0 %vm1198_vm3, %v3347_v12  ;;  %6174 = vmatprep.mubr.msk.f32.mxu0 %vm6629_vm2, %v6628_v19 }
0x14f7   : > { %6177 = vmatprep.subr.mxu0 %v6628_v19 }
0x14f9   : > { %6175 = vmatmul.mubr.msk.f32.vlgmr.msra.gmra.mrb[18].mxu0 %vm1198_vm3, %v7158_v9 }
0x14fa   : > { %6179 = vmatprep.mubr.msk.f32.mxu0 %vm6629_vm2, %v6628_v19 }
0x15c8   : > { %v3341_v43 = vpop.f32.mrb[16].mxu0 }
0x15c9   : > { %v3422_v13 = vmul.f32 0.35355338, %v3341_v43  ;;  %v6171_v14 = vpop.f32.mrb[17].mxu0 }
0x15cb   : > { %v3424_v15 = vadd.f32 %v3422_v13, %v6897_v31 }
0x15cc   : > { %v3418_v16 = vpop.f32.mrb[18].mxu0 }
0x15cd   : > { %v3423_v17 = vmul.f32 0.35355338, %v3418_v16  ;;  %v6176_v18 = vpop.f32.mrb[19].mxu0  ;;  %v3426_v20 = vsel %vm1198_vm3, %v3424_v15, -inf }
0x15ce   : > { %3427 = vmax.xlane.f32.xlu1 %v3426_v20 }
0x15cf   : > { %v3425_v21 = vadd.f32 %v3423_v17, %v6897_v31 }
0x15d1   : > { %v3429_v23 = vsel %vm1198_vm3, %v3425_v21, -inf }
0x15d2   : > { %3430 = vmax.xlane.f32.xlu0 %v3429_v23 }
0x15df   : > { %3524 = vrot.lane.b32.xlu1 %v7158_v9, %s7492_s1 }
0x15e3   : > { %3602 = vrot.lane.b32.xlu1 %v7160_v11, %s7493_s28 }
0x15e7   : > { %3600 = vrot.lane.b32.xlu1 %v7160_v11, %s7494_s5 }
0x165b   : > { %v3428_v25 = vpop.xlane.xlu1 %3427 }
0x165c   : > { %v3432_v26 = vsub.f32 %v3424_v15, %v3428_v25 }
0x165e   : > { %v3434_v27 = vmul.f32 1.442695, %v3432_v26 }
0x165f   : > { %v3431_v28 = vpop.xlane.xlu0 %3430  ;;  %v3525_v38 = vpop.permute.xlu1 %3524 }
0x1660   : > { %6577 = vpow2.f32 %v3434_v27  ;;  %v3433_v29 = vsub.f32 %v3425_v21, %v3431_v28 }
0x1662   : > { %v3436_v30 = vmul.f32 1.442695, %v3433_v29 }
0x1663   : > { %v3603_v39 = vpop.permute.xlu1 %3602 }
0x1664   : > { %6579 = vpow2.f32 %v3436_v30 }
0x1667   : > { %v3601_v40 = vpop.permute.xlu1 %3600 }
0x166a   : > { %v6578_v32 = vpop.eup %6577 }
0x166b   : > { %v3438_v33 = vsel %vm1198_vm3, %v6578_v32, 0.0 }
0x166c   : > { %3439 = vadd.xlane.f32.xlu0 %v3438_v33 }
0x166e   : > { %v6580_v36 = vpop.eup %6579 }
0x166f   : > { %v3441_v37 = vsel %vm1198_vm3, %v6580_v36, 0.0 }
0x1670   : > { %3442 = vadd.xlane.f32.xlu1 %v3441_v37 }
0x1681   : > { %3678 = vrot.lane.b32.xlu1 %v7158_v9, %s7494_s5  ;;  %s7500_s5 = smov 104  }
0x1682   : > { %3448 = vrot.lane.b32.xlu0 %v7160_v11, %s7492_s1  ;;  %s7498_s1 = smov 48  }
0x1685   : > { %4098 = vrot.lane.b32.xlu1 %v7160_v11, %s7495_s27 }
0x1686   : > { %3680 = vrot.lane.b32.xlu0 %v7158_v9, %s7493_s28  ;;  %s7499_s28 = smov 72  }
0x16f9   : > { %v3440_v3 = vpop.xlane.xlu0 %3439 }
0x16fa   : > { %6581 = vrcp.f32 %v3440_v3 }
0x16fd   : > { %v3443_v41 = vpop.xlane.xlu1 %3442  ;;  %v3449_v4 = vpop.permute.xlu0 %3448 }
0x16fe   : > { %6583 = vrcp.f32 %v3443_v41  ;;  %6178 = vmatpush3.msra.mxu0 %v3449_v4  ;;  %v5757_v41 = vld [vmem:[%s6977_s26 + $0x28] sm:$0xff]  ;;  %v5756_v4 = vld [vmem:[%s6977_s26 + $0x20] sm:$0xff] }
0x16ff   : > { %6182 = vmatprep.subr.mxu0 %v6628_v19 }
0x1701   : > { %v3681_v48 = vpop.permute.xlu0 %3680  ;;  %v3679_v49 = vpop.permute.xlu1 %3678 }
0x1704   : > { %v6582_v42 = vpop.eup %6581 }
0x1705   : > { %v3445_v44 = vmul.f32 %v6582_v42, %v6578_v32  ;;  %v4099_v7 = vpop.permute.xlu1 %4098 }
0x1707   : > { %6180 = vmatmul.mubr.msk.f32.vlgmr.msra.gmra.mrb[20].mxu0 %vm1198_vm3, %v3445_v44 }
0x1708   : > { %v6584_v45 = vpop.eup %6583  ;;  %6183 = vmatpush3.msra.mxu0 %v3525_v38  ;;  %6184 = vmatprep.mubr.msk.f32.mxu0 %vm6629_vm2, %v6628_v19 }
0x1709   : > { %v3447_v46 = vmul.f32 %v6584_v45, %v6580_v36  ;;  %6187 = vmatprep.subr.mxu0 %v6628_v19 }
0x170b   : > { %6185 = vmatmul.mubr.msk.f32.vlgmr.msra.gmra.mrb[22].mxu0 %vm1198_vm3, %v3447_v46 }
0x170c   : > { %6189 = vmatprep.mubr.msk.f32.mxu0 %vm6629_vm2, %v6628_v19 }
0x170f   : > { %6188 = vmatpush3.xpose.msk.msra.mxu0 %vm1198_vm3, %v3603_v39 }
0x1710   : > { %6192 = vmatprep.subr.mxu0 %v6628_v19 }
0x1712   : > { %6190 = vmatmul.mubr.msk.f32.vlgmr.msra.gmra.mrb[24].mxu0 %vm1198_vm3, %v3601_v40 }
0x1713   : > { %6193 = vmatpush3.xpose.msk.msra.mxu0 %vm1198_vm3, %v3681_v48  ;;  %6194 = vmatprep.mubr.msk.f32.mxu0 %vm6629_vm2, %v6628_v19 }
0x1714   : > { %6202 = vmatprep.subr.mxu0 %v6628_v19 }
0x1716   : > { %6195 = vmatmul.mubr.msk.f32.vlgmr.msra.gmra.mrb[26].mxu0 %vm1198_vm3, %v3679_v49 }
0x1717   : > { %6204 = vmatprep.mubr.msk.f32.mxu0 %vm6629_vm2, %v6628_v19 }
0x17da   : > { %v7216_v50 = vpop.f32.mrb[20].mxu0 }
0x17db   : > { %v6181_v51 = vpop.f32.mrb[21].mxu0 }
0x17de   : > { %v7218_v52 = vpop.f32.mrb[22].mxu0 }
0x17df   : > { %v6186_v53 = vpop.f32.mrb[23].mxu0 }
0x17e5   : > { %v3674_v22 = vpop.f32.mrb[24].mxu0 }
0x17e6   : > { %v6191_v54 = vpop.f32.mrb[25].mxu0  ;;  %v3756_v2 = vmul.f32 0.35355338, %v3674_v22 }
0x17e8   : > { %v3758_v5 = vadd.f32 %v3756_v2, %v6897_v31 }
0x17e9   : > { %v3752_v55 = vpop.f32.mrb[26].mxu0 }
0x17ea   : > { %v3757_v56 = vmul.f32 0.35355338, %v3752_v55  ;;  %v6196_v57 = vpop.f32.mrb[27].mxu0  ;;  %v3760_v6 = vsel %vm1198_vm3, %v3758_v5, -inf }
0x17ec   : > { %v3759_v58 = vadd.f32 %v3757_v56, %v6897_v31 }
0x17ee   : > { %v3763_v24 = vsel %vm1198_vm3, %v3759_v58, -inf }
0x17ef   : > { %3764 = vmax.xlane.f32.xlu0 %v3763_v24  ;;  %v5758_v24 = vld [vmem:[%s6977_s26 + $0x30] sm:$0xff] }
0x1805   : > { %3858 = vrot.lane.b32.xlu0 %v7158_v9, %s7496_s7 }
0x1809   : > { %4096 = vrot.lane.b32.xlu0 %v7160_v11, %s7497_s4 }
0x180d   : > { %4174 = vrot.lane.b32.xlu0 %v7158_v9, %s7497_s4 }
0x187c   : > { %v3765_v59 = vpop.xlane.xlu0 %3764 }
0x187d   : > { %v3767_v60 = vsub.f32 %v3759_v58, %v3765_v59 }
0x187f   : > { %v3770_v61 = vmul.f32 1.442695, %v3767_v60 }
0x1880   : > { %v3859_v62 = vpop.permute.xlu0 %3858 }
0x1881   : > { %6585 = vpow2.f32 %v3770_v61  ;;  %6203 = vmatpush3.msra.mxu0 %v3859_v62 }
0x1882   : > { %6217 = vmatprep.subr.mxu0 %v6628_v19 }
0x1884   : > { %v4097_v12 = vpop.permute.xlu0 %4096 }
0x1888   : > { %v4175_v13 = vpop.permute.xlu0 %4174 }
0x188b   : > { %v6586_v63 = vpop.eup %6585 }
0x188c   : > { %v3775_v1 = vsel %vm1198_vm3, %v6586_v63, 0.0 }
0x188d   : > { %3776 = vadd.xlane.f32.xlu1 %v3775_v1 }
0x189e   : > { %4176 = vrot.lane.b32.xlu1 %v7158_v9, %s7495_s27  ;;  %s7501_s27 = smov 40  }
0x18c2   : > { %3761 = vmax.xlane.f32.xlu1 %v3760_v6 }
0x191a   : > { %v3777_v8 = vpop.xlane.xlu1 %3776 }
0x191b   : > { %6587 = vrcp.f32 %v3777_v8 }
0x191e   : > { %v4177_v43 = vpop.permute.xlu1 %4176 }
0x1925   : > { %v6588_v10 = vpop.eup %6587 }
0x1926   : > { %v3781_v47 = vmul.f32 %v6588_v10, %v6586_v63 }
0x1928   : > { %6205 = vmatmul.mubr.msk.f32.vlgmr.msra.gmra.mrb[28].mxu0 %vm1198_vm3, %v3781_v47 }
0x1929   : > { %6218 = vmatpush3.xpose.msk.msra.mxu0 %vm1198_vm3, %v4099_v7  ;;  %6219 = vmatprep.mubr.msk.f32.mxu0 %vm6629_vm2, %v6628_v19 }
0x192a   : > { %6222 = vmatprep.subr.mxu0 %v6628_v19 }
0x192c   : > { %6220 = vmatmul.mubr.msk.f32.vlgmr.msra.gmra.mrb[30].mxu0 %vm1198_vm3, %v4097_v12 }
0x192d   : > { %6223 = vmatpush3.xpose.msk.msra.mxu0 %vm1198_vm3, %v4177_v43  ;;  %6224 = vmatprep.mubr.msk.f32.mxu0 %vm6629_vm2, %v6628_v19 }
0x192e   : > { %6232 = vmatprep.subr.mxu0 %v6628_v19 }
0x1930   : > { %6225 = vmatmul.mubr.msk.f32.vlgmr.msra.gmra.mrb[32].mxu0 %vm1198_vm3, %v4175_v13 }
0x1931   : > { %6234 = vmatprep.mubr.msk.f32.mxu0 %vm6629_vm2, %v6628_v19 }
0x194f   : > { %v3762_v14 = vpop.xlane.xlu1 %3761 }
0x1950   : > { %v3766_v15 = vsub.f32 %v3758_v5, %v3762_v14 }
0x1952   : > { %v3768_v16 = vmul.f32 1.442695, %v3766_v15 }
0x1954   : > { %6589 = vpow2.f32 %v3768_v16 }
0x195e   : > { %v6590_v17 = vpop.eup %6589 }
0x195f   : > { %v3772_v18 = vsel %vm1198_vm3, %v6590_v17, 0.0 }
0x1960   : > { %3773 = vadd.xlane.f32.xlu0 %v3772_v18 }
0x1976   : > { %3782 = vrot.lane.b32.xlu0 %v7160_v11, %s7496_s7 }
0x197a   : > { %4354 = vrot.lane.b32.xlu0 %v7158_v9, %s7498_s1 }
0x197e   : > { %4515 = vrot.lane.b32.xlu0 %v7160_v11, %s7499_s28 }
0x1982   : > { %4593 = vrot.lane.b32.xlu0 %v7158_v9, %s7499_s28 }
0x1986   : > { %4513 = vrot.lane.b32.xlu0 %v7160_v11, %s7500_s5 }
0x19ed   : > { %v3774_v20 = vpop.xlane.xlu0 %3773 }
0x19ee   : > { %6591 = vrcp.f32 %v3774_v20 }
0x19f1   : > { %v3783_v21 = vpop.permute.xlu0 %3782 }
0x19f2   : > { %6198 = vmatpush3.msra.mxu1 %v3783_v21 }
0x19f3   : > { %6207 = vmatprep.subr.mxu1 %v5757_v41 }
0x19f5   : > { %v4355_v23 = vpop.permute.xlu0 %4354 }
0x19f6   : > { %6233 = vmatpush3.msra.mxu0 %v4355_v23 }
0x19f7   : > { %6242 = vmatprep.subr.mxu0 %v6628_v19 }
0x19f8   : > { %v6592_v25 = vpop.eup %6591 }
0x19f9   : > { %v3779_v26 = vmul.f32 %v6592_v25, %v6590_v17  ;;  %v4516_v60 = vpop.permute.xlu0 %4515 }
0x19fb   : > { %6200 = vmatmul.mubr.msk.f32.vlgmr.msra.gmra.mrb[30].mxu1 %vm1198_vm3, %v3779_v26  ;;  %v3930_v27 = vpop.f32.mrb[28].mxu0 }
0x19fc   : > { %v6206_v28 = vpop.f32.mrb[29].mxu0  ;;  %6208 = vmatpush3.msra.mxu1 %v5757_v41 }
0x19fd   : > { %6212 = vmatprep.subr.mxu1 %v5756_v4  ;;  %v4594_v63 = vpop.permute.xlu0 %4593 }
0x19ff   : > { %v4170_v29 = vpop.f32.mrb[30].mxu0 }
0x1a00   : > { %v4252_v30 = vmul.f32 0.35355338, %v4170_v29  ;;  %v6221_v32 = vpop.f32.mrb[31].mxu0 }
0x1a01   : > { %v4514_v1 = vpop.permute.xlu0 %4513 }
0x1a02   : > { %v4254_v33 = vadd.f32 %v4252_v30, %v6897_v31 }
0x1a03   : > { %v4248_v36 = vpop.f32.mrb[32].mxu0 }
0x1a04   : > { %v4253_v37 = vmul.f32 0.35355338, %v4248_v36  ;;  %v6226_v38 = vpop.f32.mrb[33].mxu0  ;;  %v4256_v39 = vsel %vm1198_vm3, %v4254_v33, -inf }
0x1a05   : > { %4257 = vmax.xlane.f32.xlu1 %v4256_v39 }
0x1a06   : > { %v4255_v40 = vadd.f32 %v4253_v37, %v6897_v31 }
0x1a08   : > { %v4259_v3 = vsel %vm1198_vm3, %v4255_v40, -inf }
0x1a09   : > { %4260 = vmax.xlane.f32.xlu1 %v4259_v3  ;;  %v5759_v3 = vld [vmem:[%s6977_s26 + $0x38] sm:$0xff] }
0x1a92   : > { %v4258_v42 = vpop.xlane.xlu1 %4257 }
0x1a93   : > { %v4262_v44 = vsub.f32 %v4254_v33, %v4258_v42 }
0x1a95   : > { %v4264_v45 = vmul.f32 1.442695, %v4262_v44  ;;  %v5793_v44 = vld [vmem:[%s7050_s23 + $0x1] ss:$0 sm:$0xff] }
0x1a96   : > { %v4261_v46 = vpop.xlane.xlu1 %4260 }
0x1a97   : > { %6593 = vpow2.f32 %v4264_v45  ;;  %v4263_v48 = vsub.f32 %v4255_v40, %v4261_v46 }
0x1a99   : > { %v4266_v49 = vmul.f32 1.442695, %v4263_v48 }
0x1a9b   : > { %6595 = vpow2.f32 %v4266_v49 }
0x1aa1   : > { %v6594_v51 = vpop.eup %6593 }
0x1aa2   : > { %v4268_v53 = vsel %vm1198_vm3, %v6594_v51, 0.0 }
0x1aa3   : > { %4269 = vadd.xlane.f32.xlu1 %v4268_v53 }
0x1aa5   : > { %v6596_v22 = vpop.eup %6595 }
0x1aa6   : > { %v4271_v54 = vsel %vm1198_vm3, %v6596_v22, 0.0 }
0x1aa7   : > { %4272 = vadd.xlane.f32.xlu1 %v4271_v54 }
0x1ab8   : > { %4278 = vrot.lane.b32.xlu1 %v7160_v11, %s7498_s1  ;;  %s928_s1 = scalar_lea.vmem %s7446_s15, %s7503_s25 }
0x1abc   : > { %4591 = vrot.lane.b32.xlu1 %v7158_v9, %s7500_s5 }
0x1ace   : > { %v3854_v55 = vpop.f32.mrb[30].mxu1 }
0x1acf   : > { %v6201_v56 = vpop.f32.mrb[31].mxu1  ;;  %6209 = vmatprep.mubr.msk.f32.mxu1 %vm1198_vm3, %v3854_v55 }
0x1ad0   : > { %6210 = vmatmul.mubr.msk.f32.vlgmr.msra.gmra.mrb[32].mxu1 %vm1198_vm3, %v3930_v27 }
0x1ad1   : > { %6214 = vmatprep.mubr.msk.f32.mxu1 %vm1198_vm3, %v7216_v50  ;;  %6213 = vmatpush3.msra.mxu1 %v5756_v4 }
0x1ad2   : > { %6227 = vmatprep.subr.mxu1 %v6628_v19 }
0x1ad8   : > { %6215 = vmatmul.mubr.msk.f32.vlgmr.msra.gmra.mrb[32].mxu1 %vm1198_vm3, %v7218_v52 }
0x1ad9   : > { %6229 = vmatprep.mubr.msk.f32.mxu1 %vm6629_vm2, %v6628_v19 }
0x1b30   : > { %v4270_v57 = vpop.xlane.xlu1 %4269 }
0x1b31   : > { %6597 = vrcp.f32 %v4270_v57 }
0x1b34   : > { %v4273_v58 = vpop.xlane.xlu1 %4272 }
0x1b35   : > { %6599 = vrcp.f32 %v4273_v58 }
0x1b38   : > { %v4279_v59 = vpop.permute.xlu1 %4278 }
0x1b39   : > { %6228 = vmatpush3.msra.mxu1 %v4279_v59 }
0x1b3a   : > { %6237 = vmatprep.subr.mxu1 %v5758_v24 }
0x1b3b   : > { %v6598_v61 = vpop.eup %6597 }
0x1b3c   : > { %v4275_v50 = vmul.f32 %v6598_v61, %v6594_v51  ;;  %v4592_v8 = vpop.permute.xlu1 %4591 }
0x1b3e   : > { %6230 = vmatmul.mubr.msk.f32.vlgmr.msra.gmra.mrb[34].mxu1 %vm1198_vm3, %v4275_v50  ;;  %v5798_v50 = vld [vmem:[%s7071_s24 + $0x20] sm:$0xff] }
0x1b3f   : > { %v6600_v62 = vpop.eup %6599  ;;  %6238 = vmatpush3.msra.mxu1 %v5758_v24 }
0x1b40   : > { %v4277_v52 = vmul.f32 %v6600_v62, %v6596_v22  ;;  %6247 = vmatprep.subr.mxu1 %v6628_v19  ;;  %v5799_v62 = vld [vmem:[%s7071_s24 + $0x28] sm:$0xff] }
0x1b42   : > { %6235 = vmatmul.mubr.msk.f32.vlgmr.msra.gmra.mrb[34].mxu0 %vm1198_vm3, %v4277_v52  ;;  %v5800_v52 = vld [vmem:[%s7071_s24 + $0x30] sm:$0xff] }
0x1b43   : > { %6243 = vmatpush3.xpose.msk.msra.mxu0 %vm1198_vm3, %v4516_v60  ;;  %6244 = vmatprep.mubr.msk.f32.mxu0 %vm6629_vm2, %v6628_v19 }
0x1b44   : > { %6252 = vmatprep.subr.mxu0 %v6628_v19 }
0x1b46   : > { %6245 = vmatmul.mubr.msk.f32.vlgmr.msra.gmra.mrb[36].mxu0 %vm1198_vm3, %v4514_v1  ;;  %v5801_v1 = vld [vmem:[%s7071_s24 + $0x38] sm:$0xff] }
0x1b47   : > { %6254 = vmatprep.mubr.msk.f32.mxu0 %vm6629_vm2, %v6628_v19 }
0x1c11   : > { %v4350_v2 = vpop.f32.mrb[34].mxu1 }
0x1c12   : > { %v6231_v5 = vpop.f32.mrb[35].mxu1  ;;  %6239 = vmatprep.mubr.msk.f32.mxu1 %vm1198_vm3, %v4350_v2  ;;  %v6439_v2 = vpack.c.bf16 %v5801_v1, %v5800_v52 }
0x1c15   : > { %v4426_v6 = vpop.f32.mrb[34].mxu0 }
0x1c16   : > { %v6236_v7 = vpop.f32.mrb[35].mxu0  ;;  %6240 = vmatmul.mubr.msk.f32.vlgmr.msra.gmra.mrb[32].mxu1 %vm1198_vm3, %v4426_v6 }
0x1c17   : > { %6248 = vmatpush3.xpose.msk.msra.mxu1 %vm1198_vm3, %v4594_v63  ;;  %6249 = vmatprep.mubr.msk.f32.mxu1 %vm6629_vm2, %v6628_v19  ;;  %v6435_v63 = vpack.c.bf16 %v5799_v62, %v5798_v50 }
0x1c18   : > { %6257 = vmatprep.subr.mxu1 %v6628_v19 }
0x1c19   : > { %v4587_v10 = vpop.f32.mrb[36].mxu0 }
0x1c1a   : > { %v4669_v47 = vmul.f32 0.35355338, %v4587_v10  ;;  %v6246_v12 = vpop.f32.mrb[37].mxu0  ;;  %6250 = vmatmul.mubr.msk.f32.vlgmr.msra.gmra.mrb[36].mxu1 %vm1198_vm3, %v4592_v8 }
0x1c1b   : > { %6259 = vmatprep.mubr.msk.f32.mxu1 %vm6629_vm2, %v6628_v19 }
0x1c1c   : > { %v4671_v43 = vadd.f32 %v4669_v47, %v6897_v31 }
0x1c1e   : > { %v4673_v13 = vsel %vm1198_vm3, %v4671_v43, -inf }
0x1c1f   : > { %4674 = vmax.xlane.f32.xlu0 %v4673_v13 }
0x1cac   : > { %v4675_v14 = vpop.xlane.xlu0 %4674 }
0x1cad   : > { %v4679_v15 = vsub.f32 %v4671_v43, %v4675_v14  ;;  %v5796_v43 = vld [vmem:[%s7081_s29 + $0x1] ss:$0 sm:$0xff] }
0x1caf   : > { %v4681_v16 = vmul.f32 1.442695, %v4679_v15 }
0x1cb1   : > { %6601 = vpow2.f32 %v4681_v16  ;;  %v5797_v16 = vld [vmem:[%s7087_s6 + $0x1] ss:$0 sm:$0xff] }
0x1cbb   : > { %v6602_v17 = vpop.eup %6601 }
0x1cbc   : > { %v4685_v18 = vsel %vm1198_vm3, %v6602_v17, 0.0 }
0x1cbd   : > { %4686 = vadd.xlane.f32.xlu0 %v4685_v18 }
0x1ced   : > { %v4665_v20 = vpop.f32.mrb[36].mxu1 }
0x1cee   : > { %v4670_v21 = vmul.f32 0.35355338, %v4665_v20  ;;  %v6251_v23 = vpop.f32.mrb[37].mxu1 }
0x1cef   : > { %v5806_v23 = vld [vmem:[%s7097_s22 + $0x80] sm:$0xff] }
0x1cf0   : > { %v4672_v25 = vadd.f32 %v4670_v21, %v6897_v31 }
0x1cf2   : > { %v4676_v26 = vsel %vm1198_vm3, %v4672_v25, -inf }
0x1cf3   : > { %4677 = vmax.xlane.f32.xlu1 %v4676_v26 }
0x1d04   : > { %4771 = vrot.lane.b32.xlu1 %v7158_v9, %s7501_s27 }
0x1d4a   : > { %v4687_v31 = vpop.xlane.xlu0 %4686 }
0x1d80   : > { %v4678_v27 = vpop.xlane.xlu1 %4677 }
0x1d81   : > { %v4680_v28 = vsub.f32 %v4672_v25, %v4678_v27  ;;  %v5807_v25 = vld [vmem:[%s7097_s22 + $0x88] sm:$0xff]  ;;  %v5808_v27 = vld [vmem:[%s7097_s22 + $0x90] sm:$0xff] }
0x1d82   : > { %v6443_v26 = vpack.c.bf16 %v5807_v25, %v5806_v23 }
0x1d83   : > { %v4683_v29 = vmul.f32 1.442695, %v4680_v28  ;;  %v5809_v28 = vld [vmem:[%s7097_s22 + $0x98] sm:$0xff] }
0x1d84   : > { %v4772_v30 = vpop.permute.xlu1 %4771 }
0x1d85   : > { %6603 = vpow2.f32 %v4683_v29  ;;  %6258 = vmatpush3.msra.mxu1 %v4772_v30  ;;  %v6447_v29 = vpack.c.bf16 %v5809_v28, %v5808_v27  ;;  %v5810_v30 = vld [vmem:[%s7097_s22 + $0xa0] sm:$0xff] }
0x1d86   : > { %6605 = vrcp.f32 %v4687_v31  ;;  %6262 = vmatprep.subr.mxu1 %v5759_v3  ;;  %v5812_v31 = vld [vmem:[%s7097_s22 + $0xb0] sm:$0xff] }
0x1d8f   : > { %v6604_v32 = vpop.eup %6603 }
0x1d90   : > { %v4688_v33 = vsel %vm1198_vm3, %v6604_v32, 0.0  ;;  %v6606_v37 = vpop.eup %6605 }
0x1d91   : > { %4689 = vadd.xlane.f32.xlu0 %v4688_v33  ;;  %v4692_v9 = vmul.f32 %v6606_v37, %v6602_v17 }
0x1da7   : > { %4695 = vrot.lane.b32.xlu0 %v7160_v11, %s7501_s27  ;;  %s931_s27 = scalar_lea.vmem %s7447_s16, %s7503_s25 }
0x1e1e   : > { %v4690_v36 = vpop.xlane.xlu0 %4689 }
0x1e1f   : > { %6607 = vrcp.f32 %v4690_v36  ;;  %v5813_v36 = vld [vmem:[%s7097_s22 + $0xb8] sm:$0xff] }
0x1e20   : > { %v6455_v37 = vpack.c.bf16 %v5813_v36, %v5812_v31  ;;  %v5259_v31 = vld [vmem:[%s7448_s17 + $0x18] sm:$0xff] }
0x1e22   : > { %v4696_v38 = vpop.permute.xlu0 %4695 }
0x1e23   : > { %6253 = vmatpush3.msra.mxu0 %v4696_v38  ;;  %v5815_v38 = vld [vmem:[%s7097_s22 + $0xc8] sm:$0xff] }
0x1e24   : > { %6255 = vmatmul.mubr.msk.f32.vlgmr.msra.gmra.mrb[38].mxu0 %vm1198_vm3, %v4692_v9  ;;  %6436 = vmatprep.subr.bf16.mxu0 %v6435_v63  ;;  %v5814_v9 = vld [vmem:[%s7097_s22 + $0xc0] sm:$0xff] }
0x1e25   : > { %6438 = vmatpush3.bf16.msra.mxu0 %v6435_v63 }
0x1e26   : > { %6440 = vmatprep.subr.bf16.mxu0 %v6439_v2 }
0x1e29   : > { %v6608_v39 = vpop.eup %6607  ;;  %6442 = vmatpush3.bf16.msra.mxu0 %v6439_v2 }
0x1e2a   : > { %v4694_v40 = vmul.f32 %v6608_v39, %v6604_v32  ;;  %6475 = vmatprep.subr.bf16.mxu0 %v6627_v0  ;;  %v5811_v32 = vld [vmem:[%s7097_s22 + $0xa8] sm:$0xff]  ;;  %v5816_v39 = vld [vmem:[%s7097_s22 + $0xd0] sm:$0xff] }
0x1e2b   : > { %v6451_v33 = vpack.c.bf16 %v5811_v32, %v5810_v30  ;;  %v5257_v30 = vld [vmem:[%s7448_s17 + $0x8] sm:$0xff]  ;;  %v5258_v32 = vld [vmem:[%s7448_s17 + $0x10] sm:$0xff] }
0x1e2c   : > { %6260 = vmatmul.mubr.msk.f32.vlgmr.msra.gmra.mrb[38].mxu1 %vm1198_vm3, %v4694_v40  ;;  %v6459_v40 = vpack.c.bf16 %v5815_v38, %v5814_v9  ;;  %v6479_v36 = vpack.c.bf16 %v5259_v31, %v5258_v32 }
0x1e2d   : > { %6263 = vmatpush3.msra.mxu1 %v5759_v3  ;;  %v5817_v3 = vld [vmem:[%s7097_s22 + $0xd8] sm:$0xff] }
0x1e2e   : > { %6444 = vmatprep.subr.bf16.mxu1 %v6443_v26 }
0x1ef7   : > { %v4767_v41 = vpop.f32.mrb[38].mxu0 }
0x1ef8   : > { %v6256_v11 = vpop.f32.mrb[39].mxu0  ;;  %6264 = vmatprep.mubr.msk.f32.mxu1 %vm1198_vm3, %v4767_v41  ;;  %v6463_v41 = vpack.c.bf16 %v5817_v3, %v5816_v39 }
0x1ef9   : > { %v5818_v11 = vld [vmem:[%s7097_s22 + $0xe0] sm:$0xff] }
0x1eff   : > { %v4843_v4 = vpop.f32.mrb[38].mxu1 }
0x1f00   : > { %v6261_v42 = vpop.f32.mrb[39].mxu1  ;;  %6265 = vmatmul.mubr.msk.f32.vlgmr.msra.gmra.mrb[32].mxu1 %vm1198_vm3, %v4843_v4  ;;  %v5819_v4 = vld [vmem:[%s7097_s22 + $0xe8] sm:$0xff] }
0x1f01   : > { %6446 = vmatpush3.bf16.msra.mxu1 %v6443_v26  ;;  %v6467_v42 = vpack.c.bf16 %v5819_v4, %v5818_v11 }
0x1f02   : > { %6448 = vmatprep.subr.bf16.mxu1 %v6447_v29 }
0x1f05   : > { %6450 = vmatpush3.bf16.msra.mxu1 %v6447_v29 }
0x1f06   : > { %6452 = vmatprep.subr.bf16.mxu1 %v6451_v33 }
0x1f09   : > { %6454 = vmatpush3.bf16.msra.mxu1 %v6451_v33 }
0x1f0a   : > { %6456 = vmatprep.subr.bf16.mxu1 %v6455_v37 }
0x1f0d   : > { %6458 = vmatpush3.bf16.msra.mxu1 %v6455_v37 }
0x1f0e   : > { %6460 = vmatprep.subr.bf16.mxu1 %v6459_v40 }
0x1f11   : > { %6462 = vmatpush3.bf16.msra.mxu1 %v6459_v40 }
0x1f12   : > { %6464 = vmatprep.subr.bf16.mxu1 %v6463_v41 }
0x1f15   : > { %6466 = vmatpush3.bf16.msra.mxu1 %v6463_v41  ;;  %v5824_v41 = vld [vmem:[%s928_s1] ss:$0 sm:$0xff] }
0x1f16   : > { %6468 = vmatprep.subr.bf16.mxu1 %v6467_v42 }
0x1f19   : > { %6470 = vmatpush3.bf16.msra.mxu1 %v6467_v42 }
0x1fd3   : > { %v6266_v45 = vpop.f32.mrb[32].mxu1 }
0x1fd4   : > { %v4939_v46 = vadd.f32 %v6266_v45, %v5793_v44  ;;  %v4919_v48 = vpop.f32.mrb[33].mxu1  ;;  %v5821_v45 = vld [vmem:[%s7097_s22 + $0xf8] sm:$0xff] }
0x1fd5   : > { %v4938_v49 = vadd.f32 %v5793_v44, %v4919_v48  ;;  %v5820_v44 = vld [vmem:[%s7097_s22 + $0xf0] sm:$0xff]  ;;  %v5803_v48 = vld [vmem:[%s7120_s3 + $0x1] ss:$0 sm:$0xff]  ;;  %s935_s3 = scalar_lea.vmem %s7452_s21, %s6846_s30 }
0x1fd6   : > { %v7318_v51 = vadd.f32 %v4939_v46, %v7133_v34  ;;  %v6471_v46 = vpack.c.bf16 %v5821_v45, %v5820_v44  ;;  %v5825_v44 = vld [vmem:[%s931_s27] ss:$0 sm:$0xff] }
0x1fd7   : > { %v7321_v53 = vadd.f32 %v4938_v49, %v7136_v35  ;;  %v5343_v45 = vld [vmem:[%s7450_s19] sm:$0xff] }
0x1fd8   : > { %v4949_v22 = vsel %vm1055_vm1, %v7318_v51, 0.0  ;;  %6472 = vmatprep.subr.bf16.mxu1 %v6471_v46 }
0x1fd9   : > { %4950 = vadd.xlane.f32.xlu0 %v4949_v22  ;;  %v4946_v54 = vsel %vm1055_vm1, %v7321_v53, 0.0  ;;  %6474 = vmatpush3.bf16.msra.mxu1 %v6471_v46  ;;  %v5344_v46 = vld [vmem:[%s7450_s19 + $0x8] sm:$0xff] }
0x1fda   : > { %4947 = vadd.xlane.f32.xlu1 %v4946_v54 }
0x2066   : > { %v4951_v55 = vpop.xlane.xlu0 %4950 }
0x2067   : > { %v4953_v56 = vmul.f32 0.03125, %v4951_v55  ;;  %v4948_v57 = vpop.xlane.xlu1 %4947 }
0x2068   : > { %v4952_v34 = vmul.f32 0.03125, %v4948_v57 }
0x2069   : > { %v4955_v58 = vsub.f32 %v7318_v51, %v4953_v56 }
0x206a   : > { %v4954_v35 = vsub.f32 %v7321_v53, %v4952_v34 }
0x206b   : > { %v4957_v24 = vmul.f32 %v4955_v58, %v4955_v58 }
0x206c   : > { %v4956_v59 = vmul.f32 %v4954_v35, %v4954_v35 }
0x206d   : > { %v4961_v60 = vsel %vm1055_vm1, %v4957_v24, 0.0 }
0x206e   : > { %4962 = vadd.xlane.f32.xlu1 %v4961_v60  ;;  %v4958_v61 = vsel %vm1055_vm1, %v4956_v59, 0.0 }
0x206f   : > { %4959 = vadd.xlane.f32.xlu0 %v4958_v61 }
0x20fb   : > { %v4963_v5 = vpop.xlane.xlu1 %4962 }
0x20fc   : > { %v4965_v6 = vmul.f32 0.03125, %v4963_v5  ;;  %v4960_v7 = vpop.xlane.xlu0 %4959 }
0x20fd   : > { %v4964_v8 = vmul.f32 0.03125, %v4960_v7 }
0x20fe   : > { %v4967_v10 = vadd.f32 1e-06, %v4965_v6 }
0x20ff   : > { %v4966_v47 = vadd.f32 1e-06, %v4964_v8  ;;  %v5823_v8 = vld [vmem:[%s7129_s0 + $0x1] ss:$0 sm:$0xff] }
0x2100   : > { %6609 = vrsqrt.f32 %v4967_v10 }
0x2101   : > { %6611 = vrsqrt.f32 %v4966_v47 }
0x210a   : > { %v6610_v12 = vpop.eup %6609 }
0x210b   : > { %v6612_v13 = vpop.eup %6611  ;;  %v4971_v14 = vmul.f32 %v6610_v12, %v4955_v58 }
0x210c   : > { %v4970_v15 = vmul.f32 %v6612_v13, %v4954_v35 }
0x210d   : > { %v4979_v17 = vmul.f32 %v5796_v43, %v4971_v14 }
0x210e   : > { %v4978_v18 = vmul.f32 %v5796_v43, %v4970_v15 }
0x210f   : > { %v4987_v21 = vadd.f32 %v5797_v16, %v4979_v17 }
0x2110   : > { %v4986_v20 = vadd.f32 %v5797_v16, %v4978_v18 }
0x2112   : > { %6275 = vmatprep.mubr.msk.f32.mxu0 %vm1055_vm1, %v4986_v20 }
0x2113   : > { %6276 = vmatmul.mubr.msk.f32.vlgmr.msra.gmra.mrb[40].mxu0 %vm1055_vm1, %v4987_v21 }
0x2114   : > { %6321 = vmatprep.mubr.msk.f32.mxu0 %vm6629_vm2, %v6628_v19 }
0x21e6   : > { %v6277_v49 = vpop.f32.mrb[40].mxu0 }
0x21e7   : > { %v5079_v22 = vadd.f32 %v6277_v49, %v5803_v48  ;;  %v5073_v54 = vpop.f32.mrb[41].mxu0 }
0x21e8   : > { %v5074_v55 = vadd.f32 %v5803_v48, %v5073_v54  ;;  %v6482_v54 = vpack.c.bf16 %v5344_v46, %v5343_v45 }
0x21e9   : > { %v5083_v56 = vmul.f32 %v5079_v22, %v5079_v22 }
0x21ea   : > { %v5082_v57 = vmul.f32 %v5074_v55, %v5074_v55 }
0x21eb   : > { %v5085_v34 = vmul.f32 %v5083_v56, %v5079_v22  ;;  %v5346_v56 = vld [vmem:[%s7450_s19 + $0x18] sm:$0xff] }
0x21ec   : > { %v5084_v58 = vmul.f32 %v5082_v57, %v5074_v55 }
0x21ed   : > { %v5087_v35 = vmul.f32 0.044715, %v5085_v34 }
0x21ee   : > { %v5086_v24 = vmul.f32 0.044715, %v5084_v58  ;;  %v5347_v58 = vld [vmem:[%s7450_s19 + $0x20] sm:$0xff] }
0x21ef   : > { %v5089_v59 = vadd.f32 %v5087_v35, %v5079_v22  ;;  %v5348_v35 = vld [vmem:[%s7450_s19 + $0x28] sm:$0xff] }
0x21f0   : > { %v5088_v60 = vadd.f32 %v5086_v24, %v5074_v55  ;;  %v6488_v24 = vpack.c.bf16 %v5348_v35, %v5347_v58 }
0x21f1   : > { %v5091_v61 = vmul.f32 0.7978846, %v5089_v59  ;;  %v5350_v59 = vld [vmem:[%s7450_s19 + $0x38] sm:$0xff] }
0x21f2   : > { %v5090_v50 = vmul.f32 0.7978846, %v5088_v60 }
0x21f3   : > { %6613 = vtanh.f32 %v5091_v61  ;;  %v5826_v61 = vld [vmem:[%s7449_s18] ss:$0 sm:$0xff] }
0x21f4   : > { %6615 = vtanh.f32 %v5090_v50 }
0x21fd   : > { %v6614_v62 = vpop.eup %6613 }
0x21fe   : > { %v6616_v63 = vpop.eup %6615  ;;  %v5095_v52 = vadd.f32 1.0, %v6614_v62 }
0x21ff   : > { %v5094_v1 = vadd.f32 1.0, %v6616_v63 }
0x2200   : > { %v5097_v2 = vmul.f32 0.5, %v5095_v52 }
0x2201   : > { %v5096_v5 = vmul.f32 0.5, %v5094_v1 }
0x2202   : > { %v5099_v7 = vmul.f32 %v5097_v2, %v5079_v22 }
0x2203   : > { %v5098_v6 = vmul.f32 %v5096_v5, %v5074_v55  ;;  %v5345_v55 = vld [vmem:[%s7450_s19 + $0x10] sm:$0xff] }
0x2204   : > { %v6485_v34 = vpack.c.bf16 %v5346_v56, %v5345_v55 }
0x2205   : > { %6310 = vmatprep.mubr.f32.mxu1 %v5098_v6 }
0x2206   : > { %6311 = vmatmul.mubr.f32.vlgmr.msra.gmra.mrb[40].mxu1 %v5099_v7 }
0x22d9   : > { %v6312_v10 = vpop.f32.mrb[40].mxu1 }
0x22da   : > { %v5197_v47 = vadd.f32 %v6312_v10, %v5823_v8  ;;  %v5191_v12 = vpop.f32.mrb[41].mxu1 }
0x22db   : > { %v5192_v43 = vadd.f32 %v5823_v8, %v5191_v12 }
0x22dc   : > { %v5201_v13 = vadd.f32 %v5197_v47, %v7318_v51 }
0x22dd   : > { %v5200_v14 = vadd.f32 %v5192_v43, %v7321_v53  ;;  %v5256_v53 = vld [vmem:[%s7448_s17] sm:$0xff] }
0x22de   : > { %v5206_v15 = vrot.slane %v5201_v13, 7  ;;  %v6476_v33 = vpack.c.bf16 %v5257_v30, %v5256_v53 }
0x22e0   : > { %v5208_v16 = vsel %vm5207_vm5, %v5206_v15, %v5200_v14  ;;  %6477 = vmatpush3.bf16.msra.mxu0 %v6476_v33 }
0x22e1   : > { %v5211_v17 = vsel %vm5210_vm6, %v5208_v16, 0.0  ;;  %6478 = vmatprep.subr.bf16.mxu0 %v6627_v0 }
0x22e2   : > { %5212 = vadd.xlane.f32.xlu0 %v5211_v17 }
0x22e4   : > { %6480 = vmatpush3.bf16.msra.mxu0 %v6479_v36 }
0x22e5   : > { %6481 = vmatprep.subr.bf16.mxu0 %v6627_v0 }
0x236f   : > { %v5213_v18 = vpop.xlane.xlu0 %5212 }
0x2370   : > { %v5214_v20 = vmul.f32 0.03125, %v5213_v18 }
0x2372   : > { %v5216_v21 = vrot.slane %v5214_v20, 1  ;;  %v5219_v23 = vsub.f32 %v5200_v14, %v5214_v20 }
0x2374   : > { %v5220_v25 = vsub.f32 %v5201_v13, %v5216_v21  ;;  %v5221_v27 = vmul.f32 %v5219_v23, %v5219_v23 }
0x2376   : > { %v5222_v26 = vmul.f32 %v5220_v25, %v5220_v25 }
0x2378   : > { %v5225_v28 = vrot.slane %v5222_v26, 7 }
0x237a   : > { %v5226_v29 = vsel %vm5207_vm5, %v5225_v28, %v5221_v27 }
0x237b   : > { %v5228_v51 = vsel %vm5210_vm6, %v5226_v29, 0.0 }
0x237c   : > { %5229 = vadd.xlane.f32.xlu1 %v5228_v51 }
0x2409   : > { %v5230_v37 = vpop.xlane.xlu1 %5229 }
0x240a   : > { %v5231_v9 = vmul.f32 0.03125, %v5230_v37 }
0x240c   : > { %v5232_v38 = vadd.f32 1e-06, %v5231_v9 }
0x240e   : > { %6617 = vrsqrt.f32 %v5232_v38 }
0x2418   : > { %v6618_v39 = vpop.eup %6617 }
0x2419   : > { %v5235_v40 = vrot.slane %v6618_v39, 1  ;;  %v5238_v3 = vmul.f32 %v6618_v39, %v5219_v23 }
0x241b   : > { %v5239_v11 = vmul.f32 %v5235_v40, %v5220_v25  ;;  %v5246_v4 = vmul.f32 %v5824_v41, %v5238_v3 }
0x241d   : > { %v5247_v42 = vmul.f32 %v5824_v41, %v5239_v11  ;;  %v5254_v49 = vadd.f32 %v5825_v44, %v5246_v4 }
0x241f   : > { %v5255_v48 = vadd.f32 %v5825_v44, %v5247_v42 }
0x2421   : > { %v5269_v22 = vrot.slane %v5255_v48, 7 }
0x2423   : > { %v5270_v57 = vsel %vm5207_vm5, %v5269_v22, %v5254_v49 }
0x2424   : > { %6322 = vmatmul.mubr.msk.f32.vlgmr.msra.gmra.mrb[42].mxu0 %vm1055_vm1, %v5270_v57 }
0x2425   : > { %6483 = vmatpush3.bf16.msra.mxu0 %v6482_v54  ;;  %6340 = vmatprep.mubr.msk.f32.mxu0 %vm6629_vm2, %v6628_v19  ;;  %v5349_v19 = vld [vmem:[%s7450_s19 + $0x30] sm:$0xff] }
0x2426   : > { %6484 = vmatprep.subr.bf16.mxu0 %v6627_v0  ;;  %v6491_v60 = vpack.c.bf16 %v5350_v59, %v5349_v19 }
0x2429   : > { %6486 = vmatpush3.bf16.msra.mxu0 %v6485_v34 }
0x242a   : > { %6487 = vmatprep.subr.bf16.mxu0 %v6627_v0 }
0x242d   : > { %6489 = vmatpush3.bf16.msra.mxu0 %v6488_v24 }
0x242e   : > { %6490 = vmatprep.subr.bf16.mxu0 %v6627_v0  ;;  %v5828_v0 = vld [vmem:[%s7451_s20] ss:$0 sm:$0xff] }
0x2431   : > { %6492 = vmatpush3.bf16.msra.mxu0 %v6491_v60 }
0x24f7   : > { %v5339_v50 = vpop.f32.mrb[42].mxu0 }
0x24f8   : > { %v5340_v62 = vadd.f32 %v5826_v61, %v5339_v50  ;;  %v6323_v63 = vpop.f32.mrb[43].mxu0 }
0x24fa   : > { %6341 = vmatmul.mubr.msk.f32.vlgmr.msra.gmra.mrb[44].mxu0 %vm964_vm0, %v5340_v62 }
0x25cd   : > { %v5427_v52 = vpop.f32.mrb[44].mxu0 }
0x25ce   : > { %v5428_v1 = vadd.f32 %v5828_v0, %v5427_v52  ;;  %v6342_v2 = vpop.f32.mrb[45].mxu0 }
0x25d0   : > { %5432 = vst.msk [vmem:[%s935_s3] sm:$0x3] %vm5431_vm7, %v5428_v1 }
0x25d1 PF: > { %s31_s2 = sadd.s32 1, %s6625_s2  }
0x25d2   : > { %p28_p4 = scmp.ge.s32.totalorder %s31_s2, 4  }
0x25d4   :  { %30 = sbr.rel (!%p28_p4) target bundleno = 9 (0x9), region = 194 }

</bundles_post_ra>
